<compile_context>
chip_gen: v7x
topology: tpu7x:2x2x1
jax: 0.10.0
libtpu: 0.0.40
codegen_flags: <defaults>
</compile_context>

<pallas_src>
import numpy as np
import jax
import jax.numpy as jnp
from jax import lax
from jax.experimental import pallas as pl
from jax.experimental.pallas import tpu as pltpu

DIM_EMBEDDING = 100
LSTM_HIDDEN = 100
LANE = 128
SUBLANE = 8

# TODO(synk): Dropout (p=0.5) layers are identity in eval mode; training-mode
# stochastic dropout (RNG masks) is not implemented here.


def _round_up(x, m):
    return (x + m - 1) // m * m


# ----------------------------- Pallas kernel --------------------------------
def _token_lstm_kernel(x_ref,        # (T*Bp, Ep)   bf16
                       wih_ref,      # (Ep, 8*Hp)   bf16  [fwd gates | bwd gates]
                       b_ref,        # (1, 8*Hp)    f32   folded b_ih + b_hh, both dirs
                       whh_f_ref,    # (Hp, 4*Hp)   f32
                       whh_b_ref,    # (Hp, 4*Hp)   f32
                       whead_ref,    # (2*Hp, Np)   bf16
                       bhead_ref,    # (1, Np)      f32
                       out_ref,      # (T*Bp, Np)   f32
                       xw_ref,       # scratch (T*Bp, 8*Hp) f32
                       hcat_ref,     # scratch (T*Bp, 2*Hp) f32  [h_fwd | h_bwd]
                       hf_ref, cf_ref, hb_ref, cb_ref):  # scratch (Bp, Hp) f32
    TB = x_ref.shape[0]
    Bp, Hp = hf_ref.shape
    T = TB // Bp
    G4 = 4 * Hp

    # ---- hoisted input projection for BOTH directions: one big MXU matmul ----
    xw_ref[...] = (jnp.dot(x_ref[...], wih_ref[...],
                           preferred_element_type=jnp.float32) + b_ref[...])

    hf_ref[...] = jnp.zeros_like(hf_ref)
    cf_ref[...] = jnp.zeros_like(cf_ref)
    hb_ref[...] = jnp.zeros_like(hb_ref)
    cb_ref[...] = jnp.zeros_like(cb_ref)

    def lstm_step(pre, h, c, whh_ref):
        # PyTorch gate order i, f, g, o; each gate sits in its own 128-lane slot.
        gates = pre + jnp.dot(h, whh_ref[...], preferred_element_type=jnp.float32)
        i = jax.nn.sigmoid(gates[:, 0 * Hp:1 * Hp])
        f = jax.nn.sigmoid(gates[:, 1 * Hp:2 * Hp])
        g = jnp.tanh(gates[:, 2 * Hp:3 * Hp])
        o = jax.nn.sigmoid(gates[:, 3 * Hp:4 * Hp])
        c_new = f * c + i * g
        h_new = o * jnp.tanh(c_new)
        return h_new, c_new

    # ---- fused fwd/bwd recurrence: two independent chains per iteration -----
    def body(t, carry):
        tb = T - 1 - t
        rf = pl.multiple_of(t * Bp, Bp)
        rb = pl.multiple_of(tb * Bp, Bp)
        hf_new, cf_new = lstm_step(xw_ref[pl.ds(rf, Bp), 0:G4],
                                   hf_ref[...], cf_ref[...], whh_f_ref)
        hb_new, cb_new = lstm_step(xw_ref[pl.ds(rb, Bp), G4:2 * G4],
                                   hb_ref[...], cb_ref[...], whh_b_ref)
        hf_ref[...] = hf_new
        cf_ref[...] = cf_new
        hb_ref[...] = hb_new
        cb_ref[...] = cb_new
        hcat_ref[pl.ds(rf, Bp), 0:Hp] = hf_new
        hcat_ref[pl.ds(rb, Bp), Hp:2 * Hp] = hb_new
        return carry

    lax.fori_loop(0, T, body, 0, unroll=True)

    # ---- head: single lane-aligned (T*Bp, 2Hp) x (2Hp, Np) matmul -----------
    out_ref[...] = (jnp.dot(hcat_ref[...].astype(jnp.bfloat16), whead_ref[...],
                            preferred_element_type=jnp.float32) + bhead_ref[...])


# ----------------------------- weight packing (glue) --------------------------
def _pack_gate_cols(w, in_dim_pad, Hp):
    """PyTorch (4H, in_dim) gate-stacked weight -> (in_dim_pad, 4*Hp):
    transposed for right-multiplication, each gate padded to a 128-lane slot."""
    H4, in_dim = w.shape
    H = H4 // 4
    out = jnp.zeros((in_dim_pad, 4 * Hp), jnp.float32)
    for k in range(4):
        out = out.at[:in_dim, k * Hp:k * Hp + H].set(w[k * H:(k + 1) * H, :].T)
    return out


def _pack_gate_bias(b_ih, b_hh, Hp):
    b = (b_ih + b_hh).astype(jnp.float32)
    H = b.shape[0] // 4
    out = jnp.zeros((1, 4 * Hp), jnp.float32)
    for k in range(4):
        out = out.at[0, k * Hp:k * Hp + H].set(b[k * H:(k + 1) * H])
    return out


# ----------------------------- wrapper ---------------------------------------
def token_model_forward(token_ids, params, dataset_name):
    """token_ids: (B, T) int32.  Returns (B, T, ntags) float32."""
    if dataset_name not in params["heads"]:
        raise ValueError(
            f"Dataset id '{dataset_name}' not recognized in heads. "
            f"Available heads: {list(params['heads'].keys())}")

    B, T = token_ids.shape
    E, H = DIM_EMBEDDING, LSTM_HIDDEN
    w_head, b_head = params["heads"][dataset_name]
    ntags = w_head.shape[0]

    Ep = _round_up(E, LANE)
    Hp = _round_up(H, LANE)
    Np = _round_up(ntags, LANE)
    Bp = _round_up(B, SUBLANE)
    TB = T * Bp

    # Embedding gather + (identity) dropout + padding to lane-aligned layout.
    x = jnp.take(params["embedding"], token_ids, axis=0)          # (B, T, E)
    x_tm = jnp.transpose(x, (1, 0, 2)).astype(jnp.float32)        # (T, B, E)
    x_pad = jnp.zeros((T, Bp, Ep), jnp.float32).at[:, :B, :E].set(x_tm)
    x_flat = x_pad.reshape(TB, Ep).astype(jnp.bfloat16)           # (T*Bp, Ep)

    # Concatenated input-projection weights (both directions) + folded biases.
    wih_cat = jnp.concatenate(
        [_pack_gate_cols(params["w_ih_f"], Ep, Hp),
         _pack_gate_cols(params["w_ih_b"], Ep, Hp)], axis=1).astype(jnp.bfloat16)
    b_cat = jnp.concatenate(
        [_pack_gate_bias(params["b_ih_f"], params["b_hh_f"], Hp),
         _pack_gate_bias(params["b_ih_b"], params["b_hh_b"], Hp)], axis=1)
    whh_f = _pack_gate_cols(params["w_hh_f"], Hp, Hp)             # (Hp, 4Hp) f32
    whh_b = _pack_gate_cols(params["w_hh_b"], Hp, Hp)

    # Head weight split [fwd-half | bwd-half] placed at 128-aligned rows.
    whead = jnp.zeros((2 * Hp, Np), jnp.float32)
    whead = whead.at[0:H, 0:ntags].set(w_head[:, :H].T)
    whead = whead.at[Hp:Hp + H, 0:ntags].set(w_head[:, H:].T)
    whead = whead.astype(jnp.bfloat16)
    bhead = jnp.zeros((1, Np), jnp.float32).at[0, :ntags].set(b_head)

    vmem = pl.BlockSpec(memory_space=pltpu.MemorySpace.VMEM)

    # Resident VMEM footprint (no grid -> no double-buffering) + headroom.
    in_bytes = (x_flat.size * 2 + wih_cat.size * 2 + b_cat.size * 4
                + whh_f.size * 4 + whh_b.size * 4 + whead.size * 2 + bhead.size * 4)
    scratch_bytes = (TB * 8 * Hp + TB * 2 * Hp + 4 * Bp * Hp) * 4
    out_bytes = TB * Np * 4
    vmem_limit = int(max(4 * (in_bytes + scratch_bytes + out_bytes),
                         16 * 1024 * 1024))

    cost = pl.CostEstimate(
        flops=(2 * TB * Ep * 8 * Hp              # hoisted input projection
               + 2 * 2 * T * Bp * Hp * 4 * Hp    # recurrent matmuls (both dirs)
               + 2 * TB * 2 * Hp * Np),          # head
        transcendentals=2 * T * Bp * 5 * Hp,
        bytes_accessed=in_bytes + out_bytes)

    out2d = pl.pallas_call(
        _token_lstm_kernel,
        out_shape=jax.ShapeDtypeStruct((TB, Np), jnp.float32),
        in_specs=[vmem] * 7,
        out_specs=vmem,
        scratch_shapes=[
            pltpu.VMEM((TB, 8 * Hp), jnp.float32),   # hoisted input projection
            pltpu.VMEM((TB, 2 * Hp), jnp.float32),   # [h_fwd | h_bwd] sequence
            pltpu.VMEM((Bp, Hp), jnp.float32),       # h fwd
            pltpu.VMEM((Bp, Hp), jnp.float32),       # c fwd
            pltpu.VMEM((Bp, Hp), jnp.float32),       # h bwd
            pltpu.VMEM((Bp, Hp), jnp.float32),       # c bwd
        ],
        compiler_params=pltpu.CompilerParams(vmem_limit_bytes=vmem_limit),
        cost_estimate=cost,
    )(x_flat, wih_cat, b_cat, whh_f, whh_b, whead, bhead)

    out = out2d.reshape(T, Bp, Np)[:, :B, :ntags]                 # strip padding
    return jnp.transpose(out, (1, 0, 2))                          # (B, T, ntags)


# ----------------------------- numpy reference -------------------------------
def _sigmoid(x):
    return 1.0 / (1.0 + np.exp(-x))


def _ref_forward(token_ids, params, dataset_name):
    emb = np.asarray(params["embedding"], np.float32)
    x = emb[np.asarray(token_ids)]                                # (B, T, E)
    H = LSTM_HIDDEN

    def run_dir(xs, wih, whh, bih, bhh):
        B, T, _ = xs.shape
        h = np.zeros((B, H), np.float32)
        c = np.zeros((B, H), np.float32)
        outs = np.zeros((B, T, H), np.float32)
        for t in range(T):
            g = xs[:, t] @ wih.T + h @ whh.T + bih + bhh
            i = _sigmoid(g[:, :H])
            f = _sigmoid(g[:, H:2 * H])
            gg = np.tanh(g[:, 2 * H:3 * H])
            o = _sigmoid(g[:, 3 * H:])
            c = f * c + i * gg
            h = o * np.tanh(c)
            outs[:, t] = h
        return outs

    p = {k: np.asarray(v, np.float32) for k, v in params.items()
         if k != "heads" and k != "embedding"}
    hf = run_dir(x, p["w_ih_f"], p["w_hh_f"], p["b_ih_f"], p["b_hh_f"])
    hb = run_dir(x[:, ::-1], p["w_ih_b"], p["w_hh_b"], p["b_ih_b"], p["b_hh_b"])[:, ::-1]
    hcat = np.concatenate([hf, hb], axis=-1)                      # (B, T, 2H)
    w_head, b_head = params["heads"][dataset_name]
    return hcat @ np.asarray(w_head).T + np.asarray(b_head)


# ----------------------------- main -------------------------------------------
if __name__ == "__main__":
    B, T = 2, 8
    VOCAB = 50
    NTAGS = 9
    E, H = DIM_EMBEDDING, LSTM_HIDDEN

    key = jax.random.PRNGKey(0)
    keys = jax.random.split(key, 16)
    bound = 1.0 / np.sqrt(H)

    def uni(k, shape):
        return jax.random.uniform(k, shape, jnp.float32, -bound, bound)

    params = {
        "embedding": jax.random.normal(keys[0], (VOCAB, E), jnp.float32),
        # forward-direction LSTM weights (PyTorch shapes)
        "w_ih_f": uni(keys[1], (4 * H, E)),
        "w_hh_f": uni(keys[2], (4 * H, H)),
        "b_ih_f": uni(keys[3], (4 * H,)),
        "b_hh_f": uni(keys[4], (4 * H,)),
        # backward-direction LSTM weights
        "w_ih_b": uni(keys[5], (4 * H, E)),
        "w_hh_b": uni(keys[6], (4 * H, H)),
        "b_ih_b": uni(keys[7], (4 * H,)),
        "b_hh_b": uni(keys[8], (4 * H,)),
        # per-dataset heads: Linear(2H -> ntags)
        "heads": {
            "cyner": (uni(keys[9], (NTAGS, 2 * H)), uni(keys[10], (NTAGS,))),
            "aptner": (uni(keys[11], (NTAGS + 2, 2 * H)), uni(keys[12], (NTAGS + 2,))),
        },
    }

    token_ids = jax.random.randint(keys[15], (B, T), 0, VOCAB, dtype=jnp.int32)

    out = token_model_forward(token_ids, params, "cyner")
    out = jax.block_until_ready(out)
    assert out.shape == (B, T, NTAGS), out.shape

    ref = _ref_forward(token_ids, params, "cyner")
    # bf16 inputs on the (non-recurrent) matmuls => slightly looser tolerance.
    np.testing.assert_allclose(np.asarray(out), ref, rtol=2e-2, atol=3e-2)

    print("KERNEL_OK")
</pallas_src>

<mosaic_0001>
module attributes {stable_mosaic.version = 11 : i64} {
  func.func @_token_lstm_kernel(%arg0: memref<64x128xbf16, #tpu.memory_space<vmem>>, %arg1: memref<128x1024xbf16, #tpu.memory_space<vmem>>, %arg2: memref<1x1024xf32, #tpu.memory_space<vmem>>, %arg3: memref<128x512xf32, #tpu.memory_space<vmem>>, %arg4: memref<128x512xf32, #tpu.memory_space<vmem>>, %arg5: memref<256x128xbf16, #tpu.memory_space<vmem>>, %arg6: memref<1x128xf32, #tpu.memory_space<vmem>>, %arg7: memref<64x128xf32, #tpu.memory_space<vmem>>, %arg8: memref<64x1024xf32, #tpu.memory_space<vmem>>, %arg9: memref<64x256xf32, #tpu.memory_space<vmem>>, %arg10: memref<8x128xf32, #tpu.memory_space<vmem>>, %arg11: memref<8x128xf32, #tpu.memory_space<vmem>>, %arg12: memref<8x128xf32, #tpu.memory_space<vmem>>, %arg13: memref<8x128xf32, #tpu.memory_space<vmem>>) attributes {dimension_semantics = [], scalar_prefetch = 0 : i64, scratch_operands = 6 : i64, tpu.core_type = #tpu.core_type<tc>} {
    %c0 = arith.constant 0 : index
    %c0_0 = arith.constant 0 : index
    %0 = vector.load %arg0[%c0, %c0_0] : memref<64x128xbf16, #tpu.memory_space<vmem>>, vector<64x128xbf16>
    %c0_1 = arith.constant 0 : index
    %c0_2 = arith.constant 0 : index
    %1 = vector.load %arg1[%c0_1, %c0_2] : memref<128x1024xbf16, #tpu.memory_space<vmem>>, vector<128x1024xbf16>
    %cst = arith.constant dense<0.000000e+00> : vector<64x1024xf32>
    %2 = tpu.matmul %0, %1, %cst {dimension_numbers = #tpu.dot_dimension_numbers<[1], [0], [0], [1], [0, 0, 1, 1], [], []>} : vector<64x128xbf16>, vector<128x1024xbf16>, vector<64x1024xf32> -> vector<64x1024xf32>
    %c0_3 = arith.constant 0 : index
    %c0_4 = arith.constant 0 : index
    %3 = vector.load %arg2[%c0_3, %c0_4] : memref<1x1024xf32, #tpu.memory_space<vmem>>, vector<1x1024xf32>
    %4 = vector.broadcast %3 : vector<1x1024xf32> to vector<64x1024xf32>
    %5 = arith.addf %2, %4 : vector<64x1024xf32>
    %c0_5 = arith.constant 0 : index
    %c0_6 = arith.constant 0 : index
    %6 = vector.load %arg8[%c0_5, %c0_6] : memref<64x1024xf32, #tpu.memory_space<vmem>>, vector<64x1024xf32>
    tpu.vector_store %arg8[%c0_5, %c0_6], %5 {strides = array<i32>} : memref<64x1024xf32, #tpu.memory_space<vmem>>, vector<64x1024xf32>,
    %cst_7 = arith.constant 0.000000e+00 : f32
    %7 = vector.broadcast %cst_7 : f32 to vector<8x128xf32>
    %c0_8 = arith.constant 0 : index
    %c0_9 = arith.constant 0 : index
    %8 = vector.load %arg10[%c0_8, %c0_9] : memref<8x128xf32, #tpu.memory_space<vmem>>, vector<8x128xf32>
    tpu.vector_store %arg10[%c0_8, %c0_9], %7 {strides = array<i32>} : memref<8x128xf32, #tpu.memory_space<vmem>>, vector<8x128xf32>,
    %cst_10 = arith.constant 0.000000e+00 : f32
    %9 = vector.broadcast %cst_10 : f32 to vector<8x128xf32>
    %c0_11 = arith.constant 0 : index
    %c0_12 = arith.constant 0 : index
    %10 = vector.load %arg11[%c0_11, %c0_12] : memref<8x128xf32, #tpu.memory_space<vmem>>, vector<8x128xf32>
    tpu.vector_store %arg11[%c0_11, %c0_12], %9 {strides = array<i32>} : memref<8x128xf32, #tpu.memory_space<vmem>>, vector<8x128xf32>,
    %cst_13 = arith.constant 0.000000e+00 : f32
    %11 = vector.broadcast %cst_13 : f32 to vector<8x128xf32>
    %c0_14 = arith.constant 0 : index
    %c0_15 = arith.constant 0 : index
    %12 = vector.load %arg12[%c0_14, %c0_15] : memref<8x128xf32, #tpu.memory_space<vmem>>, vector<8x128xf32>
    tpu.vector_store %arg12[%c0_14, %c0_15], %11 {strides = array<i32>} : memref<8x128xf32, #tpu.memory_space<vmem>>, vector<8x128xf32>,
    %cst_16 = arith.constant 0.000000e+00 : f32
    %13 = vector.broadcast %cst_16 : f32 to vector<8x128xf32>
    %c0_17 = arith.constant 0 : index
    %c0_18 = arith.constant 0 : index
    %14 = vector.load %arg13[%c0_17, %c0_18] : memref<8x128xf32, #tpu.memory_space<vmem>>, vector<8x128xf32>
    tpu.vector_store %arg13[%c0_17, %c0_18], %13 {strides = array<i32>} : memref<8x128xf32, #tpu.memory_space<vmem>>, vector<8x128xf32>,
    %c0_i32 = arith.constant 0 : i32
    %c7_i32 = arith.constant 7 : i32
    %15 = arith.subi %c7_i32, %c0_i32 : i32
    %c8_i32 = arith.constant 8 : i32
    %16 = arith.muli %c0_i32, %c8_i32 : i32
    %17 = tpu.assume_multiple %16, 8 : i32
    %c8_i32_19 = arith.constant 8 : i32
    %18 = arith.muli %15, %c8_i32_19 : i32
    %19 = tpu.assume_multiple %18, 8 : i32
    %20 = arith.index_cast %17 : i32 to index
    %c0_20 = arith.constant 0 : index
    %21 = vector.load %arg8[%20, %c0_20] : memref<64x1024xf32, #tpu.memory_space<vmem>>, vector<8x512xf32>
    %c0_21 = arith.constant 0 : index
    %c0_22 = arith.constant 0 : index
    %22 = vector.load %arg10[%c0_21, %c0_22] : memref<8x128xf32, #tpu.memory_space<vmem>>, vector<8x128xf32>
    %c0_23 = arith.constant 0 : index
    %c0_24 = arith.constant 0 : index
    %23 = vector.load %arg11[%c0_23, %c0_24] : memref<8x128xf32, #tpu.memory_space<vmem>>, vector<8x128xf32>
    %c0_25 = arith.constant 0 : index
    %c0_26 = arith.constant 0 : index
    %24 = vector.load %arg3[%c0_25, %c0_26] : memref<128x512xf32, #tpu.memory_space<vmem>>, vector<128x512xf32>
    %cst_27 = arith.constant dense<0.000000e+00> : vector<8x512xf32>
    %25 = tpu.matmul %22, %24, %cst_27 {dimension_numbers = #tpu.dot_dimension_numbers<[1], [0], [0], [1], [0, 0, 1, 1], [], []>} : vector<8x128xf32>, vector<128x512xf32>, vector<8x512xf32> -> vector<8x512xf32>
    %26 = arith.addf %21, %25 : vector<8x512xf32>
    %27 = vector.extract_strided_slice %26 {offsets = [0, 0], sizes = [8, 128], strides = [1, 1]} : vector<8x512xf32> to vector<8x128xf32>
    %28 = arith.negf %27 : vector<8x128xf32>
    %29 = math.exp %28 : vector<8x128xf32>
    %cst_28 = arith.constant 1.000000e+00 : f32
    %30 = vector.broadcast %cst_28 : f32 to vector<8x128xf32>
    %31 = arith.addf %30, %29 : vector<8x128xf32>
    %32 = arith.divf %30, %31 : vector<8x128xf32>
    %33 = vector.extract_strided_slice %26 {offsets = [0, 128], sizes = [8, 128], strides = [1, 1]} : vector<8x512xf32> to vector<8x128xf32>
    %34 = arith.negf %33 : vector<8x128xf32>
    %35 = math.exp %34 : vector<8x128xf32>
    %cst_29 = arith.constant 1.000000e+00 : f32
    %36 = vector.broadcast %cst_29 : f32 to vector<8x128xf32>
    %37 = arith.addf %36, %35 : vector<8x128xf32>
    %38 = arith.divf %36, %37 : vector<8x128xf32>
    %39 = vector.extract_strided_slice %26 {offsets = [0, 256], sizes = [8, 128], strides = [1, 1]} : vector<8x512xf32> to vector<8x128xf32>
    %40 = math.tanh %39 : vector<8x128xf32>
    %41 = vector.extract_strided_slice %26 {offsets = [0, 384], sizes = [8, 128], strides = [1, 1]} : vector<8x512xf32> to vector<8x128xf32>
    %42 = arith.negf %41 : vector<8x128xf32>
    %43 = math.exp %42 : vector<8x128xf32>
    %cst_30 = arith.constant 1.000000e+00 : f32
    %44 = vector.broadcast %cst_30 : f32 to vector<8x128xf32>
    %45 = arith.addf %44, %43 : vector<8x128xf32>
    %46 = arith.divf %44, %45 : vector<8x128xf32>
    %47 = arith.mulf %38, %23 : vector<8x128xf32>
    %48 = arith.mulf %32, %40 : vector<8x128xf32>
    %49 = arith.addf %47, %48 : vector<8x128xf32>
    %50 = math.tanh %49 : vector<8x128xf32>
    %51 = arith.mulf %46, %50 : vector<8x128xf32>
    %52 = arith.index_cast %19 : i32 to index
    %c512 = arith.constant 512 : index
    %53 = vector.load %arg8[%52, %c512] : memref<64x1024xf32, #tpu.memory_space<vmem>>, vector<8x512xf32>
    %c0_31 = arith.constant 0 : index
    %c0_32 = arith.constant 0 : index
    %54 = vector.load %arg12[%c0_31, %c0_32] : memref<8x128xf32, #tpu.memory_space<vmem>>, vector<8x128xf32>
    %c0_33 = arith.constant 0 : index
    %c0_34 = arith.constant 0 : index
    %55 = vector.load %arg13[%c0_33, %c0_34] : memref<8x128xf32, #tpu.memory_space<vmem>>, vector<8x128xf32>
    %c0_35 = arith.constant 0 : index
    %c0_36 = arith.constant 0 : index
    %56 = vector.load %arg4[%c0_35, %c0_36] : memref<128x512xf32, #tpu.memory_space<vmem>>, vector<128x512xf32>
    %cst_37 = arith.constant dense<0.000000e+00> : vector<8x512xf32>
    %57 = tpu.matmul %54, %56, %cst_37 {dimension_numbers = #tpu.dot_dimension_numbers<[1], [0], [0], [1], [0, 0, 1, 1], [], []>} : vector<8x128xf32>, vector<128x512xf32>, vector<8x512xf32> -> vector<8x512xf32>
    %58 = arith.addf %53, %57 : vector<8x512xf32>
    %59 = vector.extract_strided_slice %58 {offsets = [0, 0], sizes = [8, 128], strides = [1, 1]} : vector<8x512xf32> to vector<8x128xf32>
    %60 = arith.negf %59 : vector<8x128xf32>
    %61 = math.exp %60 : vector<8x128xf32>
    %cst_38 = arith.constant 1.000000e+00 : f32
    %62 = vector.broadcast %cst_38 : f32 to vector<8x128xf32>
    %63 = arith.addf %62, %61 : vector<8x128xf32>
    %64 = arith.divf %62, %63 : vector<8x128xf32>
    %65 = vector.extract_strided_slice %58 {offsets = [0, 128], sizes = [8, 128], strides = [1, 1]} : vector<8x512xf32> to vector<8x128xf32>
    %66 = arith.negf %65 : vector<8x128xf32>
    %67 = math.exp %66 : vector<8x128xf32>
    %cst_39 = arith.constant 1.000000e+00 : f32
    %68 = vector.broadcast %cst_39 : f32 to vector<8x128xf32>
    %69 = arith.addf %68, %67 : vector<8x128xf32>
    %70 = arith.divf %68, %69 : vector<8x128xf32>
    %71 = vector.extract_strided_slice %58 {offsets = [0, 256], sizes = [8, 128], strides = [1, 1]} : vector<8x512xf32> to vector<8x128xf32>
    %72 = math.tanh %71 : vector<8x128xf32>
    %73 = vector.extract_strided_slice %58 {offsets = [0, 384], sizes = [8, 128], strides = [1, 1]} : vector<8x512xf32> to vector<8x128xf32>
    %74 = arith.negf %73 : vector<8x128xf32>
    %75 = math.exp %74 : vector<8x128xf32>
    %cst_40 = arith.constant 1.000000e+00 : f32
    %76 = vector.broadcast %cst_40 : f32 to vector<8x128xf32>
    %77 = arith.addf %76, %75 : vector<8x128xf32>
    %78 = arith.divf %76, %77 : vector<8x128xf32>
    %79 = arith.mulf %70, %55 : vector<8x128xf32>
    %80 = arith.mulf %64, %72 : vector<8x128xf32>
    %81 = arith.addf %79, %80 : vector<8x128xf32>
    %82 = math.tanh %81 : vector<8x128xf32>
    %83 = arith.mulf %78, %82 : vector<8x128xf32>
    %c0_41 = arith.constant 0 : index
    %c0_42 = arith.constant 0 : index
    %84 = vector.load %arg10[%c0_41, %c0_42] : memref<8x128xf32, #tpu.memory_space<vmem>>, vector<8x128xf32>
    tpu.vector_store %arg10[%c0_41, %c0_42], %51 {strides = array<i32>} : memref<8x128xf32, #tpu.memory_space<vmem>>, vector<8x128xf32>,
    %c0_43 = arith.constant 0 : index
    %c0_44 = arith.constant 0 : index
    %85 = vector.load %arg11[%c0_43, %c0_44] : memref<8x128xf32, #tpu.memory_space<vmem>>, vector<8x128xf32>
    tpu.vector_store %arg11[%c0_43, %c0_44], %49 {strides = array<i32>} : memref<8x128xf32, #tpu.memory_space<vmem>>, vector<8x128xf32>,
    %c0_45 = arith.constant 0 : index
    %c0_46 = arith.constant 0 : index
    %86 = vector.load %arg12[%c0_45, %c0_46] : memref<8x128xf32, #tpu.memory_space<vmem>>, vector<8x128xf32>
    tpu.vector_store %arg12[%c0_45, %c0_46], %83 {strides = array<i32>} : memref<8x128xf32, #tpu.memory_space<vmem>>, vector<8x128xf32>,
    %c0_47 = arith.constant 0 : index
    %c0_48 = arith.constant 0 : index
    %87 = vector.load %arg13[%c0_47, %c0_48] : memref<8x128xf32, #tpu.memory_space<vmem>>, vector<8x128xf32>
    tpu.vector_store %arg13[%c0_47, %c0_48], %81 {strides = array<i32>} : memref<8x128xf32, #tpu.memory_space<vmem>>, vector<8x128xf32>,
    %88 = arith.index_cast %17 : i32 to index
    %c0_49 = arith.constant 0 : index
    %89 = vector.load %arg9[%88, %c0_49] : memref<64x256xf32, #tpu.memory_space<vmem>>, vector<8x128xf32>
    tpu.vector_store %arg9[%88, %c0_49], %51 {strides = array<i32>} : memref<64x256xf32, #tpu.memory_space<vmem>>, vector<8x128xf32>,
    %90 = arith.index_cast %19 : i32 to index
    %c128 = arith.constant 128 : index
    %91 = vector.load %arg9[%90, %c128] : memref<64x256xf32, #tpu.memory_space<vmem>>, vector<8x128xf32>
    tpu.vector_store %arg9[%90, %c128], %83 {strides = array<i32>} : memref<64x256xf32, #tpu.memory_space<vmem>>, vector<8x128xf32>,
    %c1_i32 = arith.constant 1 : i32
    %c7_i32_50 = arith.constant 7 : i32
    %92 = arith.subi %c7_i32_50, %c1_i32 : i32
    %c8_i32_51 = arith.constant 8 : i32
    %93 = arith.muli %c1_i32, %c8_i32_51 : i32
    %94 = tpu.assume_multiple %93, 8 : i32
    %c8_i32_52 = arith.constant 8 : i32
    %95 = arith.muli %92, %c8_i32_52 : i32
    %96 = tpu.assume_multiple %95, 8 : i32
    %97 = arith.index_cast %94 : i32 to index
    %c0_53 = arith.constant 0 : index
    %98 = vector.load %arg8[%97, %c0_53] : memref<64x1024xf32, #tpu.memory_space<vmem>>, vector<8x512xf32>
    %c0_54 = arith.constant 0 : index
    %c0_55 = arith.constant 0 : index
    %99 = vector.load %arg10[%c0_54, %c0_55] : memref<8x128xf32, #tpu.memory_space<vmem>>, vector<8x128xf32>
    %c0_56 = arith.constant 0 : index
    %c0_57 = arith.constant 0 : index
    %100 = vector.load %arg11[%c0_56, %c0_57] : memref<8x128xf32, #tpu.memory_space<vmem>>, vector<8x128xf32>
    %c0_58 = arith.constant 0 : index
    %c0_59 = arith.constant 0 : index
    %101 = vector.load %arg3[%c0_58, %c0_59] : memref<128x512xf32, #tpu.memory_space<vmem>>, vector<128x512xf32>
    %cst_60 = arith.constant dense<0.000000e+00> : vector<8x512xf32>
    %102 = tpu.matmul %99, %101, %cst_60 {dimension_numbers = #tpu.dot_dimension_numbers<[1], [0], [0], [1], [0, 0, 1, 1], [], []>} : vector<8x128xf32>, vector<128x512xf32>, vector<8x512xf32> -> vector<8x512xf32>
    %103 = arith.addf %98, %102 : vector<8x512xf32>
    %104 = vector.extract_strided_slice %103 {offsets = [0, 0], sizes = [8, 128], strides = [1, 1]} : vector<8x512xf32> to vector<8x128xf32>
    %105 = arith.negf %104 : vector<8x128xf32>
    %106 = math.exp %105 : vector<8x128xf32>
    %cst_61 = arith.constant 1.000000e+00 : f32
    %107 = vector.broadcast %cst_61 : f32 to vector<8x128xf32>
    %108 = arith.addf %107, %106 : vector<8x128xf32>
    %109 = arith.divf %107, %108 : vector<8x128xf32>
    %110 = vector.extract_strided_slice %103 {offsets = [0, 128], sizes = [8, 128], strides = [1, 1]} : vector<8x512xf32> to vector<8x128xf32>
    %111 = arith.negf %110 : vector<8x128xf32>
    %112 = math.exp %111 : vector<8x128xf32>
    %cst_62 = arith.constant 1.000000e+00 : f32
    %113 = vector.broadcast %cst_62 : f32 to vector<8x128xf32>
    %114 = arith.addf %113, %112 : vector<8x128xf32>
    %115 = arith.divf %113, %114 : vector<8x128xf32>
    %116 = vector.extract_strided_slice %103 {offsets = [0, 256], sizes = [8, 128], strides = [1, 1]} : vector<8x512xf32> to vector<8x128xf32>
    %117 = math.tanh %116 : vector<8x128xf32>
    %118 = vector.extract_strided_slice %103 {offsets = [0, 384], sizes = [8, 128], strides = [1, 1]} : vector<8x512xf32> to vector<8x128xf32>
    %119 = arith.negf %118 : vector<8x128xf32>
    %120 = math.exp %119 : vector<8x128xf32>
    %cst_63 = arith.constant 1.000000e+00 : f32
    %121 = vector.broadcast %cst_63 : f32 to vector<8x128xf32>
    %122 = arith.addf %121, %120 : vector<8x128xf32>
    %123 = arith.divf %121, %122 : vector<8x128xf32>
    %124 = arith.mulf %115, %100 : vector<8x128xf32>
    %125 = arith.mulf %109, %117 : vector<8x128xf32>
    %126 = arith.addf %124, %125 : vector<8x128xf32>
    %127 = math.tanh %126 : vector<8x128xf32>
    %128 = arith.mulf %123, %127 : vector<8x128xf32>
    %129 = arith.index_cast %96 : i32 to index
    %c512_64 = arith.constant 512 : index
    %130 = vector.load %arg8[%129, %c512_64] : memref<64x1024xf32, #tpu.memory_space<vmem>>, vector<8x512xf32>
    %c0_65 = arith.constant 0 : index
    %c0_66 = arith.constant 0 : index
    %131 = vector.load %arg12[%c0_65, %c0_66] : memref<8x128xf32, #tpu.memory_space<vmem>>, vector<8x128xf32>
    %c0_67 = arith.constant 0 : index
    %c0_68 = arith.constant 0 : index
    %132 = vector.load %arg13[%c0_67, %c0_68] : memref<8x128xf32, #tpu.memory_space<vmem>>, vector<8x128xf32>
    %c0_69 = arith.constant 0 : index
    %c0_70 = arith.constant 0 : index
    %133 = vector.load %arg4[%c0_69, %c0_70] : memref<128x512xf32, #tpu.memory_space<vmem>>, vector<128x512xf32>
    %cst_71 = arith.constant dense<0.000000e+00> : vector<8x512xf32>
    %134 = tpu.matmul %131, %133, %cst_71 {dimension_numbers = #tpu.dot_dimension_numbers<[1], [0], [0], [1], [0, 0, 1, 1], [], []>} : vector<8x128xf32>, vector<128x512xf32>, vector<8x512xf32> -> vector<8x512xf32>
    %135 = arith.addf %130, %134 : vector<8x512xf32>
    %136 = vector.extract_strided_slice %135 {offsets = [0, 0], sizes = [8, 128], strides = [1, 1]} : vector<8x512xf32> to vector<8x128xf32>
    %137 = arith.negf %136 : vector<8x128xf32>
    %138 = math.exp %137 : vector<8x128xf32>
    %cst_72 = arith.constant 1.000000e+00 : f32
    %139 = vector.broadcast %cst_72 : f32 to vector<8x128xf32>
    %140 = arith.addf %139, %138 : vector<8x128xf32>
    %141 = arith.divf %139, %140 : vector<8x128xf32>
    %142 = vector.extract_strided_slice %135 {offsets = [0, 128], sizes = [8, 128], strides = [1, 1]} : vector<8x512xf32> to vector<8x128xf32>
    %143 = arith.negf %142 : vector<8x128xf32>
    %144 = math.exp %143 : vector<8x128xf32>
    %cst_73 = arith.constant 1.000000e+00 : f32
    %145 = vector.broadcast %cst_73 : f32 to vector<8x128xf32>
    %146 = arith.addf %145, %144 : vector<8x128xf32>
    %147 = arith.divf %145, %146 : vector<8x128xf32>
    %148 = vector.extract_strided_slice %135 {offsets = [0, 256], sizes = [8, 128], strides = [1, 1]} : vector<8x512xf32> to vector<8x128xf32>
    %149 = math.tanh %148 : vector<8x128xf32>
    %150 = vector.extract_strided_slice %135 {offsets = [0, 384], sizes = [8, 128], strides = [1, 1]} : vector<8x512xf32> to vector<8x128xf32>
    %151 = arith.negf %150 : vector<8x128xf32>
    %152 = math.exp %151 : vector<8x128xf32>
    %cst_74 = arith.constant 1.000000e+00 : f32
    %153 = vector.broadcast %cst_74 : f32 to vector<8x128xf32>
    %154 = arith.addf %153, %152 : vector<8x128xf32>
    %155 = arith.divf %153, %154 : vector<8x128xf32>
    %156 = arith.mulf %147, %132 : vector<8x128xf32>
    %157 = arith.mulf %141, %149 : vector<8x128xf32>
    %158 = arith.addf %156, %157 : vector<8x128xf32>
    %159 = math.tanh %158 : vector<8x128xf32>
    %160 = arith.mulf %155, %159 : vector<8x128xf32>
    %c0_75 = arith.constant 0 : index
    %c0_76 = arith.constant 0 : index
    %161 = vector.load %arg10[%c0_75, %c0_76] : memref<8x128xf32, #tpu.memory_space<vmem>>, vector<8x128xf32>
    tpu.vector_store %arg10[%c0_75, %c0_76], %128 {strides = array<i32>} : memref<8x128xf32, #tpu.memory_space<vmem>>, vector<8x128xf32>,
    %c0_77 = arith.constant 0 : index
    %c0_78 = arith.constant 0 : index
    %162 = vector.load %arg11[%c0_77, %c0_78] : memref<8x128xf32, #tpu.memory_space<vmem>>, vector<8x128xf32>
    tpu.vector_store %arg11[%c0_77, %c0_78], %126 {strides = array<i32>} : memref<8x128xf32, #tpu.memory_space<vmem>>, vector<8x128xf32>,
    %c0_79 = arith.constant 0 : index
    %c0_80 = arith.constant 0 : index
    %163 = vector.load %arg12[%c0_79, %c0_80] : memref<8x128xf32, #tpu.memory_space<vmem>>, vector<8x128xf32>
    tpu.vector_store %arg12[%c0_79, %c0_80], %160 {strides = array<i32>} : memref<8x128xf32, #tpu.memory_space<vmem>>, vector<8x128xf32>,
    %c0_81 = arith.constant 0 : index
    %c0_82 = arith.constant 0 : index
    %164 = vector.load %arg13[%c0_81, %c0_82] : memref<8x128xf32, #tpu.memory_space<vmem>>, vector<8x128xf32>
    tpu.vector_store %arg13[%c0_81, %c0_82], %158 {strides = array<i32>} : memref<8x128xf32, #tpu.memory_space<vmem>>, vector<8x128xf32>,
    %165 = arith.index_cast %94 : i32 to index
    %c0_83 = arith.constant 0 : index
    %166 = vector.load %arg9[%165, %c0_83] : memref<64x256xf32, #tpu.memory_space<vmem>>, vector<8x128xf32>
    tpu.vector_store %arg9[%165, %c0_83], %128 {strides = array<i32>} : memref<64x256xf32, #tpu.memory_space<vmem>>, vector<8x128xf32>,
    %167 = arith.index_cast %96 : i32 to index
    %c128_84 = arith.constant 128 : index
    %168 = vector.load %arg9[%167, %c128_84] : memref<64x256xf32, #tpu.memory_space<vmem>>, vector<8x128xf32>
    tpu.vector_store %arg9[%167, %c128_84], %160 {strides = array<i32>} : memref<64x256xf32, #tpu.memory_space<vmem>>, vector<8x128xf32>,
    %c2_i32 = arith.constant 2 : i32
    %c7_i32_85 = arith.constant 7 : i32
    %169 = arith.subi %c7_i32_85, %c2_i32 : i32
    %c8_i32_86 = arith.constant 8 : i32
    %170 = arith.muli %c2_i32, %c8_i32_86 : i32
    %171 = tpu.assume_multiple %170, 8 : i32
    %c8_i32_87 = arith.constant 8 : i32
    %172 = arith.muli %169, %c8_i32_87 : i32
    %173 = tpu.assume_multiple %172, 8 : i32
    %174 = arith.index_cast %171 : i32 to index
    %c0_88 = arith.constant 0 : index
    %175 = vector.load %arg8[%174, %c0_88] : memref<64x1024xf32, #tpu.memory_space<vmem>>, vector<8x512xf32>
    %c0_89 = arith.constant 0 : index
    %c0_90 = arith.constant 0 : index
    %176 = vector.load %arg10[%c0_89, %c0_90] : memref<8x128xf32, #tpu.memory_space<vmem>>, vector<8x128xf32>
    %c0_91 = arith.constant 0 : index
    %c0_92 = arith.constant 0 : index
    %177 = vector.load %arg11[%c0_91, %c0_92] : memref<8x128xf32, #tpu.memory_space<vmem>>, vector<8x128xf32>
    %c0_93 = arith.constant 0 : index
    %c0_94 = arith.constant 0 : index
    %178 = vector.load %arg3[%c0_93, %c0_94] : memref<128x512xf32, #tpu.memory_space<vmem>>, vector<128x512xf32>
    %cst_95 = arith.constant dense<0.000000e+00> : vector<8x512xf32>
    %179 = tpu.matmul %176, %178, %cst_95 {dimension_numbers = #tpu.dot_dimension_numbers<[1], [0], [0], [1], [0, 0, 1, 1], [], []>} : vector<8x128xf32>, vector<128x512xf32>, vector<8x512xf32> -> vector<8x512xf32>
    %180 = arith.addf %175, %179 : vector<8x512xf32>
    %181 = vector.extract_strided_slice %180 {offsets = [0, 0], sizes = [8, 128], strides = [1, 1]} : vector<8x512xf32> to vector<8x128xf32>
    %182 = arith.negf %181 : vector<8x128xf32>
    %183 = math.exp %182 : vector<8x128xf32>
    %cst_96 = arith.constant 1.000000e+00 : f32
    %184 = vector.broadcast %cst_96 : f32 to vector<8x128xf32>
    %185 = arith.addf %184, %183 : vector<8x128xf32>
    %186 = arith.divf %184, %185 : vector<8x128xf32>
    %187 = vector.extract_strided_slice %180 {offsets = [0, 128], sizes = [8, 128], strides = [1, 1]} : vector<8x512xf32> to vector<8x128xf32>
    %188 = arith.negf %187 : vector<8x128xf32>
    %189 = math.exp %188 : vector<8x128xf32>
    %cst_97 = arith.constant 1.000000e+00 : f32
    %190 = vector.broadcast %cst_97 : f32 to vector<8x128xf32>
    %191 = arith.addf %190, %189 : vector<8x128xf32>
    %192 = arith.divf %190, %191 : vector<8x128xf32>
    %193 = vector.extract_strided_slice %180 {offsets = [0, 256], sizes = [8, 128], strides = [1, 1]} : vector<8x512xf32> to vector<8x128xf32>
    %194 = math.tanh %193 : vector<8x128xf32>
    %195 = vector.extract_strided_slice %180 {offsets = [0, 384], sizes = [8, 128], strides = [1, 1]} : vector<8x512xf32> to vector<8x128xf32>
    %196 = arith.negf %195 : vector<8x128xf32>
    %197 = math.exp %196 : vector<8x128xf32>
    %cst_98 = arith.constant 1.000000e+00 : f32
    %198 = vector.broadcast %cst_98 : f32 to vector<8x128xf32>
    %199 = arith.addf %198, %197 : vector<8x128xf32>
    %200 = arith.divf %198, %199 : vector<8x128xf32>
    %201 = arith.mulf %192, %177 : vector<8x128xf32>
    %202 = arith.mulf %186, %194 : vector<8x128xf32>
    %203 = arith.addf %201, %202 : vector<8x128xf32>
    %204 = math.tanh %203 : vector<8x128xf32>
    %205 = arith.mulf %200, %204 : vector<8x128xf32>
    %206 = arith.index_cast %173 : i32 to index
    %c512_99 = arith.constant 512 : index
    %207 = vector.load %arg8[%206, %c512_99] : memref<64x1024xf32, #tpu.memory_space<vmem>>, vector<8x512xf32>
    %c0_100 = arith.constant 0 : index
    %c0_101 = arith.constant 0 : index
    %208 = vector.load %arg12[%c0_100, %c0_101] : memref<8x128xf32, #tpu.memory_space<vmem>>, vector<8x128xf32>
    %c0_102 = arith.constant 0 : index
    %c0_103 = arith.constant 0 : index
    %209 = vector.load %arg13[%c0_102, %c0_103] : memref<8x128xf32, #tpu.memory_space<vmem>>, vector<8x128xf32>
    %c0_104 = arith.constant 0 : index
    %c0_105 = arith.constant 0 : index
    %210 = vector.load %arg4[%c0_104, %c0_105] : memref<128x512xf32, #tpu.memory_space<vmem>>, vector<128x512xf32>
    %cst_106 = arith.constant dense<0.000000e+00> : vector<8x512xf32>
    %211 = tpu.matmul %208, %210, %cst_106 {dimension_numbers = #tpu.dot_dimension_numbers<[1], [0], [0], [1], [0, 0, 1, 1], [], []>} : vector<8x128xf32>, vector<128x512xf32>, vector<8x512xf32> -> vector<8x512xf32>
    %212 = arith.addf %207, %211 : vector<8x512xf32>
    %213 = vector.extract_strided_slice %212 {offsets = [0, 0], sizes = [8, 128], strides = [1, 1]} : vector<8x512xf32> to vector<8x128xf32>
    %214 = arith.negf %213 : vector<8x128xf32>
    %215 = math.exp %214 : vector<8x128xf32>
    %cst_107 = arith.constant 1.000000e+00 : f32
    %216 = vector.broadcast %cst_107 : f32 to vector<8x128xf32>
    %217 = arith.addf %216, %215 : vector<8x128xf32>
    %218 = arith.divf %216, %217 : vector<8x128xf32>
    %219 = vector.extract_strided_slice %212 {offsets = [0, 128], sizes = [8, 128], strides = [1, 1]} : vector<8x512xf32> to vector<8x128xf32>
    %220 = arith.negf %219 : vector<8x128xf32>
    %221 = math.exp %220 : vector<8x128xf32>
    %cst_108 = arith.constant 1.000000e+00 : f32
    %222 = vector.broadcast %cst_108 : f32 to vector<8x128xf32>
    %223 = arith.addf %222, %221 : vector<8x128xf32>
    %224 = arith.divf %222, %223 : vector<8x128xf32>
    %225 = vector.extract_strided_slice %212 {offsets = [0, 256], sizes = [8, 128], strides = [1, 1]} : vector<8x512xf32> to vector<8x128xf32>
    %226 = math.tanh %225 : vector<8x128xf32>
    %227 = vector.extract_strided_slice %212 {offsets = [0, 384], sizes = [8, 128], strides = [1, 1]} : vector<8x512xf32> to vector<8x128xf32>
    %228 = arith.negf %227 : vector<8x128xf32>
    %229 = math.exp %228 : vector<8x128xf32>
    %cst_109 = arith.constant 1.000000e+00 : f32
    %230 = vector.broadcast %cst_109 : f32 to vector<8x128xf32>
    %231 = arith.addf %230, %229 : vector<8x128xf32>
    %232 = arith.divf %230, %231 : vector<8x128xf32>
    %233 = arith.mulf %224, %209 : vector<8x128xf32>
    %234 = arith.mulf %218, %226 : vector<8x128xf32>
    %235 = arith.addf %233, %234 : vector<8x128xf32>
    %236 = math.tanh %235 : vector<8x128xf32>
    %237 = arith.mulf %232, %236 : vector<8x128xf32>
    %c0_110 = arith.constant 0 : index
    %c0_111 = arith.constant 0 : index
    %238 = vector.load %arg10[%c0_110, %c0_111] : memref<8x128xf32, #tpu.memory_space<vmem>>, vector<8x128xf32>
    tpu.vector_store %arg10[%c0_110, %c0_111], %205 {strides = array<i32>} : memref<8x128xf32, #tpu.memory_space<vmem>>, vector<8x128xf32>,
    %c0_112 = arith.constant 0 : index
    %c0_113 = arith.constant 0 : index
    %239 = vector.load %arg11[%c0_112, %c0_113] : memref<8x128xf32, #tpu.memory_space<vmem>>, vector<8x128xf32>
    tpu.vector_store %arg11[%c0_112, %c0_113], %203 {strides = array<i32>} : memref<8x128xf32, #tpu.memory_space<vmem>>, vector<8x128xf32>,
    %c0_114 = arith.constant 0 : index
    %c0_115 = arith.constant 0 : index
    %240 = vector.load %arg12[%c0_114, %c0_115] : memref<8x128xf32, #tpu.memory_space<vmem>>, vector<8x128xf32>
    tpu.vector_store %arg12[%c0_114, %c0_115], %237 {strides = array<i32>} : memref<8x128xf32, #tpu.memory_space<vmem>>, vector<8x128xf32>,
    %c0_116 = arith.constant 0 : index
    %c0_117 = arith.constant 0 : index
    %241 = vector.load %arg13[%c0_116, %c0_117] : memref<8x128xf32, #tpu.memory_space<vmem>>, vector<8x128xf32>
    tpu.vector_store %arg13[%c0_116, %c0_117], %235 {strides = array<i32>} : memref<8x128xf32, #tpu.memory_space<vmem>>, vector<8x128xf32>,
    %242 = arith.index_cast %171 : i32 to index
    %c0_118 = arith.constant 0 : index
    %243 = vector.load %arg9[%242, %c0_118] : memref<64x256xf32, #tpu.memory_space<vmem>>, vector<8x128xf32>
    tpu.vector_store %arg9[%242, %c0_118], %205 {strides = array<i32>} : memref<64x256xf32, #tpu.memory_space<vmem>>, vector<8x128xf32>,
    %244 = arith.index_cast %173 : i32 to index
    %c128_119 = arith.constant 128 : index
    %245 = vector.load %arg9[%244, %c128_119] : memref<64x256xf32, #tpu.memory_space<vmem>>, vector<8x128xf32>
    tpu.vector_store %arg9[%244, %c128_119], %237 {strides = array<i32>} : memref<64x256xf32, #tpu.memory_space<vmem>>, vector<8x128xf32>,
    %c3_i32 = arith.constant 3 : i32
    %c7_i32_120 = arith.constant 7 : i32
    %246 = arith.subi %c7_i32_120, %c3_i32 : i32
    %c8_i32_121 = arith.constant 8 : i32
    %247 = arith.muli %c3_i32, %c8_i32_121 : i32
    %248 = tpu.assume_multiple %247, 8 : i32
    %c8_i32_122 = arith.constant 8 : i32
    %249 = arith.muli %246, %c8_i32_122 : i32
    %250 = tpu.assume_multiple %249, 8 : i32
    %251 = arith.index_cast %248 : i32 to index
    %c0_123 = arith.constant 0 : index
    %252 = vector.load %arg8[%251, %c0_123] : memref<64x1024xf32, #tpu.memory_space<vmem>>, vector<8x512xf32>
    %c0_124 = arith.constant 0 : index
    %c0_125 = arith.constant 0 : index
    %253 = vector.load %arg10[%c0_124, %c0_125] : memref<8x128xf32, #tpu.memory_space<vmem>>, vector<8x128xf32>
    %c0_126 = arith.constant 0 : index
    %c0_127 = arith.constant 0 : index
    %254 = vector.load %arg11[%c0_126, %c0_127] : memref<8x128xf32, #tpu.memory_space<vmem>>, vector<8x128xf32>
    %c0_128 = arith.constant 0 : index
    %c0_129 = arith.constant 0 : index
    %255 = vector.load %arg3[%c0_128, %c0_129] : memref<128x512xf32, #tpu.memory_space<vmem>>, vector<128x512xf32>
    %cst_130 = arith.constant dense<0.000000e+00> : vector<8x512xf32>
    %256 = tpu.matmul %253, %255, %cst_130 {dimension_numbers = #tpu.dot_dimension_numbers<[1], [0], [0], [1], [0, 0, 1, 1], [], []>} : vector<8x128xf32>, vector<128x512xf32>, vector<8x512xf32> -> vector<8x512xf32>
    %257 = arith.addf %252, %256 : vector<8x512xf32>
    %258 = vector.extract_strided_slice %257 {offsets = [0, 0], sizes = [8, 128], strides = [1, 1]} : vector<8x512xf32> to vector<8x128xf32>
    %259 = arith.negf %258 : vector<8x128xf32>
    %260 = math.exp %259 : vector<8x128xf32>
    %cst_131 = arith.constant 1.000000e+00 : f32
    %261 = vector.broadcast %cst_131 : f32 to vector<8x128xf32>
    %262 = arith.addf %261, %260 : vector<8x128xf32>
    %263 = arith.divf %261, %262 : vector<8x128xf32>
    %264 = vector.extract_strided_slice %257 {offsets = [0, 128], sizes = [8, 128], strides = [1, 1]} : vector<8x512xf32> to vector<8x128xf32>
    %265 = arith.negf %264 : vector<8x128xf32>
    %266 = math.exp %265 : vector<8x128xf32>
    %cst_132 = arith.constant 1.000000e+00 : f32
    %267 = vector.broadcast %cst_132 : f32 to vector<8x128xf32>
    %268 = arith.addf %267, %266 : vector<8x128xf32>
    %269 = arith.divf %267, %268 : vector<8x128xf32>
    %270 = vector.extract_strided_slice %257 {offsets = [0, 256], sizes = [8, 128], strides = [1, 1]} : vector<8x512xf32> to vector<8x128xf32>
    %271 = math.tanh %270 : vector<8x128xf32>
    %272 = vector.extract_strided_slice %257 {offsets = [0, 384], sizes = [8, 128], strides = [1, 1]} : vector<8x512xf32> to vector<8x128xf32>
    %273 = arith.negf %272 : vector<8x128xf32>
    %274 = math.exp %273 : vector<8x128xf32>
    %cst_133 = arith.constant 1.000000e+00 : f32
    %275 = vector.broadcast %cst_133 : f32 to vector<8x128xf32>
    %276 = arith.addf %275, %274 : vector<8x128xf32>
    %277 = arith.divf %275, %276 : vector<8x128xf32>
    %278 = arith.mulf %269, %254 : vector<8x128xf32>
    %279 = arith.mulf %263, %271 : vector<8x128xf32>
    %280 = arith.addf %278, %279 : vector<8x128xf32>
    %281 = math.tanh %280 : vector<8x128xf32>
    %282 = arith.mulf %277, %281 : vector<8x128xf32>
    %283 = arith.index_cast %250 : i32 to index
    %c512_134 = arith.constant 512 : index
    %284 = vector.load %arg8[%283, %c512_134] : memref<64x1024xf32, #tpu.memory_space<vmem>>, vector<8x512xf32>
    %c0_135 = arith.constant 0 : index
    %c0_136 = arith.constant 0 : index
    %285 = vector.load %arg12[%c0_135, %c0_136] : memref<8x128xf32, #tpu.memory_space<vmem>>, vector<8x128xf32>
    %c0_137 = arith.constant 0 : index
    %c0_138 = arith.constant 0 : index
    %286 = vector.load %arg13[%c0_137, %c0_138] : memref<8x128xf32, #tpu.memory_space<vmem>>, vector<8x128xf32>
    %c0_139 = arith.constant 0 : index
    %c0_140 = arith.constant 0 : index
    %287 = vector.load %arg4[%c0_139, %c0_140] : memref<128x512xf32, #tpu.memory_space<vmem>>, vector<128x512xf32>
    %cst_141 = arith.constant dense<0.000000e+00> : vector<8x512xf32>
    %288 = tpu.matmul %285, %287, %cst_141 {dimension_numbers = #tpu.dot_dimension_numbers<[1], [0], [0], [1], [0, 0, 1, 1], [], []>} : vector<8x128xf32>, vector<128x512xf32>, vector<8x512xf32> -> vector<8x512xf32>
    %289 = arith.addf %284, %288 : vector<8x512xf32>
    %290 = vector.extract_strided_slice %289 {offsets = [0, 0], sizes = [8, 128], strides = [1, 1]} : vector<8x512xf32> to vector<8x128xf32>
    %291 = arith.negf %290 : vector<8x128xf32>
    %292 = math.exp %291 : vector<8x128xf32>
    %cst_142 = arith.constant 1.000000e+00 : f32
    %293 = vector.broadcast %cst_142 : f32 to vector<8x128xf32>
    %294 = arith.addf %293, %292 : vector<8x128xf32>
    %295 = arith.divf %293, %294 : vector<8x128xf32>
    %296 = vector.extract_strided_slice %289 {offsets = [0, 128], sizes = [8, 128], strides = [1, 1]} : vector<8x512xf32> to vector<8x128xf32>
    %297 = arith.negf %296 : vector<8x128xf32>
    %298 = math.exp %297 : vector<8x128xf32>
    %cst_143 = arith.constant 1.000000e+00 : f32
    %299 = vector.broadcast %cst_143 : f32 to vector<8x128xf32>
    %300 = arith.addf %299, %298 : vector<8x128xf32>
    %301 = arith.divf %299, %300 : vector<8x128xf32>
    %302 = vector.extract_strided_slice %289 {offsets = [0, 256], sizes = [8, 128], strides = [1, 1]} : vector<8x512xf32> to vector<8x128xf32>
    %303 = math.tanh %302 : vector<8x128xf32>
    %304 = vector.extract_strided_slice %289 {offsets = [0, 384], sizes = [8, 128], strides = [1, 1]} : vector<8x512xf32> to vector<8x128xf32>
    %305 = arith.negf %304 : vector<8x128xf32>
    %306 = math.exp %305 : vector<8x128xf32>
    %cst_144 = arith.constant 1.000000e+00 : f32
    %307 = vector.broadcast %cst_144 : f32 to vector<8x128xf32>
    %308 = arith.addf %307, %306 : vector<8x128xf32>
    %309 = arith.divf %307, %308 : vector<8x128xf32>
    %310 = arith.mulf %301, %286 : vector<8x128xf32>
    %311 = arith.mulf %295, %303 : vector<8x128xf32>
    %312 = arith.addf %310, %311 : vector<8x128xf32>
    %313 = math.tanh %312 : vector<8x128xf32>
    %314 = arith.mulf %309, %313 : vector<8x128xf32>
    %c0_145 = arith.constant 0 : index
    %c0_146 = arith.constant 0 : index
    %315 = vector.load %arg10[%c0_145, %c0_146] : memref<8x128xf32, #tpu.memory_space<vmem>>, vector<8x128xf32>
    tpu.vector_store %arg10[%c0_145, %c0_146], %282 {strides = array<i32>} : memref<8x128xf32, #tpu.memory_space<vmem>>, vector<8x128xf32>,
    %c0_147 = arith.constant 0 : index
    %c0_148 = arith.constant 0 : index
    %316 = vector.load %arg11[%c0_147, %c0_148] : memref<8x128xf32, #tpu.memory_space<vmem>>, vector<8x128xf32>
    tpu.vector_store %arg11[%c0_147, %c0_148], %280 {strides = array<i32>} : memref<8x128xf32, #tpu.memory_space<vmem>>, vector<8x128xf32>,
    %c0_149 = arith.constant 0 : index
    %c0_150 = arith.constant 0 : index
    %317 = vector.load %arg12[%c0_149, %c0_150] : memref<8x128xf32, #tpu.memory_space<vmem>>, vector<8x128xf32>
    tpu.vector_store %arg12[%c0_149, %c0_150], %314 {strides = array<i32>} : memref<8x128xf32, #tpu.memory_space<vmem>>, vector<8x128xf32>,
    %c0_151 = arith.constant 0 : index
    %c0_152 = arith.constant 0 : index
    %318 = vector.load %arg13[%c0_151, %c0_152] : memref<8x128xf32, #tpu.memory_space<vmem>>, vector<8x128xf32>
    tpu.vector_store %arg13[%c0_151, %c0_152], %312 {strides = array<i32>} : memref<8x128xf32, #tpu.memory_space<vmem>>, vector<8x128xf32>,
    %319 = arith.index_cast %248 : i32 to index
    %c0_153 = arith.constant 0 : index
    %320 = vector.load %arg9[%319, %c0_153] : memref<64x256xf32, #tpu.memory_space<vmem>>, vector<8x128xf32>
    tpu.vector_store %arg9[%319, %c0_153], %282 {strides = array<i32>} : memref<64x256xf32, #tpu.memory_space<vmem>>, vector<8x128xf32>,
    %321 = arith.index_cast %250 : i32 to index
    %c128_154 = arith.constant 128 : index
    %322 = vector.load %arg9[%321, %c128_154] : memref<64x256xf32, #tpu.memory_space<vmem>>, vector<8x128xf32>
    tpu.vector_store %arg9[%321, %c128_154], %314 {strides = array<i32>} : memref<64x256xf32, #tpu.memory_space<vmem>>, vector<8x128xf32>,
    %c4_i32 = arith.constant 4 : i32
    %c7_i32_155 = arith.constant 7 : i32
    %323 = arith.subi %c7_i32_155, %c4_i32 : i32
    %c8_i32_156 = arith.constant 8 : i32
    %324 = arith.muli %c4_i32, %c8_i32_156 : i32
    %325 = tpu.assume_multiple %324, 8 : i32
    %c8_i32_157 = arith.constant 8 : i32
    %326 = arith.muli %323, %c8_i32_157 : i32
    %327 = tpu.assume_multiple %326, 8 : i32
    %328 = arith.index_cast %325 : i32 to index
    %c0_158 = arith.constant 0 : index
    %329 = vector.load %arg8[%328, %c0_158] : memref<64x1024xf32, #tpu.memory_space<vmem>>, vector<8x512xf32>
    %c0_159 = arith.constant 0 : index
    %c0_160 = arith.constant 0 : index
    %330 = vector.load %arg10[%c0_159, %c0_160] : memref<8x128xf32, #tpu.memory_space<vmem>>, vector<8x128xf32>
    %c0_161 = arith.constant 0 : index
    %c0_162 = arith.constant 0 : index
    %331 = vector.load %arg11[%c0_161, %c0_162] : memref<8x128xf32, #tpu.memory_space<vmem>>, vector<8x128xf32>
    %c0_163 = arith.constant 0 : index
    %c0_164 = arith.constant 0 : index
    %332 = vector.load %arg3[%c0_163, %c0_164] : memref<128x512xf32, #tpu.memory_space<vmem>>, vector<128x512xf32>
    %cst_165 = arith.constant dense<0.000000e+00> : vector<8x512xf32>
    %333 = tpu.matmul %330, %332, %cst_165 {dimension_numbers = #tpu.dot_dimension_numbers<[1], [0], [0], [1], [0, 0, 1, 1], [], []>} : vector<8x128xf32>, vector<128x512xf32>, vector<8x512xf32> -> vector<8x512xf32>
    %334 = arith.addf %329, %333 : vector<8x512xf32>
    %335 = vector.extract_strided_slice %334 {offsets = [0, 0], sizes = [8, 128], strides = [1, 1]} : vector<8x512xf32> to vector<8x128xf32>
    %336 = arith.negf %335 : vector<8x128xf32>
    %337 = math.exp %336 : vector<8x128xf32>
    %cst_166 = arith.constant 1.000000e+00 : f32
    %338 = vector.broadcast %cst_166 : f32 to vector<8x128xf32>
    %339 = arith.addf %338, %337 : vector<8x128xf32>
    %340 = arith.divf %338, %339 : vector<8x128xf32>
    %341 = vector.extract_strided_slice %334 {offsets = [0, 128], sizes = [8, 128], strides = [1, 1]} : vector<8x512xf32> to vector<8x128xf32>
    %342 = arith.negf %341 : vector<8x128xf32>
    %343 = math.exp %342 : vector<8x128xf32>
    %cst_167 = arith.constant 1.000000e+00 : f32
    %344 = vector.broadcast %cst_167 : f32 to vector<8x128xf32>
    %345 = arith.addf %344, %343 : vector<8x128xf32>
    %346 = arith.divf %344, %345 : vector<8x128xf32>
    %347 = vector.extract_strided_slice %334 {offsets = [0, 256], sizes = [8, 128], strides = [1, 1]} : vector<8x512xf32> to vector<8x128xf32>
    %348 = math.tanh %347 : vector<8x128xf32>
    %349 = vector.extract_strided_slice %334 {offsets = [0, 384], sizes = [8, 128], strides = [1, 1]} : vector<8x512xf32> to vector<8x128xf32>
    %350 = arith.negf %349 : vector<8x128xf32>
    %351 = math.exp %350 : vector<8x128xf32>
    %cst_168 = arith.constant 1.000000e+00 : f32
    %352 = vector.broadcast %cst_168 : f32 to vector<8x128xf32>
    %353 = arith.addf %352, %351 : vector<8x128xf32>
    %354 = arith.divf %352, %353 : vector<8x128xf32>
    %355 = arith.mulf %346, %331 : vector<8x128xf32>
    %356 = arith.mulf %340, %348 : vector<8x128xf32>
    %357 = arith.addf %355, %356 : vector<8x128xf32>
    %358 = math.tanh %357 : vector<8x128xf32>
    %359 = arith.mulf %354, %358 : vector<8x128xf32>
    %360 = arith.index_cast %327 : i32 to index
    %c512_169 = arith.constant 512 : index
    %361 = vector.load %arg8[%360, %c512_169] : memref<64x1024xf32, #tpu.memory_space<vmem>>, vector<8x512xf32>
    %c0_170 = arith.constant 0 : index
    %c0_171 = arith.constant 0 : index
    %362 = vector.load %arg12[%c0_170, %c0_171] : memref<8x128xf32, #tpu.memory_space<vmem>>, vector<8x128xf32>
    %c0_172 = arith.constant 0 : index
    %c0_173 = arith.constant 0 : index
    %363 = vector.load %arg13[%c0_172, %c0_173] : memref<8x128xf32, #tpu.memory_space<vmem>>, vector<8x128xf32>
    %c0_174 = arith.constant 0 : index
    %c0_175 = arith.constant 0 : index
    %364 = vector.load %arg4[%c0_174, %c0_175] : memref<128x512xf32, #tpu.memory_space<vmem>>, vector<128x512xf32>
    %cst_176 = arith.constant dense<0.000000e+00> : vector<8x512xf32>
    %365 = tpu.matmul %362, %364, %cst_176 {dimension_numbers = #tpu.dot_dimension_numbers<[1], [0], [0], [1], [0, 0, 1, 1], [], []>} : vector<8x128xf32>, vector<128x512xf32>, vector<8x512xf32> -> vector<8x512xf32>
    %366 = arith.addf %361, %365 : vector<8x512xf32>
    %367 = vector.extract_strided_slice %366 {offsets = [0, 0], sizes = [8, 128], strides = [1, 1]} : vector<8x512xf32> to vector<8x128xf32>
    %368 = arith.negf %367 : vector<8x128xf32>
    %369 = math.exp %368 : vector<8x128xf32>
    %cst_177 = arith.constant 1.000000e+00 : f32
    %370 = vector.broadcast %cst_177 : f32 to vector<8x128xf32>
    %371 = arith.addf %370, %369 : vector<8x128xf32>
    %372 = arith.divf %370, %371 : vector<8x128xf32>
    %373 = vector.extract_strided_slice %366 {offsets = [0, 128], sizes = [8, 128], strides = [1, 1]} : vector<8x512xf32> to vector<8x128xf32>
    %374 = arith.negf %373 : vector<8x128xf32>
    %375 = math.exp %374 : vector<8x128xf32>
    %cst_178 = arith.constant 1.000000e+00 : f32
    %376 = vector.broadcast %cst_178 : f32 to vector<8x128xf32>
    %377 = arith.addf %376, %375 : vector<8x128xf32>
    %378 = arith.divf %376, %377 : vector<8x128xf32>
    %379 = vector.extract_strided_slice %366 {offsets = [0, 256], sizes = [8, 128], strides = [1, 1]} : vector<8x512xf32> to vector<8x128xf32>
    %380 = math.tanh %379 : vector<8x128xf32>
    %381 = vector.extract_strided_slice %366 {offsets = [0, 384], sizes = [8, 128], strides = [1, 1]} : vector<8x512xf32> to vector<8x128xf32>
    %382 = arith.negf %381 : vector<8x128xf32>
    %383 = math.exp %382 : vector<8x128xf32>
    %cst_179 = arith.constant 1.000000e+00 : f32
    %384 = vector.broadcast %cst_179 : f32 to vector<8x128xf32>
    %385 = arith.addf %384, %383 : vector<8x128xf32>
    %386 = arith.divf %384, %385 : vector<8x128xf32>
    %387 = arith.mulf %378, %363 : vector<8x128xf32>
    %388 = arith.mulf %372, %380 : vector<8x128xf32>
    %389 = arith.addf %387, %388 : vector<8x128xf32>
    %390 = math.tanh %389 : vector<8x128xf32>
    %391 = arith.mulf %386, %390 : vector<8x128xf32>
    %c0_180 = arith.constant 0 : index
    %c0_181 = arith.constant 0 : index
    %392 = vector.load %arg10[%c0_180, %c0_181] : memref<8x128xf32, #tpu.memory_space<vmem>>, vector<8x128xf32>
    tpu.vector_store %arg10[%c0_180, %c0_181], %359 {strides = array<i32>} : memref<8x128xf32, #tpu.memory_space<vmem>>, vector<8x128xf32>,
    %c0_182 = arith.constant 0 : index
    %c0_183 = arith.constant 0 : index
    %393 = vector.load %arg11[%c0_182, %c0_183] : memref<8x128xf32, #tpu.memory_space<vmem>>, vector<8x128xf32>
    tpu.vector_store %arg11[%c0_182, %c0_183], %357 {strides = array<i32>} : memref<8x128xf32, #tpu.memory_space<vmem>>, vector<8x128xf32>,
    %c0_184 = arith.constant 0 : index
    %c0_185 = arith.constant 0 : index
    %394 = vector.load %arg12[%c0_184, %c0_185] : memref<8x128xf32, #tpu.memory_space<vmem>>, vector<8x128xf32>
    tpu.vector_store %arg12[%c0_184, %c0_185], %391 {strides = array<i32>} : memref<8x128xf32, #tpu.memory_space<vmem>>, vector<8x128xf32>,
    %c0_186 = arith.constant 0 : index
    %c0_187 = arith.constant 0 : index
    %395 = vector.load %arg13[%c0_186, %c0_187] : memref<8x128xf32, #tpu.memory_space<vmem>>, vector<8x128xf32>
    tpu.vector_store %arg13[%c0_186, %c0_187], %389 {strides = array<i32>} : memref<8x128xf32, #tpu.memory_space<vmem>>, vector<8x128xf32>,
    %396 = arith.index_cast %325 : i32 to index
    %c0_188 = arith.constant 0 : index
    %397 = vector.load %arg9[%396, %c0_188] : memref<64x256xf32, #tpu.memory_space<vmem>>, vector<8x128xf32>
    tpu.vector_store %arg9[%396, %c0_188], %359 {strides = array<i32>} : memref<64x256xf32, #tpu.memory_space<vmem>>, vector<8x128xf32>,
    %398 = arith.index_cast %327 : i32 to index
    %c128_189 = arith.constant 128 : index
    %399 = vector.load %arg9[%398, %c128_189] : memref<64x256xf32, #tpu.memory_space<vmem>>, vector<8x128xf32>
    tpu.vector_store %arg9[%398, %c128_189], %391 {strides = array<i32>} : memref<64x256xf32, #tpu.memory_space<vmem>>, vector<8x128xf32>,
    %c5_i32 = arith.constant 5 : i32
    %c7_i32_190 = arith.constant 7 : i32
    %400 = arith.subi %c7_i32_190, %c5_i32 : i32
    %c8_i32_191 = arith.constant 8 : i32
    %401 = arith.muli %c5_i32, %c8_i32_191 : i32
    %402 = tpu.assume_multiple %401, 8 : i32
    %c8_i32_192 = arith.constant 8 : i32
    %403 = arith.muli %400, %c8_i32_192 : i32
    %404 = tpu.assume_multiple %403, 8 : i32
    %405 = arith.index_cast %402 : i32 to index
    %c0_193 = arith.constant 0 : index
    %406 = vector.load %arg8[%405, %c0_193] : memref<64x1024xf32, #tpu.memory_space<vmem>>, vector<8x512xf32>
    %c0_194 = arith.constant 0 : index
    %c0_195 = arith.constant 0 : index
    %407 = vector.load %arg10[%c0_194, %c0_195] : memref<8x128xf32, #tpu.memory_space<vmem>>, vector<8x128xf32>
    %c0_196 = arith.constant 0 : index
    %c0_197 = arith.constant 0 : index
    %408 = vector.load %arg11[%c0_196, %c0_197] : memref<8x128xf32, #tpu.memory_space<vmem>>, vector<8x128xf32>
    %c0_198 = arith.constant 0 : index
    %c0_199 = arith.constant 0 : index
    %409 = vector.load %arg3[%c0_198, %c0_199] : memref<128x512xf32, #tpu.memory_space<vmem>>, vector<128x512xf32>
    %cst_200 = arith.constant dense<0.000000e+00> : vector<8x512xf32>
    %410 = tpu.matmul %407, %409, %cst_200 {dimension_numbers = #tpu.dot_dimension_numbers<[1], [0], [0], [1], [0, 0, 1, 1], [], []>} : vector<8x128xf32>, vector<128x512xf32>, vector<8x512xf32> -> vector<8x512xf32>
    %411 = arith.addf %406, %410 : vector<8x512xf32>
    %412 = vector.extract_strided_slice %411 {offsets = [0, 0], sizes = [8, 128], strides = [1, 1]} : vector<8x512xf32> to vector<8x128xf32>
    %413 = arith.negf %412 : vector<8x128xf32>
    %414 = math.exp %413 : vector<8x128xf32>
    %cst_201 = arith.constant 1.000000e+00 : f32
    %415 = vector.broadcast %cst_201 : f32 to vector<8x128xf32>
    %416 = arith.addf %415, %414 : vector<8x128xf32>
    %417 = arith.divf %415, %416 : vector<8x128xf32>
    %418 = vector.extract_strided_slice %411 {offsets = [0, 128], sizes = [8, 128], strides = [1, 1]} : vector<8x512xf32> to vector<8x128xf32>
    %419 = arith.negf %418 : vector<8x128xf32>
    %420 = math.exp %419 : vector<8x128xf32>
    %cst_202 = arith.constant 1.000000e+00 : f32
    %421 = vector.broadcast %cst_202 : f32 to vector<8x128xf32>
    %422 = arith.addf %421, %420 : vector<8x128xf32>
    %423 = arith.divf %421, %422 : vector<8x128xf32>
    %424 = vector.extract_strided_slice %411 {offsets = [0, 256], sizes = [8, 128], strides = [1, 1]} : vector<8x512xf32> to vector<8x128xf32>
    %425 = math.tanh %424 : vector<8x128xf32>
    %426 = vector.extract_strided_slice %411 {offsets = [0, 384], sizes = [8, 128], strides = [1, 1]} : vector<8x512xf32> to vector<8x128xf32>
    %427 = arith.negf %426 : vector<8x128xf32>
    %428 = math.exp %427 : vector<8x128xf32>
    %cst_203 = arith.constant 1.000000e+00 : f32
    %429 = vector.broadcast %cst_203 : f32 to vector<8x128xf32>
    %430 = arith.addf %429, %428 : vector<8x128xf32>
    %431 = arith.divf %429, %430 : vector<8x128xf32>
    %432 = arith.mulf %423, %408 : vector<8x128xf32>
    %433 = arith.mulf %417, %425 : vector<8x128xf32>
    %434 = arith.addf %432, %433 : vector<8x128xf32>
    %435 = math.tanh %434 : vector<8x128xf32>
    %436 = arith.mulf %431, %435 : vector<8x128xf32>
    %437 = arith.index_cast %404 : i32 to index
    %c512_204 = arith.constant 512 : index
    %438 = vector.load %arg8[%437, %c512_204] : memref<64x1024xf32, #tpu.memory_space<vmem>>, vector<8x512xf32>
    %c0_205 = arith.constant 0 : index
    %c0_206 = arith.constant 0 : index
    %439 = vector.load %arg12[%c0_205, %c0_206] : memref<8x128xf32, #tpu.memory_space<vmem>>, vector<8x128xf32>
    %c0_207 = arith.constant 0 : index
    %c0_208 = arith.constant 0 : index
    %440 = vector.load %arg13[%c0_207, %c0_208] : memref<8x128xf32, #tpu.memory_space<vmem>>, vector<8x128xf32>
    %c0_209 = arith.constant 0 : index
    %c0_210 = arith.constant 0 : index
    %441 = vector.load %arg4[%c0_209, %c0_210] : memref<128x512xf32, #tpu.memory_space<vmem>>, vector<128x512xf32>
    %cst_211 = arith.constant dense<0.000000e+00> : vector<8x512xf32>
    %442 = tpu.matmul %439, %441, %cst_211 {dimension_numbers = #tpu.dot_dimension_numbers<[1], [0], [0], [1], [0, 0, 1, 1], [], []>} : vector<8x128xf32>, vector<128x512xf32>, vector<8x512xf32> -> vector<8x512xf32>
    %443 = arith.addf %438, %442 : vector<8x512xf32>
    %444 = vector.extract_strided_slice %443 {offsets = [0, 0], sizes = [8, 128], strides = [1, 1]} : vector<8x512xf32> to vector<8x128xf32>
    %445 = arith.negf %444 : vector<8x128xf32>
    %446 = math.exp %445 : vector<8x128xf32>
    %cst_212 = arith.constant 1.000000e+00 : f32
    %447 = vector.broadcast %cst_212 : f32 to vector<8x128xf32>
    %448 = arith.addf %447, %446 : vector<8x128xf32>
    %449 = arith.divf %447, %448 : vector<8x128xf32>
    %450 = vector.extract_strided_slice %443 {offsets = [0, 128], sizes = [8, 128], strides = [1, 1]} : vector<8x512xf32> to vector<8x128xf32>
    %451 = arith.negf %450 : vector<8x128xf32>
    %452 = math.exp %451 : vector<8x128xf32>
    %cst_213 = arith.constant 1.000000e+00 : f32
    %453 = vector.broadcast %cst_213 : f32 to vector<8x128xf32>
    %454 = arith.addf %453, %452 : vector<8x128xf32>
    %455 = arith.divf %453, %454 : vector<8x128xf32>
    %456 = vector.extract_strided_slice %443 {offsets = [0, 256], sizes = [8, 128], strides = [1, 1]} : vector<8x512xf32> to vector<8x128xf32>
    %457 = math.tanh %456 : vector<8x128xf32>
    %458 = vector.extract_strided_slice %443 {offsets = [0, 384], sizes = [8, 128], strides = [1, 1]} : vector<8x512xf32> to vector<8x128xf32>
    %459 = arith.negf %458 : vector<8x128xf32>
    %460 = math.exp %459 : vector<8x128xf32>
    %cst_214 = arith.constant 1.000000e+00 : f32
    %461 = vector.broadcast %cst_214 : f32 to vector<8x128xf32>
    %462 = arith.addf %461, %460 : vector<8x128xf32>
    %463 = arith.divf %461, %462 : vector<8x128xf32>
    %464 = arith.mulf %455, %440 : vector<8x128xf32>
    %465 = arith.mulf %449, %457 : vector<8x128xf32>
    %466 = arith.addf %464, %465 : vector<8x128xf32>
    %467 = math.tanh %466 : vector<8x128xf32>
    %468 = arith.mulf %463, %467 : vector<8x128xf32>
    %c0_215 = arith.constant 0 : index
    %c0_216 = arith.constant 0 : index
    %469 = vector.load %arg10[%c0_215, %c0_216] : memref<8x128xf32, #tpu.memory_space<vmem>>, vector<8x128xf32>
    tpu.vector_store %arg10[%c0_215, %c0_216], %436 {strides = array<i32>} : memref<8x128xf32, #tpu.memory_space<vmem>>, vector<8x128xf32>,
    %c0_217 = arith.constant 0 : index
    %c0_218 = arith.constant 0 : index
    %470 = vector.load %arg11[%c0_217, %c0_218] : memref<8x128xf32, #tpu.memory_space<vmem>>, vector<8x128xf32>
    tpu.vector_store %arg11[%c0_217, %c0_218], %434 {strides = array<i32>} : memref<8x128xf32, #tpu.memory_space<vmem>>, vector<8x128xf32>,
    %c0_219 = arith.constant 0 : index
    %c0_220 = arith.constant 0 : index
    %471 = vector.load %arg12[%c0_219, %c0_220] : memref<8x128xf32, #tpu.memory_space<vmem>>, vector<8x128xf32>
    tpu.vector_store %arg12[%c0_219, %c0_220], %468 {strides = array<i32>} : memref<8x128xf32, #tpu.memory_space<vmem>>, vector<8x128xf32>,
    %c0_221 = arith.constant 0 : index
    %c0_222 = arith.constant 0 : index
    %472 = vector.load %arg13[%c0_221, %c0_222] : memref<8x128xf32, #tpu.memory_space<vmem>>, vector<8x128xf32>
    tpu.vector_store %arg13[%c0_221, %c0_222], %466 {strides = array<i32>} : memref<8x128xf32, #tpu.memory_space<vmem>>, vector<8x128xf32>,
    %473 = arith.index_cast %402 : i32 to index
    %c0_223 = arith.constant 0 : index
    %474 = vector.load %arg9[%473, %c0_223] : memref<64x256xf32, #tpu.memory_space<vmem>>, vector<8x128xf32>
    tpu.vector_store %arg9[%473, %c0_223], %436 {strides = array<i32>} : memref<64x256xf32, #tpu.memory_space<vmem>>, vector<8x128xf32>,
    %475 = arith.index_cast %404 : i32 to index
    %c128_224 = arith.constant 128 : index
    %476 = vector.load %arg9[%475, %c128_224] : memref<64x256xf32, #tpu.memory_space<vmem>>, vector<8x128xf32>
    tpu.vector_store %arg9[%475, %c128_224], %468 {strides = array<i32>} : memref<64x256xf32, #tpu.memory_space<vmem>>, vector<8x128xf32>,
    %c6_i32 = arith.constant 6 : i32
    %c7_i32_225 = arith.constant 7 : i32
    %477 = arith.subi %c7_i32_225, %c6_i32 : i32
    %c8_i32_226 = arith.constant 8 : i32
    %478 = arith.muli %c6_i32, %c8_i32_226 : i32
    %479 = tpu.assume_multiple %478, 8 : i32
    %c8_i32_227 = arith.constant 8 : i32
    %480 = arith.muli %477, %c8_i32_227 : i32
    %481 = tpu.assume_multiple %480, 8 : i32
    %482 = arith.index_cast %479 : i32 to index
    %c0_228 = arith.constant 0 : index
    %483 = vector.load %arg8[%482, %c0_228] : memref<64x1024xf32, #tpu.memory_space<vmem>>, vector<8x512xf32>
    %c0_229 = arith.constant 0 : index
    %c0_230 = arith.constant 0 : index
    %484 = vector.load %arg10[%c0_229, %c0_230] : memref<8x128xf32, #tpu.memory_space<vmem>>, vector<8x128xf32>
    %c0_231 = arith.constant 0 : index
    %c0_232 = arith.constant 0 : index
    %485 = vector.load %arg11[%c0_231, %c0_232] : memref<8x128xf32, #tpu.memory_space<vmem>>, vector<8x128xf32>
    %c0_233 = arith.constant 0 : index
    %c0_234 = arith.constant 0 : index
    %486 = vector.load %arg3[%c0_233, %c0_234] : memref<128x512xf32, #tpu.memory_space<vmem>>, vector<128x512xf32>
    %cst_235 = arith.constant dense<0.000000e+00> : vector<8x512xf32>
    %487 = tpu.matmul %484, %486, %cst_235 {dimension_numbers = #tpu.dot_dimension_numbers<[1], [0], [0], [1], [0, 0, 1, 1], [], []>} : vector<8x128xf32>, vector<128x512xf32>, vector<8x512xf32> -> vector<8x512xf32>
    %488 = arith.addf %483, %487 : vector<8x512xf32>
    %489 = vector.extract_strided_slice %488 {offsets = [0, 0], sizes = [8, 128], strides = [1, 1]} : vector<8x512xf32> to vector<8x128xf32>
    %490 = arith.negf %489 : vector<8x128xf32>
    %491 = math.exp %490 : vector<8x128xf32>
    %cst_236 = arith.constant 1.000000e+00 : f32
    %492 = vector.broadcast %cst_236 : f32 to vector<8x128xf32>
    %493 = arith.addf %492, %491 : vector<8x128xf32>
    %494 = arith.divf %492, %493 : vector<8x128xf32>
    %495 = vector.extract_strided_slice %488 {offsets = [0, 128], sizes = [8, 128], strides = [1, 1]} : vector<8x512xf32> to vector<8x128xf32>
    %496 = arith.negf %495 : vector<8x128xf32>
    %497 = math.exp %496 : vector<8x128xf32>
    %cst_237 = arith.constant 1.000000e+00 : f32
    %498 = vector.broadcast %cst_237 : f32 to vector<8x128xf32>
    %499 = arith.addf %498, %497 : vector<8x128xf32>
    %500 = arith.divf %498, %499 : vector<8x128xf32>
    %501 = vector.extract_strided_slice %488 {offsets = [0, 256], sizes = [8, 128], strides = [1, 1]} : vector<8x512xf32> to vector<8x128xf32>
    %502 = math.tanh %501 : vector<8x128xf32>
    %503 = vector.extract_strided_slice %488 {offsets = [0, 384], sizes = [8, 128], strides = [1, 1]} : vector<8x512xf32> to vector<8x128xf32>
    %504 = arith.negf %503 : vector<8x128xf32>
    %505 = math.exp %504 : vector<8x128xf32>
    %cst_238 = arith.constant 1.000000e+00 : f32
    %506 = vector.broadcast %cst_238 : f32 to vector<8x128xf32>
    %507 = arith.addf %506, %505 : vector<8x128xf32>
    %508 = arith.divf %506, %507 : vector<8x128xf32>
    %509 = arith.mulf %500, %485 : vector<8x128xf32>
    %510 = arith.mulf %494, %502 : vector<8x128xf32>
    %511 = arith.addf %509, %510 : vector<8x128xf32>
    %512 = math.tanh %511 : vector<8x128xf32>
    %513 = arith.mulf %508, %512 : vector<8x128xf32>
    %514 = arith.index_cast %481 : i32 to index
    %c512_239 = arith.constant 512 : index
    %515 = vector.load %arg8[%514, %c512_239] : memref<64x1024xf32, #tpu.memory_space<vmem>>, vector<8x512xf32>
    %c0_240 = arith.constant 0 : index
    %c0_241 = arith.constant 0 : index
    %516 = vector.load %arg12[%c0_240, %c0_241] : memref<8x128xf32, #tpu.memory_space<vmem>>, vector<8x128xf32>
    %c0_242 = arith.constant 0 : index
    %c0_243 = arith.constant 0 : index
    %517 = vector.load %arg13[%c0_242, %c0_243] : memref<8x128xf32, #tpu.memory_space<vmem>>, vector<8x128xf32>
    %c0_244 = arith.constant 0 : index
    %c0_245 = arith.constant 0 : index
    %518 = vector.load %arg4[%c0_244, %c0_245] : memref<128x512xf32, #tpu.memory_space<vmem>>, vector<128x512xf32>
    %cst_246 = arith.constant dense<0.000000e+00> : vector<8x512xf32>
    %519 = tpu.matmul %516, %518, %cst_246 {dimension_numbers = #tpu.dot_dimension_numbers<[1], [0], [0], [1], [0, 0, 1, 1], [], []>} : vector<8x128xf32>, vector<128x512xf32>, vector<8x512xf32> -> vector<8x512xf32>
    %520 = arith.addf %515, %519 : vector<8x512xf32>
    %521 = vector.extract_strided_slice %520 {offsets = [0, 0], sizes = [8, 128], strides = [1, 1]} : vector<8x512xf32> to vector<8x128xf32>
    %522 = arith.negf %521 : vector<8x128xf32>
    %523 = math.exp %522 : vector<8x128xf32>
    %cst_247 = arith.constant 1.000000e+00 : f32
    %524 = vector.broadcast %cst_247 : f32 to vector<8x128xf32>
    %525 = arith.addf %524, %523 : vector<8x128xf32>
    %526 = arith.divf %524, %525 : vector<8x128xf32>
    %527 = vector.extract_strided_slice %520 {offsets = [0, 128], sizes = [8, 128], strides = [1, 1]} : vector<8x512xf32> to vector<8x128xf32>
    %528 = arith.negf %527 : vector<8x128xf32>
    %529 = math.exp %528 : vector<8x128xf32>
    %cst_248 = arith.constant 1.000000e+00 : f32
    %530 = vector.broadcast %cst_248 : f32 to vector<8x128xf32>
    %531 = arith.addf %530, %529 : vector<8x128xf32>
    %532 = arith.divf %530, %531 : vector<8x128xf32>
    %533 = vector.extract_strided_slice %520 {offsets = [0, 256], sizes = [8, 128], strides = [1, 1]} : vector<8x512xf32> to vector<8x128xf32>
    %534 = math.tanh %533 : vector<8x128xf32>
    %535 = vector.extract_strided_slice %520 {offsets = [0, 384], sizes = [8, 128], strides = [1, 1]} : vector<8x512xf32> to vector<8x128xf32>
    %536 = arith.negf %535 : vector<8x128xf32>
    %537 = math.exp %536 : vector<8x128xf32>
    %cst_249 = arith.constant 1.000000e+00 : f32
    %538 = vector.broadcast %cst_249 : f32 to vector<8x128xf32>
    %539 = arith.addf %538, %537 : vector<8x128xf32>
    %540 = arith.divf %538, %539 : vector<8x128xf32>
    %541 = arith.mulf %532, %517 : vector<8x128xf32>
    %542 = arith.mulf %526, %534 : vector<8x128xf32>
    %543 = arith.addf %541, %542 : vector<8x128xf32>
    %544 = math.tanh %543 : vector<8x128xf32>
    %545 = arith.mulf %540, %544 : vector<8x128xf32>
    %c0_250 = arith.constant 0 : index
    %c0_251 = arith.constant 0 : index
    %546 = vector.load %arg10[%c0_250, %c0_251] : memref<8x128xf32, #tpu.memory_space<vmem>>, vector<8x128xf32>
    tpu.vector_store %arg10[%c0_250, %c0_251], %513 {strides = array<i32>} : memref<8x128xf32, #tpu.memory_space<vmem>>, vector<8x128xf32>,
    %c0_252 = arith.constant 0 : index
    %c0_253 = arith.constant 0 : index
    %547 = vector.load %arg11[%c0_252, %c0_253] : memref<8x128xf32, #tpu.memory_space<vmem>>, vector<8x128xf32>
    tpu.vector_store %arg11[%c0_252, %c0_253], %511 {strides = array<i32>} : memref<8x128xf32, #tpu.memory_space<vmem>>, vector<8x128xf32>,
    %c0_254 = arith.constant 0 : index
    %c0_255 = arith.constant 0 : index
    %548 = vector.load %arg12[%c0_254, %c0_255] : memref<8x128xf32, #tpu.memory_space<vmem>>, vector<8x128xf32>
    tpu.vector_store %arg12[%c0_254, %c0_255], %545 {strides = array<i32>} : memref<8x128xf32, #tpu.memory_space<vmem>>, vector<8x128xf32>,
    %c0_256 = arith.constant 0 : index
    %c0_257 = arith.constant 0 : index
    %549 = vector.load %arg13[%c0_256, %c0_257] : memref<8x128xf32, #tpu.memory_space<vmem>>, vector<8x128xf32>
    tpu.vector_store %arg13[%c0_256, %c0_257], %543 {strides = array<i32>} : memref<8x128xf32, #tpu.memory_space<vmem>>, vector<8x128xf32>,
    %550 = arith.index_cast %479 : i32 to index
    %c0_258 = arith.constant 0 : index
    %551 = vector.load %arg9[%550, %c0_258] : memref<64x256xf32, #tpu.memory_space<vmem>>, vector<8x128xf32>
    tpu.vector_store %arg9[%550, %c0_258], %513 {strides = array<i32>} : memref<64x256xf32, #tpu.memory_space<vmem>>, vector<8x128xf32>,
    %552 = arith.index_cast %481 : i32 to index
    %c128_259 = arith.constant 128 : index
    %553 = vector.load %arg9[%552, %c128_259] : memref<64x256xf32, #tpu.memory_space<vmem>>, vector<8x128xf32>
    tpu.vector_store %arg9[%552, %c128_259], %545 {strides = array<i32>} : memref<64x256xf32, #tpu.memory_space<vmem>>, vector<8x128xf32>,
    %c7_i32_260 = arith.constant 7 : i32
    %c7_i32_261 = arith.constant 7 : i32
    %554 = arith.subi %c7_i32_261, %c7_i32_260 : i32
    %c8_i32_262 = arith.constant 8 : i32
    %555 = arith.muli %c7_i32_260, %c8_i32_262 : i32
    %556 = tpu.assume_multiple %555, 8 : i32
    %c8_i32_263 = arith.constant 8 : i32
    %557 = arith.muli %554, %c8_i32_263 : i32
    %558 = tpu.assume_multiple %557, 8 : i32
    %559 = arith.index_cast %556 : i32 to index
    %c0_264 = arith.constant 0 : index
    %560 = vector.load %arg8[%559, %c0_264] : memref<64x1024xf32, #tpu.memory_space<vmem>>, vector<8x512xf32>
    %c0_265 = arith.constant 0 : index
    %c0_266 = arith.constant 0 : index
    %561 = vector.load %arg10[%c0_265, %c0_266] : memref<8x128xf32, #tpu.memory_space<vmem>>, vector<8x128xf32>
    %c0_267 = arith.constant 0 : index
    %c0_268 = arith.constant 0 : index
    %562 = vector.load %arg11[%c0_267, %c0_268] : memref<8x128xf32, #tpu.memory_space<vmem>>, vector<8x128xf32>
    %c0_269 = arith.constant 0 : index
    %c0_270 = arith.constant 0 : index
    %563 = vector.load %arg3[%c0_269, %c0_270] : memref<128x512xf32, #tpu.memory_space<vmem>>, vector<128x512xf32>
    %cst_271 = arith.constant dense<0.000000e+00> : vector<8x512xf32>
    %564 = tpu.matmul %561, %563, %cst_271 {dimension_numbers = #tpu.dot_dimension_numbers<[1], [0], [0], [1], [0, 0, 1, 1], [], []>} : vector<8x128xf32>, vector<128x512xf32>, vector<8x512xf32> -> vector<8x512xf32>
    %565 = arith.addf %560, %564 : vector<8x512xf32>
    %566 = vector.extract_strided_slice %565 {offsets = [0, 0], sizes = [8, 128], strides = [1, 1]} : vector<8x512xf32> to vector<8x128xf32>
    %567 = arith.negf %566 : vector<8x128xf32>
    %568 = math.exp %567 : vector<8x128xf32>
    %cst_272 = arith.constant 1.000000e+00 : f32
    %569 = vector.broadcast %cst_272 : f32 to vector<8x128xf32>
    %570 = arith.addf %569, %568 : vector<8x128xf32>
    %571 = arith.divf %569, %570 : vector<8x128xf32>
    %572 = vector.extract_strided_slice %565 {offsets = [0, 128], sizes = [8, 128], strides = [1, 1]} : vector<8x512xf32> to vector<8x128xf32>
    %573 = arith.negf %572 : vector<8x128xf32>
    %574 = math.exp %573 : vector<8x128xf32>
    %cst_273 = arith.constant 1.000000e+00 : f32
    %575 = vector.broadcast %cst_273 : f32 to vector<8x128xf32>
    %576 = arith.addf %575, %574 : vector<8x128xf32>
    %577 = arith.divf %575, %576 : vector<8x128xf32>
    %578 = vector.extract_strided_slice %565 {offsets = [0, 256], sizes = [8, 128], strides = [1, 1]} : vector<8x512xf32> to vector<8x128xf32>
    %579 = math.tanh %578 : vector<8x128xf32>
    %580 = vector.extract_strided_slice %565 {offsets = [0, 384], sizes = [8, 128], strides = [1, 1]} : vector<8x512xf32> to vector<8x128xf32>
    %581 = arith.negf %580 : vector<8x128xf32>
    %582 = math.exp %581 : vector<8x128xf32>
    %cst_274 = arith.constant 1.000000e+00 : f32
    %583 = vector.broadcast %cst_274 : f32 to vector<8x128xf32>
    %584 = arith.addf %583, %582 : vector<8x128xf32>
    %585 = arith.divf %583, %584 : vector<8x128xf32>
    %586 = arith.mulf %577, %562 : vector<8x128xf32>
    %587 = arith.mulf %571, %579 : vector<8x128xf32>
    %588 = arith.addf %586, %587 : vector<8x128xf32>
    %589 = math.tanh %588 : vector<8x128xf32>
    %590 = arith.mulf %585, %589 : vector<8x128xf32>
    %591 = arith.index_cast %558 : i32 to index
    %c512_275 = arith.constant 512 : index
    %592 = vector.load %arg8[%591, %c512_275] : memref<64x1024xf32, #tpu.memory_space<vmem>>, vector<8x512xf32>
    %c0_276 = arith.constant 0 : index
    %c0_277 = arith.constant 0 : index
    %593 = vector.load %arg12[%c0_276, %c0_277] : memref<8x128xf32, #tpu.memory_space<vmem>>, vector<8x128xf32>
    %c0_278 = arith.constant 0 : index
    %c0_279 = arith.constant 0 : index
    %594 = vector.load %arg13[%c0_278, %c0_279] : memref<8x128xf32, #tpu.memory_space<vmem>>, vector<8x128xf32>
    %c0_280 = arith.constant 0 : index
    %c0_281 = arith.constant 0 : index
    %595 = vector.load %arg4[%c0_280, %c0_281] : memref<128x512xf32, #tpu.memory_space<vmem>>, vector<128x512xf32>
    %cst_282 = arith.constant dense<0.000000e+00> : vector<8x512xf32>
    %596 = tpu.matmul %593, %595, %cst_282 {dimension_numbers = #tpu.dot_dimension_numbers<[1], [0], [0], [1], [0, 0, 1, 1], [], []>} : vector<8x128xf32>, vector<128x512xf32>, vector<8x512xf32> -> vector<8x512xf32>
    %597 = arith.addf %592, %596 : vector<8x512xf32>
    %598 = vector.extract_strided_slice %597 {offsets = [0, 0], sizes = [8, 128], strides = [1, 1]} : vector<8x512xf32> to vector<8x128xf32>
    %599 = arith.negf %598 : vector<8x128xf32>
    %600 = math.exp %599 : vector<8x128xf32>
    %cst_283 = arith.constant 1.000000e+00 : f32
    %601 = vector.broadcast %cst_283 : f32 to vector<8x128xf32>
    %602 = arith.addf %601, %600 : vector<8x128xf32>
    %603 = arith.divf %601, %602 : vector<8x128xf32>
    %604 = vector.extract_strided_slice %597 {offsets = [0, 128], sizes = [8, 128], strides = [1, 1]} : vector<8x512xf32> to vector<8x128xf32>
    %605 = arith.negf %604 : vector<8x128xf32>
    %606 = math.exp %605 : vector<8x128xf32>
    %cst_284 = arith.constant 1.000000e+00 : f32
    %607 = vector.broadcast %cst_284 : f32 to vector<8x128xf32>
    %608 = arith.addf %607, %606 : vector<8x128xf32>
    %609 = arith.divf %607, %608 : vector<8x128xf32>
    %610 = vector.extract_strided_slice %597 {offsets = [0, 256], sizes = [8, 128], strides = [1, 1]} : vector<8x512xf32> to vector<8x128xf32>
    %611 = math.tanh %610 : vector<8x128xf32>
    %612 = vector.extract_strided_slice %597 {offsets = [0, 384], sizes = [8, 128], strides = [1, 1]} : vector<8x512xf32> to vector<8x128xf32>
    %613 = arith.negf %612 : vector<8x128xf32>
    %614 = math.exp %613 : vector<8x128xf32>
    %cst_285 = arith.constant 1.000000e+00 : f32
    %615 = vector.broadcast %cst_285 : f32 to vector<8x128xf32>
    %616 = arith.addf %615, %614 : vector<8x128xf32>
    %617 = arith.divf %615, %616 : vector<8x128xf32>
    %618 = arith.mulf %609, %594 : vector<8x128xf32>
    %619 = arith.mulf %603, %611 : vector<8x128xf32>
    %620 = arith.addf %618, %619 : vector<8x128xf32>
    %621 = math.tanh %620 : vector<8x128xf32>
    %622 = arith.mulf %617, %621 : vector<8x128xf32>
    %c0_286 = arith.constant 0 : index
    %c0_287 = arith.constant 0 : index
    %623 = vector.load %arg10[%c0_286, %c0_287] : memref<8x128xf32, #tpu.memory_space<vmem>>, vector<8x128xf32>
    tpu.vector_store %arg10[%c0_286, %c0_287], %590 {strides = array<i32>} : memref<8x128xf32, #tpu.memory_space<vmem>>, vector<8x128xf32>,
    %c0_288 = arith.constant 0 : index
    %c0_289 = arith.constant 0 : index
    %624 = vector.load %arg11[%c0_288, %c0_289] : memref<8x128xf32, #tpu.memory_space<vmem>>, vector<8x128xf32>
    tpu.vector_store %arg11[%c0_288, %c0_289], %588 {strides = array<i32>} : memref<8x128xf32, #tpu.memory_space<vmem>>, vector<8x128xf32>,
    %c0_290 = arith.constant 0 : index
    %c0_291 = arith.constant 0 : index
    %625 = vector.load %arg12[%c0_290, %c0_291] : memref<8x128xf32, #tpu.memory_space<vmem>>, vector<8x128xf32>
    tpu.vector_store %arg12[%c0_290, %c0_291], %622 {strides = array<i32>} : memref<8x128xf32, #tpu.memory_space<vmem>>, vector<8x128xf32>,
    %c0_292 = arith.constant 0 : index
    %c0_293 = arith.constant 0 : index
    %626 = vector.load %arg13[%c0_292, %c0_293] : memref<8x128xf32, #tpu.memory_space<vmem>>, vector<8x128xf32>
    tpu.vector_store %arg13[%c0_292, %c0_293], %620 {strides = array<i32>} : memref<8x128xf32, #tpu.memory_space<vmem>>, vector<8x128xf32>,
    %627 = arith.index_cast %556 : i32 to index
    %c0_294 = arith.constant 0 : index
    %628 = vector.load %arg9[%627, %c0_294] : memref<64x256xf32, #tpu.memory_space<vmem>>, vector<8x128xf32>
    tpu.vector_store %arg9[%627, %c0_294], %590 {strides = array<i32>} : memref<64x256xf32, #tpu.memory_space<vmem>>, vector<8x128xf32>,
    %629 = arith.index_cast %558 : i32 to index
    %c128_295 = arith.constant 128 : index
    %630 = vector.load %arg9[%629, %c128_295] : memref<64x256xf32, #tpu.memory_space<vmem>>, vector<8x128xf32>
    tpu.vector_store %arg9[%629, %c128_295], %622 {strides = array<i32>} : memref<64x256xf32, #tpu.memory_space<vmem>>, vector<8x128xf32>,
    %c8_i32_296 = arith.constant 8 : i32
    %c0_297 = arith.constant 0 : index
    %c0_298 = arith.constant 0 : index
    %631 = vector.load %arg9[%c0_297, %c0_298] : memref<64x256xf32, #tpu.memory_space<vmem>>, vector<64x256xf32>
    %632 = arith.truncf %631 : vector<64x256xf32> to vector<64x256xbf16>
    %c0_299 = arith.constant 0 : index
    %c0_300 = arith.constant 0 : index
    %633 = vector.load %arg5[%c0_299, %c0_300] : memref<256x128xbf16, #tpu.memory_space<vmem>>, vector<256x128xbf16>
    %cst_301 = arith.constant dense<0.000000e+00> : vector<64x128xf32>
    %634 = tpu.matmul %632, %633, %cst_301 {dimension_numbers = #tpu.dot_dimension_numbers<[1], [0], [0], [1], [0, 0, 1, 1], [], []>} : vector<64x256xbf16>, vector<256x128xbf16>, vector<64x128xf32> -> vector<64x128xf32>
    %c0_302 = arith.constant 0 : index
    %c0_303 = arith.constant 0 : index
    %635 = vector.load %arg6[%c0_302, %c0_303] : memref<1x128xf32, #tpu.memory_space<vmem>>, vector<1x128xf32>
    %636 = vector.broadcast %635 : vector<1x128xf32> to vector<64x128xf32>
    %637 = arith.addf %634, %636 : vector<64x128xf32>
    %c0_304 = arith.constant 0 : index
    %c0_305 = arith.constant 0 : index
    %638 = vector.load %arg7[%c0_304, %c0_305] : memref<64x128xf32, #tpu.memory_space<vmem>>, vector<64x128xf32>
    tpu.vector_store %arg7[%c0_304, %c0_305], %637 {strides = array<i32>} : memref<64x128xf32, #tpu.memory_space<vmem>>, vector<64x128xf32>,
    return
  }
}

</mosaic_0001>

<bundles_post_ra>
// kernel: tpu_custom_call.1
= control target key start
LH: loop header
LB: loop body
LE: loop exit
PB: predicated region body
PF: predicated region fallthrough
CT: control target
= control target key end

     0   :  { %12 = vsyncpa [#allocation9], 0  ;;  %s8315_s0 = inlined_call_operand.hbm [shape: bf16[64,128], index: 0, kind: input, shape index: {}]   ;;  %s8316_s1 = inlined_call_operand.hbm [shape: bf16[128,1024], index: 1, kind: input, shape index: {}]   ;;  %s8317_s2 = inlined_call_operand.hbm [shape: f32[1,1024], index: 2, kind: input, shape index: {}]   ;;  %s8318_s3 = inlined_call_operand.hbm [shape: f32[128,512], index: 3, kind: input, shape index: {}]   ;;  %s8319_s4 = inlined_call_operand.hbm [shape: f32[128,512], index: 4, kind: input, shape index: {}]   ;;  %s8320_s5 = inlined_call_operand.hbm [shape: bf16[256,128], index: 5, kind: input, shape index: {}]   ;;  %s8321_s6 = inlined_call_operand.vmem [shape: f32[1,128], index: 6, kind: input, shape index: {}]   ;;  %s8322_s7 = inlined_call_operand.hbm [shape: f32[64,128], index: 7, kind: output, shape index: {}]  }
   0x1   :  { %13 = vsyncpa [#allocation12], 0 }
   0x2   :  { %14 = vsyncpa [#allocation15], 0 }
   0x3   :  { %15 = vsyncpa [#allocation18], 0 }
   0x4   :  { %16 = vsyncpa [#allocation10], 0  ;;  %s6780_s24 = smov [#allocation11]   ;;  %s6616_s28 = scalar_lea.hbm %s8316_s1, 8192 }
   0x5   :  { %s34_s25 = sshll.u32 %s6780_s24, 4  ;;  %p6617_p0 = scmp.ne.s32.totalorder %s8316_s1, %s6616_s28  ;;  %s35_s25 = int_to_ptr.vmem [resolvable:$true] %s34_s25 }
   0x6   :  { %p6620_p1 = scmp.lt.u32.totalorder %s6616_s28, %s8316_s1 }
   0x8   :  { %p6622_p2 = pnand %p6620_p1, %p6617_p0 }
   0xa   :  { %6625 = shalt.err (!%p6622_p2)
}
   0xb   :  { %s6626_s10 = scalar_lea.vmem %s35_s25, 8192  ;;  %p6631_p4 = scmp.lt.s32.totalorder %s35_s25, %s35_s25 }
   0xc   :  { %p6627_p3 = scmp.ne.s32.totalorder %s35_s25, %s6626_s10  ;;  %p6632_p5 = scmp.lt.s32.totalorder %s6626_s10, %s6626_s10 }
   0xe   :  { %p6633_p6 = por %p6632_p5, %p6631_p4 }
  0x10   :  { %p6634_p7 = pnand %p6633_p6, %p6627_p3 }
  0x12   :  { %6637 = shalt.err (!%p6634_p7)
}
  0x13   :  { %s6781_s11 = smov 512   ;;  %s6782_s12 = smov 32  }
  0x14   :  { %40 = dma.hbm_to_vmem [thread:$0]  %s8316_s1, 8192, %s35_s25, [#allocation12], %s6781_s11, %s6781_s11, %s6782_s12  }
  0x15   :  { %s6783_s15 = smov [#allocation14]   ;;  %s6784_s17 = smov [#allocation8]  }
  0x16   :  { %s56_s16 = sshll.u32 %s6783_s15, 4  ;;  %s22_s18 = sshll.u32 %s6784_s17, 4  ;;  %s57_s16 = int_to_ptr.vmem [resolvable:$true] %s56_s16  ;;  %s23_s18 = int_to_ptr.vmem [resolvable:$true] %s22_s18 }
  0x17   :  { %s6638_s21 = scalar_lea.hbm %s8318_s3, 8192 }
  0x18   :  { %p6639_p8 = scmp.ne.s32.totalorder %s8318_s3, %s6638_s21  ;;  %p6642_p9 = scmp.lt.u32.totalorder %s6638_s21, %s8318_s3 }
  0x1a   :  { %p6644_p10 = pnand %p6642_p9, %p6639_p8 }
  0x1c   :  { %6647 = shalt.err (!%p6644_p10)
}
  0x1d   :  { %s6648_s1 = scalar_lea.vmem %s57_s16, 8192  ;;  %p6653_p12 = scmp.lt.s32.totalorder %s57_s16, %s57_s16 }
  0x1e   :  { %p6649_p11 = scmp.ne.s32.totalorder %s57_s16, %s6648_s1  ;;  %p6654_p13 = scmp.lt.s32.totalorder %s6648_s1, %s6648_s1 }
  0x20   :  { %p6655_p0 = por %p6654_p13, %p6653_p12 }
  0x22   :  { %p6656_p1 = pnand %p6655_p0, %p6649_p11 }
  0x24   :  { %6659 = shalt.err (!%p6656_p1)
}
  0x25   :  { %62 = dma.hbm_to_vmem [thread:$0]  %s8318_s3, 8192, %s57_s16, [#allocation15], %s6781_s11, %s6781_s11, %s6782_s12  }
  0x26   :  { %s6660_s30 = scalar_lea.hbm %s8315_s0, 512 }
  0x27   :  { %p6661_p2 = scmp.ne.s32.totalorder %s8315_s0, %s6660_s30  ;;  %p6664_p3 = scmp.lt.u32.totalorder %s6660_s30, %s8315_s0 }
  0x29   :  { %p6666_p4 = pnand %p6664_p3, %p6661_p2 }
  0x2b   :  { %6669 = shalt.err (!%p6666_p4)
}
  0x2c   :  { %s6670_s14 = scalar_lea.vmem %s23_s18, 512  ;;  %p6675_p6 = scmp.lt.s32.totalorder %s23_s18, %s23_s18 }
  0x2d   :  { %p6671_p5 = scmp.ne.s32.totalorder %s23_s18, %s6670_s14  ;;  %p6676_p7 = scmp.lt.s32.totalorder %s6670_s14, %s6670_s14 }
  0x2f   :  { %p6677_p8 = por %p6676_p7, %p6675_p6 }
  0x31   :  { %p6678_p9 = pnand %p6677_p8, %p6671_p5 }
  0x33   :  { %6681 = shalt.err (!%p6678_p9)
}
  0x34   :  { %s6785_s3 = smov 64   ;;  %s6786_s15 = smov 4  }
  0x35   :  { %28 = dma.hbm_to_vmem [thread:$0]  %s8315_s0, 512, %s23_s18, [#allocation9], %s6785_s3, %s6785_s3, %s6786_s15  }
  0x36   :  { %s6787_s19 = smov [#allocation13]   ;;  %s6788_s21 = smov [#allocation16]  }
  0x37   :  { %s47_s20 = sshll.u32 %s6787_s19, 4  ;;  %s68_s22 = sshll.u32 %s6788_s21, 4  ;;  %s48_s20 = int_to_ptr.vmem [resolvable:$true] %s47_s20  ;;  %s69_s22 = int_to_ptr.vmem [resolvable:$true] %s68_s22 }
  0x38   :  { %s6682_s26 = scalar_lea.hbm %s8317_s2, 128 }
  0x39   :  { %p6683_p10 = scmp.ne.s32.totalorder %s8317_s2, %s6682_s26  ;;  %p6686_p11 = scmp.lt.u32.totalorder %s6682_s26, %s8317_s2 }
  0x3b   :  { %p6688_p12 = pnand %p6686_p11, %p6683_p10 }
  0x3d   :  { %6691 = shalt.err (!%p6688_p12)
}
  0x3e   :  { %s6692_s0 = scalar_lea.vmem %s48_s20, 128  ;;  %p6697_p0 = scmp.lt.s32.totalorder %s48_s20, %s48_s20 }
  0x3f   :  { %p6693_p13 = scmp.ne.s32.totalorder %s48_s20, %s6692_s0  ;;  %p6698_p1 = scmp.lt.s32.totalorder %s6692_s0, %s6692_s0 }
  0x41   :  { %p6699_p2 = por %p6698_p1, %p6697_p0 }
  0x43   :  { %p6700_p3 = pnand %p6699_p2, %p6693_p13 }
  0x45   :  { %6703 = shalt.err (!%p6700_p3)
}
  0x46   :  { %50 = dma.hbm_to_vmem [thread:$0]  %s8317_s2, 128, %s48_s20, [#allocation12]  }
  0x47   :  { %s6704_s9 = scalar_lea.hbm %s8319_s4, 8192 }
  0x48   :  { %p6705_p4 = scmp.ne.s32.totalorder %s8319_s4, %s6704_s9  ;;  %p6708_p5 = scmp.lt.u32.totalorder %s6704_s9, %s8319_s4 }
  0x4a   :  { %p6710_p6 = pnand %p6708_p5, %p6705_p4 }
  0x4c   :  { %6713 = shalt.err (!%p6710_p6)
}
  0x4d   :  { %s6714_s17 = scalar_lea.vmem %s69_s22, 8192  ;;  %p6719_p8 = scmp.lt.s32.totalorder %s69_s22, %s69_s22 }
  0x4e   :  { %p6715_p7 = scmp.ne.s32.totalorder %s69_s22, %s6714_s17  ;;  %p6720_p9 = scmp.lt.s32.totalorder %s6714_s17, %s6714_s17 }
  0x50   :  { %p6721_p10 = por %p6720_p9, %p6719_p8 }
  0x52   :  { %p6722_p11 = pnand %p6721_p10, %p6715_p7 }
  0x54   :  { %6725 = shalt.err (!%p6722_p11)
}
  0x55   :  { %74 = dma.hbm_to_vmem [thread:$0]  %s8319_s4, 8192, %s69_s22, [#allocation15], %s6781_s11, %s6781_s11, %s6782_s12  }
  0x56   :  { %s6789_s20 = smov [#allocation17]   ;;  %s6726_s26 = scalar_lea.hbm %s8320_s5, 2048 }
  0x57   :  { %s80_s21 = sshll.u32 %s6789_s20, 4  ;;  %p6727_p12 = scmp.ne.s32.totalorder %s8320_s5, %s6726_s26  ;;  %s81_s21 = int_to_ptr.vmem [resolvable:$true] %s80_s21 }
  0x58   :  { %p6730_p13 = scmp.lt.u32.totalorder %s6726_s26, %s8320_s5 }
  0x5a   :  { %p6732_p0 = pnand %p6730_p13, %p6727_p12 }
  0x5c   :  { %6735 = shalt.err (!%p6732_p0)
}
  0x5d   :  { %s6736_s0 = scalar_lea.vmem %s81_s21, 2048  ;;  %p6741_p2 = scmp.lt.s32.totalorder %s81_s21, %s81_s21 }
  0x5e   :  { %p6737_p1 = scmp.ne.s32.totalorder %s81_s21, %s6736_s0  ;;  %p6742_p3 = scmp.lt.s32.totalorder %s6736_s0, %s6736_s0 }
  0x60   :  { %p6743_p4 = por %p6742_p3, %p6741_p2 }
  0x62   :  { %p6744_p5 = pnand %p6743_p4, %p6737_p1 }
  0x64   :  { %6747 = shalt.err (!%p6744_p5)
}
  0x65   :  { %86 = dma.hbm_to_vmem [thread:$0]  %s8320_s5, 2048, %s81_s21, [#allocation18], %s6785_s3, %s6785_s3, %s6786_s15  }
  0x66   :  { %6770 = dma.done.wait [#allocation9], 512  }
  0x67   :  { %6771 = vsyncadd [#allocation9], 4294966784 }
  0x68   :  { %6772 = dma.done.wait [#allocation12], 8320  }
  0x69   :  { %6773 = vsyncadd [#allocation12], 4294958976 }
  0x6a   :  { %6774 = dma.done.wait [#allocation15], 16384  }
  0x6b   :  { %6775 = vsyncadd [#allocation15], 4294950912 }
  0x6c   :  { %6776 = dma.done.wait [#allocation18], 2048  }
  0x6d   :  { %6777 = vsyncadd [#allocation18], 4294965248  ;;  %v6790_v0 = vmov 0   ;;  %v116_v1 = vld [vmem:[#allocation11] sm:$0xff]  ;;  %v118_v3 = vld [vmem:[#allocation11 + $0x10] sm:$0xff] }
  0x6e   :  { %598 = vmatprep.mubr.bf16.mxu1 %v6790_v0  ;;  %744 = vmatprep.mubr.bf16.mxu0 %v6790_v0  ;;  %v120_v2 = vld [vmem:[#allocation11 + $0x20] sm:$0xff]  ;;  %v122_v5 = vld [vmem:[#allocation11 + $0x30] sm:$0xff]  ;;  %v117_v63 = vld [vmem:[#allocation11 + $0x8] sm:$0xff] }
  0x6f   :  { %v5133_v4 = vcombine.high %v116_v1, %v120_v2  ;;  %v5132_v6 = vcombine.low %v116_v1, %v120_v2  ;;  %v124_v7 = vld [vmem:[#allocation11 + $0x40] sm:$0xff]  ;;  %v5137_v9 = vcombine.high %v118_v3, %v122_v5  ;;  %v5136_v10 = vcombine.low %v118_v3, %v122_v5  ;;  %v126_v12 = vld [vmem:[#allocation11 + $0x50] sm:$0xff]  ;;  %v121_v1 = vld [vmem:[#allocation11 + $0x28] sm:$0xff] }
  0x70   :  { %v128_v8 = vld [vmem:[#allocation11 + $0x60] sm:$0xff]  ;;  %v130_v13 = vld [vmem:[#allocation11 + $0x70] sm:$0xff] }
  0x71   :  { %v5141_v11 = vcombine.high %v124_v7, %v128_v8  ;;  %v132_v14 = vld [vmem:[#allocation11 + $0x80] sm:$0xff]  ;;  %566 = vmatprep.subr.bf16.mxu1 %v5133_v4  ;;  %v5145_v15 = vcombine.high %v126_v12, %v130_v13  ;;  %v134_v17 = vld [vmem:[#allocation11 + $0x90] sm:$0xff]  ;;  %712 = vmatprep.subr.bf16.mxu0 %v5137_v9  ;;  %v5140_v19 = vcombine.low %v124_v7, %v128_v8  ;;  %v935_v7 = vld [vmem:[#allocation14] sm:$0xff] }
  0x72   :  { %v136_v16 = vld [vmem:[#allocation11 + $0xa0] sm:$0xff]  ;;  %v138_v18 = vld [vmem:[#allocation11 + $0xb0] sm:$0xff]  ;;  %567 = vmatpush1.bf16.msra.mxu1 %v5132_v6  ;;  %713 = vmatpush1.bf16.msra.mxu0 %v5136_v10  ;;  %v5144_v20 = vcombine.low %v126_v12, %v130_v13  ;;  %v5135_v6 = vcombine.high %v117_v63, %v121_v1  ;;  %v939_v9 = vld [vmem:[#allocation14 + $0x20] sm:$0xff] }
  0x73   :  { %568 = vmatprep.subr.bf16.mxu1 %v5141_v11  ;;  %v5149_v21 = vcombine.high %v132_v14, %v136_v16  ;;  %714 = vmatprep.subr.bf16.mxu0 %v5145_v15  ;;  %v5153_v22 = vcombine.high %v134_v17, %v138_v18  ;;  %v140_v23 = vld [vmem:[#allocation11 + $0xc0] sm:$0xff]  ;;  %v142_v25 = vld [vmem:[#allocation11 + $0xd0] sm:$0xff]  ;;  %v5148_v27 = vcombine.low %v132_v14, %v136_v16  ;;  %v125_v10 = vld [vmem:[#allocation11 + $0x48] sm:$0xff] }
  0x74   :  { %v144_v24 = vld [vmem:[#allocation11 + $0xe0] sm:$0xff]  ;;  %v146_v26 = vld [vmem:[#allocation11 + $0xf0] sm:$0xff]  ;;  %v5152_v28 = vcombine.low %v134_v17, %v138_v18  ;;  %v129_v11 = vld [vmem:[#allocation11 + $0x68] sm:$0xff]  ;;  %v5134_v15 = vcombine.low %v117_v63, %v121_v1  ;;  %v5303_v16 = vpack.c.bf16 %v939_v9, %v935_v7 }
  0x75   :  { %v5157_v29 = vcombine.high %v140_v23, %v144_v24  ;;  %v5161_v30 = vcombine.high %v142_v25, %v146_v26  ;;  %v148_v31 = vld [vmem:[#allocation11 + $0x100] sm:$0xff]  ;;  %v150_v33 = vld [vmem:[#allocation11 + $0x110] sm:$0xff]  ;;  %v5156_v35 = vcombine.low %v140_v23, %v144_v24  ;;  %v5160_v36 = vcombine.low %v142_v25, %v146_v26  ;;  %v943_v18 = vld [vmem:[#allocation14 + $0x40] sm:$0xff] }
  0x76   :  { %569 = vmatpush1.bf16.msra.mxu1 %v5140_v19  ;;  %715 = vmatpush1.bf16.msra.mxu0 %v5144_v20  ;;  %v152_v32 = vld [vmem:[#allocation11 + $0x120] sm:$0xff]  ;;  %v154_v34 = vld [vmem:[#allocation11 + $0x130] sm:$0xff]  ;;  %v5143_v17 = vcombine.high %v125_v10, %v129_v11  ;;  %v947_v20 = vld [vmem:[#allocation14 + $0x60] sm:$0xff]  ;;  %v5142_v25 = vcombine.low %v125_v10, %v129_v11 }
  0x77   :  { %570 = vmatprep.subr.bf16.mxu1 %v5149_v21  ;;  %716 = vmatprep.subr.bf16.mxu0 %v5153_v22  ;;  %v5165_v37 = vcombine.high %v148_v31, %v152_v32  ;;  %v5169_v38 = vcombine.high %v150_v33, %v154_v34  ;;  %v156_v39 = vld [vmem:[#allocation11 + $0x140] sm:$0xff]  ;;  %v158_v41 = vld [vmem:[#allocation11 + $0x150] sm:$0xff]  ;;  %v5164_v43 = vcombine.low %v148_v31, %v152_v32  ;;  %v133_v21 = vld [vmem:[#allocation11 + $0x88] sm:$0xff] }
  0x78   :  { %v160_v40 = vld [vmem:[#allocation11 + $0x160] sm:$0xff]  ;;  %v162_v42 = vld [vmem:[#allocation11 + $0x170] sm:$0xff]  ;;  %v5168_v44 = vcombine.low %v150_v33, %v154_v34  ;;  %v137_v22 = vld [vmem:[#allocation11 + $0xa8] sm:$0xff]  ;;  %v5307_v26 = vpack.c.bf16 %v947_v20, %v943_v18 }
  0x79   :  { %v5173_v45 = vcombine.high %v156_v39, %v160_v40  ;;  %v5177_v46 = vcombine.high %v158_v41, %v162_v42  ;;  %v164_v47 = vld [vmem:[#allocation11 + $0x180] sm:$0xff]  ;;  %v166_v49 = vld [vmem:[#allocation11 + $0x190] sm:$0xff]  ;;  %v5172_v51 = vcombine.low %v156_v39, %v160_v40  ;;  %v5176_v52 = vcombine.low %v158_v41, %v162_v42  ;;  %v141_v31 = vld [vmem:[#allocation11 + $0xc8] sm:$0xff] }
  0x7a   :  { %571 = vmatpush1.bf16.msra.mxu1 %v5148_v27  ;;  %717 = vmatpush1.bf16.msra.mxu0 %v5152_v28  ;;  %v168_v48 = vld [vmem:[#allocation11 + $0x1a0] sm:$0xff]  ;;  %v170_v50 = vld [vmem:[#allocation11 + $0x1b0] sm:$0xff]  ;;  %v5151_v27 = vcombine.high %v133_v21, %v137_v22  ;;  %v951_v28 = vld [vmem:[#allocation14 + $0x80] sm:$0xff] }
  0x7b   :  { %572 = vmatprep.subr.bf16.mxu1 %v5157_v29  ;;  %718 = vmatprep.subr.bf16.mxu0 %v5161_v30  ;;  %v5181_v53 = vcombine.high %v164_v47, %v168_v48  ;;  %v5185_v54 = vcombine.high %v166_v49, %v170_v50  ;;  %v172_v55 = vld [vmem:[#allocation11 + $0x1c0] sm:$0xff]  ;;  %v174_v57 = vld [vmem:[#allocation11 + $0x1d0] sm:$0xff]  ;;  %v5180_v59 = vcombine.low %v164_v47, %v168_v48  ;;  %v955_v30 = vld [vmem:[#allocation14 + $0xa0] sm:$0xff] }
  0x7c   :  { %v176_v56 = vld [vmem:[#allocation11 + $0x1e0] sm:$0xff]  ;;  %v178_v58 = vld [vmem:[#allocation11 + $0x1f0] sm:$0xff]  ;;  %v5184_v60 = vcombine.low %v166_v49, %v170_v50  ;;  %v145_v32 = vld [vmem:[#allocation11 + $0xe8] sm:$0xff] }
  0x7d   :  { %v5189_v61 = vcombine.high %v172_v55, %v176_v56  ;;  %v5193_v62 = vcombine.high %v174_v57, %v178_v58  ;;  %v936_v2 = vld [vmem:[#allocation14 + $0x8] sm:$0xff]  ;;  %v5188_v4 = vcombine.low %v172_v55, %v176_v56  ;;  %v5192_v5 = vcombine.low %v174_v57, %v178_v58  ;;  %v6924_v12 = vld [vmem:[#allocation8] sm:$0xff]   ;;  %v6930_v33 = vld [vmem:[#allocation8 + $0x8] sm:$0xff]  }
  0x7e   :  { %573 = vmatpush1.bf16.msra.mxu1 %v5156_v35  ;;  %719 = vmatpush1.bf16.msra.mxu0 %v5160_v36  ;;  %v940_v3 = vld [vmem:[#allocation14 + $0x28] sm:$0xff]  ;;  %v5150_v36 = vcombine.low %v133_v21, %v137_v22  ;;  %v959_v39 = vld [vmem:[#allocation14 + $0xc0] sm:$0xff]  ;;  %v119_v22 = vld [vmem:[#allocation11 + $0x18] sm:$0xff] }
  0x7f   :  { %574 = vmatprep.subr.bf16.mxu1 %v5165_v37  ;;  %720 = vmatprep.subr.bf16.mxu0 %v5169_v38  ;;  %v5301_v8 = vpack.c.bf16 %v940_v3, %v936_v2  ;;  %v944_v13 = vld [vmem:[#allocation14 + $0x48] sm:$0xff]  ;;  %v5311_v37 = vpack.c.bf16 %v955_v30, %v951_v28  ;;  %v5159_v38 = vcombine.high %v141_v31, %v145_v32  ;;  %v963_v41 = vld [vmem:[#allocation14 + $0xe0] sm:$0xff]  ;;  %v131_v30 = vld [vmem:[#allocation11 + $0x78] sm:$0xff] }
  0x80   :  { %v948_v14 = vld [vmem:[#allocation14 + $0x68] sm:$0xff]  ;;  %v149_v42 = vld [vmem:[#allocation11 + $0x108] sm:$0xff]  ;;  %v5315_v47 = vpack.c.bf16 %v963_v41, %v959_v39  ;;  %v139_v41 = vld [vmem:[#allocation11 + $0xb8] sm:$0xff] }
  0x81   :  { %v5305_v19 = vpack.c.bf16 %v948_v14, %v944_v13  ;;  %v952_v23 = vld [vmem:[#allocation14 + $0x88] sm:$0xff]  ;;  %v967_v49 = vld [vmem:[#allocation14 + $0x100] sm:$0xff]  ;;  %v6942_v13 = vld [vmem:[#allocation8 + $0x18] sm:$0xff]  }
  0x82   :  { %575 = vmatpush1.bf16.msra.mxu1 %v5164_v43  ;;  %721 = vmatpush1.bf16.msra.mxu0 %v5168_v44  ;;  %v956_v24 = vld [vmem:[#allocation14 + $0xa8] sm:$0xff]  ;;  %v153_v43 = vld [vmem:[#allocation11 + $0x128] sm:$0xff] }
  0x83   :  { %576 = vmatprep.subr.bf16.mxu1 %v5173_v45  ;;  %722 = vmatprep.subr.bf16.mxu0 %v5177_v46  ;;  %v5309_v29 = vpack.c.bf16 %v956_v24, %v952_v23  ;;  %v960_v34 = vld [vmem:[#allocation14 + $0xc8] sm:$0xff]  ;;  %v5158_v46 = vcombine.low %v141_v31, %v145_v32  ;;  %v5167_v48 = vcombine.high %v149_v42, %v153_v43  ;;  %v165_v63 = vld [vmem:[#allocation11 + $0x188] sm:$0xff]  ;;  %v123_v23 = vld [vmem:[#allocation11 + $0x38] sm:$0xff]  ;;  %v8323_v32 = vmov 0.0  }
  0x84   :  { %v964_v35 = vld [vmem:[#allocation14 + $0xe8] sm:$0xff]  ;;  %v5166_v57 = vcombine.low %v149_v42, %v153_v43  ;;  %v169_v1 = vld [vmem:[#allocation11 + $0x1a8] sm:$0xff]  ;;  %v5139_v28 = vcombine.high %v119_v22, %v123_v23 }
  0x85   :  { %v5313_v40 = vpack.c.bf16 %v964_v35, %v960_v34  ;;  %v968_v44 = vld [vmem:[#allocation14 + $0x108] sm:$0xff]  ;;  %v983_v7 = vld [vmem:[#allocation14 + $0x180] sm:$0xff] }
  0x86   :  { %577 = vmatpush1.bf16.msra.mxu1 %v5172_v51  ;;  %723 = vmatpush1.bf16.msra.mxu0 %v5176_v52  ;;  %v972_v45 = vld [vmem:[#allocation14 + $0x128] sm:$0xff]  ;;  %v971_v51 = vld [vmem:[#allocation14 + $0x120] sm:$0xff] }
  0x87   :  { %578 = vmatprep.subr.bf16.mxu1 %v5181_v53  ;;  %724 = vmatprep.subr.bf16.mxu0 %v5185_v54  ;;  %v5317_v50 = vpack.c.bf16 %v972_v45, %v968_v44  ;;  %v157_v52 = vld [vmem:[#allocation11 + $0x148] sm:$0xff]  ;;  %v6936_v54 = vld [vmem:[#allocation8 + $0x10] sm:$0xff]   ;;  %v5319_v58 = vpack.c.bf16 %v971_v51, %v967_v49  ;;  %v147_v49 = vld [vmem:[#allocation11 + $0xf8] sm:$0xff] }
  0x88   :  { %v161_v53 = vld [vmem:[#allocation11 + $0x168] sm:$0xff]  ;;  %v976_v55 = vld [vmem:[#allocation14 + $0x148] sm:$0xff] }
  0x89   :  { %v980_v56 = vld [vmem:[#allocation14 + $0x168] sm:$0xff]  ;;  %v987_v9 = vld [vmem:[#allocation14 + $0x1a0] sm:$0xff] }
  0x8a   :  { %579 = vmatpush1.bf16.msra.mxu1 %v5180_v59  ;;  %725 = vmatpush1.bf16.msra.mxu0 %v5184_v60  ;;  %v5175_v59 = vcombine.high %v157_v52, %v161_v53  ;;  %v975_v60 = vld [vmem:[#allocation14 + $0x140] sm:$0xff]  ;;  %v984_v2 = vld [vmem:[#allocation14 + $0x188] sm:$0xff] }
  0x8b   :  { %580 = vmatprep.subr.bf16.mxu1 %v5189_v61  ;;  %726 = vmatprep.subr.bf16.mxu0 %v5193_v62  ;;  %v5321_v61 = vpack.c.bf16 %v980_v56, %v976_v55  ;;  %v979_v62 = vld [vmem:[#allocation14 + $0x160] sm:$0xff]  ;;  %v988_v3 = vld [vmem:[#allocation14 + $0x1a8] sm:$0xff] }
  0x8c   :  { %v173_v10 = vld [vmem:[#allocation11 + $0x1c8] sm:$0xff]  ;;  %v992_v14 = vld [vmem:[#allocation14 + $0x1c8] sm:$0xff] }
  0x8d   :  { %v177_v11 = vld [vmem:[#allocation11 + $0x1e8] sm:$0xff]  ;;  %v1179_v24 = vld [vmem:[#allocation16 + $0x8] sm:$0xff] }
  0x8e   :  { %581 = vmatpush1.bf16.msra.mxu1 %v5188_v4  ;;  %727 = vmatpush1.bf16.msra.mxu0 %v5192_v5  ;;  %v5174_v4 = vcombine.low %v157_v52, %v161_v53  ;;  %v5323_v5 = vpack.c.bf16 %v979_v62, %v975_v60  ;;  %v5191_v18 = vcombine.high %v173_v10, %v177_v11  ;;  %v995_v21 = vld [vmem:[#allocation14 + $0x1e0] sm:$0xff]  ;;  %v1203_v56 = vld [vmem:[#allocation16 + $0xc8] sm:$0xff]  ;;  %v151_v60 = vld [vmem:[#allocation11 + $0x118] sm:$0xff] }
  0x8f   :  { %639 = vmatprep.subr.bf16.mxu1 %v5135_v6  ;;  %5302 = vmatprep.subr.bf16.mxu0 %v5301_v8  ;;  %v5183_v6 = vcombine.high %v165_v63, %v169_v1  ;;  %v5325_v8 = vpack.c.bf16 %v988_v3, %v984_v2  ;;  %v1178_v34 = vld [vmem:[#allocation16] sm:$0xff]  ;;  %v1211_v3 = vld [vmem:[#allocation16 + $0x108] sm:$0xff] }
  0x90   :  { %v1182_v35 = vld [vmem:[#allocation16 + $0x20] sm:$0xff] }
  0x91   :  { %599 = vmatmul.mubr.bf16.vlgmr.msra.gmra.mrb[0].mxu1 %v6924_v12  ;;  %745 = vmatmul.mubr.bf16.vlgmr.msra.gmra.mrb[0].mxu0 %v6924_v12  ;;  %v5367_v42 = vpack.c.bf16 %v1182_v35, %v1178_v34  ;;  %v1186_v44 = vld [vmem:[#allocation16 + $0x40] sm:$0xff] }
  0x92   :  { %640 = vmatpush1.bf16.msra.mxu1 %v5134_v15  ;;  %5304 = vmatpush1.bf16.msra.mxu0 %v5303_v16  ;;  %v996_v15 = vld [vmem:[#allocation14 + $0x1e8] sm:$0xff]  ;;  %v5182_v16 = vcombine.low %v165_v63, %v169_v1  ;;  %v1190_v45 = vld [vmem:[#allocation16 + $0x60] sm:$0xff] }
  0x93   :  { %641 = vmatprep.subr.bf16.mxu1 %v5143_v17  ;;  %5306 = vmatprep.subr.bf16.mxu0 %v5305_v19  ;;  %v5327_v17 = vpack.c.bf16 %v987_v9, %v983_v7  ;;  %v991_v19 = vld [vmem:[#allocation14 + $0x1c0] sm:$0xff]  ;;  %v5329_v20 = vpack.c.bf16 %v996_v15, %v992_v14  ;;  %v5371_v55 = vpack.c.bf16 %v1190_v45, %v1186_v44  ;;  %v159_v7 = vld [vmem:[#allocation11 + $0x158] sm:$0xff] }
  0x94   :  { %608 = vmatprep.mubr.bf16.mxu1 %v6790_v0  ;;  %754 = vmatprep.mubr.bf16.mxu0 %v6790_v0  ;;  %v1194_v52 = vld [vmem:[#allocation16 + $0x80] sm:$0xff] }
  0x95   :  { %v1198_v53 = vld [vmem:[#allocation16 + $0xa0] sm:$0xff] }
  0x96   :  { %642 = vmatpush1.bf16.msra.mxu1 %v5142_v25  ;;  %5308 = vmatpush1.bf16.msra.mxu0 %v5307_v26  ;;  %v1183_v25 = vld [vmem:[#allocation16 + $0x28] sm:$0xff]  ;;  %v5190_v26 = vcombine.low %v173_v10, %v177_v11  ;;  %v1202_v63 = vld [vmem:[#allocation16 + $0xc0] sm:$0xff]  ;;  %v5375_v2 = vpack.c.bf16 %v1198_v53, %v1194_v52  ;;  %v946_v52 = vld [vmem:[#allocation14 + $0x58] sm:$0xff] }
  0x97   :  { %643 = vmatprep.subr.bf16.mxu1 %v5151_v27  ;;  %5310 = vmatprep.subr.bf16.mxu0 %v5309_v29  ;;  %v5331_v27 = vpack.c.bf16 %v995_v21, %v991_v19  ;;  %v127_v29 = vld [vmem:[#allocation11 + $0x58] sm:$0xff]  ;;  %v5365_v31 = vpack.c.bf16 %v1183_v25, %v1179_v24  ;;  %v1206_v1 = vld [vmem:[#allocation16 + $0xe0] sm:$0xff]  ;;  %v950_v53 = vld [vmem:[#allocation14 + $0x78] sm:$0xff] }
  0x98   :  { %v5147_v39 = vcombine.high %v127_v29, %v131_v30  ;;  %v5379_v10 = vpack.c.bf16 %v1206_v1, %v1202_v63  ;;  %v1210_v14 = vld [vmem:[#allocation16 + $0x100] sm:$0xff]  ;;  %v171_v21 = vld [vmem:[#allocation11 + $0x1b8] sm:$0xff] }
  0x99   :  { %609 = vmatmul.mubr.bf16.gmra.mrb[4].mxu1 %v6930_v33  ;;  %755 = vmatmul.mubr.bf16.gmra.mrb[4].mxu0 %v6930_v33  ;;  %v1214_v15 = vld [vmem:[#allocation16 + $0x120] sm:$0xff]  ;;  %v953_v1 = vld [vmem:[#allocation14 + $0x90] sm:$0xff] }
  0x9a   :  { %644 = vmatpush1.bf16.msra.mxu1 %v5150_v36  ;;  %5312 = vmatpush1.bf16.msra.mxu0 %v5311_v37  ;;  %v5138_v36 = vcombine.low %v119_v22, %v123_v23  ;;  %v1187_v37 = vld [vmem:[#allocation16 + $0x48] sm:$0xff]  ;;  %v5383_v22 = vpack.c.bf16 %v1214_v15, %v1210_v14  ;;  %v1218_v24 = vld [vmem:[#allocation16 + $0x140] sm:$0xff]  ;;  %v969_v14 = vld [vmem:[#allocation14 + $0x110] sm:$0xff] }
  0x9b   :  { %645 = vmatprep.subr.bf16.mxu1 %v5159_v38  ;;  %5314 = vmatprep.subr.bf16.mxu0 %v5313_v40  ;;  %v1191_v38 = vld [vmem:[#allocation16 + $0x68] sm:$0xff]  ;;  %v135_v40 = vld [vmem:[#allocation11 + $0x98] sm:$0xff]  ;;  %v1222_v25 = vld [vmem:[#allocation16 + $0x160] sm:$0xff] }
  0x9c   :  { %618 = vmatprep.mubr.bf16.mxu1 %v6790_v0  ;;  %764 = vmatprep.mubr.bf16.mxu0 %v6790_v0  ;;  %v5369_v43 = vpack.c.bf16 %v1191_v38, %v1187_v37  ;;  %v5155_v51 = vcombine.high %v135_v40, %v139_v41  ;;  %v5387_v34 = vpack.c.bf16 %v1222_v25, %v1218_v24  ;;  %v1230_v37 = vld [vmem:[#allocation16 + $0x1a0] sm:$0xff]  ;;  %v973_v15 = vld [vmem:[#allocation14 + $0x130] sm:$0xff] }
  0x9d   :  { %v985_v25 = vld [vmem:[#allocation14 + $0x190] sm:$0xff] }
  0x9e   :  { %646 = vmatpush1.bf16.msra.mxu1 %v5158_v46  ;;  %5316 = vmatpush1.bf16.msra.mxu0 %v5315_v47  ;;  %v1195_v46 = vld [vmem:[#allocation16 + $0x88] sm:$0xff]  ;;  %v5146_v47 = vcombine.low %v127_v29, %v131_v30  ;;  %v175_v30 = vld [vmem:[#allocation11 + $0x1d8] sm:$0xff] }
  0x9f   :  { %647 = vmatprep.subr.bf16.mxu1 %v5167_v48  ;;  %5318 = vmatprep.subr.bf16.mxu0 %v5317_v50  ;;  %v143_v48 = vld [vmem:[#allocation11 + $0xd8] sm:$0xff]  ;;  %v1199_v50 = vld [vmem:[#allocation16 + $0xa8] sm:$0xff] }
  0xa0   :  { %v5163_v62 = vcombine.high %v143_v48, %v147_v49 }
  0xa1   :  { %619 = vmatmul.mubr.bf16.gmra.mrb[8].mxu1 %v6936_v54  ;;  %765 = vmatmul.mubr.bf16.gmra.mrb[8].mxu0 %v6936_v54 }
  0xa2   :  { %648 = vmatpush1.bf16.msra.mxu1 %v5166_v57  ;;  %5320 = vmatpush1.bf16.msra.mxu0 %v5319_v58  ;;  %v1207_v57 = vld [vmem:[#allocation16 + $0xe8] sm:$0xff]  ;;  %v5373_v58 = vpack.c.bf16 %v1199_v50, %v1195_v46  ;;  %v1234_v46 = vld [vmem:[#allocation16 + $0x1c0] sm:$0xff]  ;;  %v937_v50 = vld [vmem:[#allocation14 + $0x10] sm:$0xff] }
  0xa3   :  { %649 = vmatprep.subr.bf16.mxu1 %v5175_v59  ;;  %5322 = vmatprep.subr.bf16.mxu0 %v5321_v61  ;;  %v5154_v59 = vcombine.low %v135_v40, %v139_v41  ;;  %v155_v61 = vld [vmem:[#allocation11 + $0x138] sm:$0xff]  ;;  %v1239_v40 = vld [vmem:[#allocation16 + $0x1e8] sm:$0xff] }
  0xa4   :  { %628 = vmatprep.mubr.bf16.mxu1 %v6790_v0  ;;  %774 = vmatprep.mubr.bf16.mxu0 %v6790_v0  ;;  %v5171_v9 = vcombine.high %v151_v60, %v155_v61 }
  0xa6   :  { %650 = vmatpush1.bf16.msra.mxu1 %v5174_v4  ;;  %5324 = vmatpush1.bf16.msra.mxu0 %v5323_v5  ;;  %v1215_v4 = vld [vmem:[#allocation16 + $0x128] sm:$0xff]  ;;  %v5377_v5 = vpack.c.bf16 %v1207_v57, %v1203_v56  ;;  %v6963_v57 = vpack.c.bf16 %v950_v53, %v946_v52  ;;  %v1209_v52 = vld [vmem:[#allocation16 + $0xf8] sm:$0xff] }
  0xa7   :  { %651 = vmatprep.subr.bf16.mxu1 %v5183_v6  ;;  %5326 = vmatprep.subr.bf16.mxu0 %v5325_v8  ;;  %v5162_v6 = vcombine.low %v143_v48, %v147_v49  ;;  %v163_v8 = vld [vmem:[#allocation11 + $0x178] sm:$0xff]  ;;  %v5381_v11 = vpack.c.bf16 %v1215_v4, %v1211_v3  ;;  %v962_v3 = vld [vmem:[#allocation14 + $0xd8] sm:$0xff] }
  0xa8   :  { %v5179_v19 = vcombine.high %v159_v7, %v163_v8  ;;  %v966_v4 = vld [vmem:[#allocation14 + $0xf8] sm:$0xff] }
  0xa9   :  { %629 = vmatmul.mubr.bf16.gmra.mrb[12].mxu1 %v6942_v13  ;;  %775 = vmatmul.mubr.bf16.gmra.mrb[12].mxu0 %v6942_v13 }
  0xaa   :  { %652 = vmatpush1.bf16.msra.mxu1 %v5182_v16  ;;  %5328 = vmatpush1.bf16.msra.mxu0 %v5327_v17  ;;  %v5170_v16 = vcombine.low %v151_v60, %v155_v61  ;;  %v1219_v17 = vld [vmem:[#allocation16 + $0x148] sm:$0xff]  ;;  %v954_v60 = vld [vmem:[#allocation14 + $0x98] sm:$0xff] }
  0xab   :  { %653 = vmatprep.subr.bf16.mxu1 %v5191_v18  ;;  %5330 = vmatprep.subr.bf16.mxu0 %v5329_v20  ;;  %v1223_v18 = vld [vmem:[#allocation16 + $0x168] sm:$0xff]  ;;  %v167_v20 = vld [vmem:[#allocation11 + $0x198] sm:$0xff]  ;;  %v958_v61 = vld [vmem:[#allocation14 + $0xb8] sm:$0xff] }
  0xac   :  { %671 = vmatprep.mubr.bf16.mxu1 %v6790_v0  ;;  %1063 = vmatprep.mubr.f32.mxu0 %v8323_v32  ;;  %v5385_v23 = vpack.c.bf16 %v1223_v18, %v1219_v17  ;;  %v5187_v29 = vcombine.high %v167_v20, %v171_v21  ;;  %v5186_v38 = vcombine.low %v167_v20, %v171_v21  ;;  %v982_v17 = vld [vmem:[#allocation14 + $0x178] sm:$0xff]  ;;  %v981_v20 = vld [vmem:[#allocation14 + $0x170] sm:$0xff] }
  0xad   :  { %v6971_v63 = vpack.c.bf16 %v958_v61, %v954_v60  ;;  %v6990_v18 = vpack.c.bf16 %v973_v15, %v969_v14  ;;  %v986_v21 = vld [vmem:[#allocation14 + $0x198] sm:$0xff]  ;;  %v1220_v14 = vld [vmem:[#allocation16 + $0x150] sm:$0xff] }
  0xae   :  { %654 = vmatpush1.bf16.msra.mxu1 %v5190_v26  ;;  %5332 = vmatpush1.bf16.msra.mxu0 %v5331_v27  ;;  %v5178_v26 = vcombine.low %v159_v7, %v163_v8  ;;  %v1227_v27 = vld [vmem:[#allocation16 + $0x188] sm:$0xff]  ;;  %v965_v7 = vld [vmem:[#allocation14 + $0xf0] sm:$0xff]  ;;  %v970_v8 = vld [vmem:[#allocation14 + $0x118] sm:$0xff] }
  0xaf   :  { %785 = vmatprep.subr.bf16.mxu1 %v5139_v28  ;;  %5366 = vmatprep.subr.bf16.mxu0 %v5365_v31  ;;  %v1231_v28 = vld [vmem:[#allocation16 + $0x1a8] sm:$0xff]  ;;  %v179_v31 = vld [vmem:[#allocation11 + $0x1f8] sm:$0xff]  ;;  %v1213_v60 = vld [vmem:[#allocation16 + $0x118] sm:$0xff] }
  0xb0   :  { %v5389_v35 = vpack.c.bf16 %v1231_v28, %v1227_v27  ;;  %v5195_v41 = vcombine.high %v175_v30, %v179_v31  ;;  %v5194_v48 = vcombine.low %v175_v30, %v179_v31  ;;  %v994_v27 = vld [vmem:[#allocation14 + $0x1d8] sm:$0xff]  ;;  %v993_v30 = vld [vmem:[#allocation14 + $0x1d0] sm:$0xff] }
  0xb1   :  { %672 = vmatmul.mubr.bf16.vlgmr.msra.gmra.mrb[16].mxu1 %v6924_v12  ;;  %1064 = vmatmul.mubr.f32.vlgmr.msra.gmra.mrb[16].mxu0 %v8323_v32  ;;  %v998_v28 = vld [vmem:[#allocation14 + $0x1f8] sm:$0xff]  ;;  %v997_v31 = vld [vmem:[#allocation14 + $0x1f0] sm:$0xff] }
  0xb2   :  { %786 = vmatpush1.bf16.msra.mxu1 %v5138_v36  ;;  %681 = vmatprep.mubr.bf16.mxu1 %v6790_v0  ;;  %v1226_v36 = vld [vmem:[#allocation16 + $0x180] sm:$0xff]  ;;  %v1217_v61 = vld [vmem:[#allocation16 + $0x138] sm:$0xff]  ;;  %v1224_v15 = vld [vmem:[#allocation16 + $0x170] sm:$0xff] }
  0xb3   :  { %787 = vmatprep.subr.bf16.mxu1 %v5147_v39  ;;  %5368 = vmatpush1.bf16.msra.mxu0 %v5367_v42  ;;  %v1235_v39 = vld [vmem:[#allocation16 + $0x1c8] sm:$0xff]  ;;  %v938_v42 = vld [vmem:[#allocation14 + $0x18] sm:$0xff]  ;;  %v5391_v44 = vpack.c.bf16 %v1230_v37, %v1226_v36  ;;  %v1180_v37 = vld [vmem:[#allocation16 + $0x10] sm:$0xff] }
  0xb4   :  { %1306 = vmatprep.mubr.f32.mxu0 %v8323_v32  ;;  %5370 = vmatprep.subr.bf16.mxu0 %v5369_v43  ;;  %v942_v43 = vld [vmem:[#allocation14 + $0x38] sm:$0xff]  ;;  %v5393_v45 = vpack.c.bf16 %v1239_v40, %v1235_v39 }
  0xb5   :  { %v6958_v49 = vpack.c.bf16 %v942_v43, %v938_v42  ;;  %v1189_v39 = vld [vmem:[#allocation16 + $0x58] sm:$0xff]  ;;  %v1188_v42 = vld [vmem:[#allocation16 + $0x50] sm:$0xff] }
  0xb6   :  { %788 = vmatpush1.bf16.msra.mxu1 %v5146_v47  ;;  %v1238_v47 = vld [vmem:[#allocation16 + $0x1e0] sm:$0xff]  ;;  %v1193_v40 = vld [vmem:[#allocation16 + $0x78] sm:$0xff]  ;;  %v1192_v43 = vld [vmem:[#allocation16 + $0x70] sm:$0xff] }
  0xb7   :  { %789 = vmatprep.subr.bf16.mxu1 %v5155_v51  ;;  %5372 = vmatpush1.bf16.msra.mxu0 %v5371_v55  ;;  %v941_v51 = vld [vmem:[#allocation14 + $0x30] sm:$0xff]  ;;  %v5395_v55 = vpack.c.bf16 %v1238_v47, %v1234_v46  ;;  %v7025_v46 = vpack.c.bf16 %v1192_v43, %v1188_v42  ;;  %v1461_v42 = vld [vmem:[#allocation14 + $0xe0] sm:$0xff] }
  0xb8   :  { %5374 = vmatprep.subr.bf16.mxu0 %v5373_v58  ;;  %v6960_v56 = vpack.c.bf16 %v941_v51, %v937_v50  ;;  %v945_v58 = vld [vmem:[#allocation14 + $0x50] sm:$0xff]  ;;  %v1205_v51 = vld [vmem:[#allocation16 + $0xd8] sm:$0xff] }
  0xb9   :  { %682 = vmatmul.mubr.bf16.gmra.mrb[20].mxu1 %v6930_v33  ;;  %v1200_v50 = vld [vmem:[#allocation16 + $0xb0] sm:$0xff] }
  0xba   :  { %790 = vmatpush1.bf16.msra.mxu1 %v5154_v59  ;;  %691 = vmatprep.mubr.bf16.mxu1 %v6790_v0  ;;  %v949_v59 = vld [vmem:[#allocation14 + $0x70] sm:$0xff] }
  0xbb   :  { %791 = vmatprep.subr.bf16.mxu1 %v5163_v62  ;;  %5376 = vmatpush1.bf16.msra.mxu0 %v5375_v2  ;;  %v6967_v62 = vpack.c.bf16 %v949_v59, %v945_v58  ;;  %v957_v2 = vld [vmem:[#allocation14 + $0xb0] sm:$0xff] }
  0xbc   :  { %5378 = vmatprep.subr.bf16.mxu0 %v5377_v5  ;;  %v6979_v5 = vpack.c.bf16 %v966_v4, %v962_v3  ;;  %v1204_v58 = vld [vmem:[#allocation16 + $0xd0] sm:$0xff] }
  0xbd   :  { %v1208_v59 = vld [vmem:[#allocation16 + $0xf0] sm:$0xff] }
  0xbe   :  { %792 = vmatpush1.bf16.msra.mxu1 %v5162_v6  ;;  %v961_v6 = vld [vmem:[#allocation14 + $0xd0] sm:$0xff] }
  0xbf   :  { %793 = vmatprep.subr.bf16.mxu1 %v5171_v9  ;;  %5380 = vmatpush1.bf16.msra.mxu0 %v5379_v10  ;;  %v974_v9 = vld [vmem:[#allocation14 + $0x138] sm:$0xff]  ;;  %v6983_v10 = vpack.c.bf16 %v965_v7, %v961_v6  ;;  %v1212_v3 = vld [vmem:[#allocation16 + $0x110] sm:$0xff] }
  0xc0   :  { %5382 = vmatprep.subr.bf16.mxu0 %v5381_v11  ;;  %v6987_v11 = vpack.c.bf16 %v974_v9, %v970_v8  ;;  %v1216_v4 = vld [vmem:[#allocation16 + $0x130] sm:$0xff]  ;;  %v1221_v6 = vld [vmem:[#allocation16 + $0x158] sm:$0xff] }
  0xc1   :  { %692 = vmatmul.mubr.bf16.gmra.mrb[24].mxu1 %v6936_v54  ;;  %v1225_v7 = vld [vmem:[#allocation16 + $0x178] sm:$0xff]  ;;  %v7044_v8 = vpack.c.bf16 %v1216_v4, %v1212_v3  ;;  %v1473_v3 = vld [vmem:[#allocation14 + $0x140] sm:$0xff] }
  0xc2   :  { %794 = vmatpush1.bf16.msra.mxu1 %v5170_v16  ;;  %701 = vmatprep.mubr.bf16.mxu1 %v6790_v0  ;;  %v978_v16 = vld [vmem:[#allocation14 + $0x158] sm:$0xff]  ;;  %v7047_v9 = vpack.c.bf16 %v1225_v7, %v1221_v6  ;;  %v1477_v4 = vld [vmem:[#allocation14 + $0x160] sm:$0xff]  ;;  %v1482_v6 = vld [vmem:[#allocation14 + $0x188] sm:$0xff] }
  0xc3   :  { %795 = vmatprep.subr.bf16.mxu1 %v5179_v19  ;;  %5384 = vmatpush1.bf16.msra.mxu0 %v5383_v22  ;;  %v977_v19 = vld [vmem:[#allocation14 + $0x150] sm:$0xff]  ;;  %v990_v22 = vld [vmem:[#allocation14 + $0x1b8] sm:$0xff]  ;;  %v7117_v7 = vpack.c.bf16 %v1477_v4, %v1473_v3 }
  0xc4   :  { %5386 = vmatprep.subr.bf16.mxu0 %v5385_v23  ;;  %v6997_v23 = vpack.c.bf16 %v981_v20, %v977_v19  ;;  %v7001_v24 = vpack.c.bf16 %v990_v22, %v986_v21  ;;  %v7050_v19 = vpack.c.bf16 %v1224_v15, %v1220_v14  ;;  %v1228_v21 = vld [vmem:[#allocation16 + $0x190] sm:$0xff]  ;;  %v1486_v14 = vld [vmem:[#allocation14 + $0x1a8] sm:$0xff]  ;;  %v1481_v15 = vld [vmem:[#allocation14 + $0x180] sm:$0xff] }
  0xc5   :  { %v1232_v22 = vld [vmem:[#allocation16 + $0x1b0] sm:$0xff] }
  0xc6   :  { %796 = vmatpush1.bf16.msra.mxu1 %v5178_v26  ;;  %v989_v26 = vld [vmem:[#allocation14 + $0x1b0] sm:$0xff] }
  0xc7   :  { %797 = vmatprep.subr.bf16.mxu1 %v5187_v29  ;;  %5388 = vmatpush1.bf16.msra.mxu0 %v5387_v34  ;;  %v7004_v29 = vpack.c.bf16 %v989_v26, %v985_v25  ;;  %v1181_v34 = vld [vmem:[#allocation16 + $0x18] sm:$0xff] }
  0xc8   :  { %5390 = vmatprep.subr.bf16.mxu0 %v5389_v35  ;;  %v7011_v35 = vpack.c.bf16 %v997_v31, %v993_v30  ;;  %v1237_v25 = vld [vmem:[#allocation16 + $0x1d8] sm:$0xff]  ;;  %v1236_v30 = vld [vmem:[#allocation16 + $0x1d0] sm:$0xff] }
  0xc9   :  { %702 = vmatmul.mubr.bf16.gmra.mrb[28].mxu1 %v6942_v13  ;;  %v1241_v26 = vld [vmem:[#allocation16 + $0x1f8] sm:$0xff]  ;;  %v1240_v31 = vld [vmem:[#allocation16 + $0x1f0] sm:$0xff] }
  0xca   :  { %798 = vmatpush1.bf16.msra.mxu1 %v5186_v38  ;;  %817 = vmatprep.mubr.bf16.mxu1 %v6790_v0  ;;  %v1184_v38 = vld [vmem:[#allocation16 + $0x30] sm:$0xff] }
  0xcb   :  { %799 = vmatprep.subr.bf16.mxu1 %v5195_v41  ;;  %5392 = vmatpush1.bf16.msra.mxu0 %v5391_v44  ;;  %v7018_v41 = vpack.c.bf16 %v1184_v38, %v1180_v37  ;;  %v1197_v44 = vld [vmem:[#allocation16 + $0x98] sm:$0xff]  ;;  %v1458_v37 = vld [vmem:[#allocation14 + $0xc8] sm:$0xff] }
  0xcc   :  { %5394 = vmatprep.subr.bf16.mxu0 %v5393_v45  ;;  %v1201_v45 = vld [vmem:[#allocation16 + $0xb8] sm:$0xff]  ;;  %v1462_v38 = vld [vmem:[#allocation14 + $0xe8] sm:$0xff] }
  0xcd   :  { %v7029_v47 = vpack.c.bf16 %v1201_v45, %v1197_v44  ;;  %v1466_v44 = vld [vmem:[#allocation14 + $0x108] sm:$0xff] }
  0xce   :  { %800 = vmatpush1.bf16.msra.mxu1 %v5194_v48  ;;  %v1196_v48 = vld [vmem:[#allocation16 + $0x90] sm:$0xff]  ;;  %v1470_v45 = vld [vmem:[#allocation14 + $0x128] sm:$0xff] }
  0xcf   :  { %5334 = vmatprep.subr.bf16.mxu1 %v6958_v49  ;;  %5396 = vmatpush1.bf16.msra.mxu0 %v5395_v55  ;;  %v7032_v53 = vpack.c.bf16 %v1200_v50, %v1196_v48  ;;  %v7035_v55 = vpack.c.bf16 %v1209_v52, %v1205_v51  ;;  %v7109_v48 = vpack.c.bf16 %v1470_v45, %v1466_v44  ;;  %v1465_v50 = vld [vmem:[#allocation14 + $0x100] sm:$0xff] }
  0xd0   :  { %v1469_v51 = vld [vmem:[#allocation14 + $0x120] sm:$0xff] }
  0xd1   :  { %818 = vmatmul.mubr.bf16.vlgmr.msra.gmra.mrb[32].mxu1 %v6924_v12  ;;  %v6976_v12 = vpack.c.bf16 %v957_v2, %v953_v1  ;;  %v7038_v1 = vpack.c.bf16 %v1208_v59, %v1204_v58  ;;  %v7041_v2 = vpack.c.bf16 %v1217_v61, %v1213_v60  ;;  %v7111_v52 = vpack.c.bf16 %v1469_v51, %v1465_v50  ;;  %v1474_v58 = vld [vmem:[#allocation14 + $0x148] sm:$0xff] }
  0xd2   :  { %5336 = vmatpush1.bf16.msra.mxu1 %v6960_v56  ;;  %827 = vmatprep.mubr.bf16.mxu1 %v6790_v0  ;;  %v1478_v59 = vld [vmem:[#allocation14 + $0x168] sm:$0xff]  ;;  %v182_v60 = vlaneseq }
  0xd3   :  { %5338 = vmatprep.subr.bf16.mxu1 %v6963_v57  ;;  %1307 = vmatmul.mubr.f32.vlgmr.msra.gmra.mrb[18].mxu0 %v8323_v32  ;;  %v7115_v61 = vpack.c.bf16 %v1478_v59, %v1474_v58 }
  0xd4   :  { %1561 = vmatprep.mubr.f32.mxu0 %v8323_v32 }
  0xd6   :  { %5340 = vmatpush1.bf16.msra.mxu1 %v6967_v62 }
  0xd7   :  { %5342 = vmatprep.subr.bf16.mxu1 %v6971_v63 }
  0xd9   :  { %828 = vmatmul.mubr.bf16.gmra.mrb[36].mxu1 %v6930_v33  ;;  %v6993_v33 = vpack.c.bf16 %v982_v17, %v978_v16  ;;  %v1229_v16 = vld [vmem:[#allocation16 + $0x198] sm:$0xff] }
  0xda   :  { %5344 = vmatpush1.bf16.msra.mxu1 %v6976_v12  ;;  %837 = vmatprep.mubr.bf16.mxu1 %v6790_v0  ;;  %v1233_v17 = vld [vmem:[#allocation16 + $0x1b8] sm:$0xff] }
  0xdb   :  { %5346 = vmatprep.subr.bf16.mxu1 %v6979_v5  ;;  %v7053_v20 = vpack.c.bf16 %v1233_v17, %v1229_v16  ;;  %v1485_v16 = vld [vmem:[#allocation14 + $0x1a0] sm:$0xff]  ;;  %v7120_v17 = vpack.c.bf16 %v1486_v14, %v1482_v6 }
  0xde   :  { %5348 = vmatpush1.bf16.msra.mxu1 %v6983_v10 }
  0xdf   :  { %5350 = vmatprep.subr.bf16.mxu1 %v6987_v11 }
  0xe1   :  { %838 = vmatmul.mubr.bf16.gmra.mrb[40].mxu1 %v6936_v54  ;;  %v7007_v54 = vpack.c.bf16 %v998_v28, %v994_v27  ;;  %v7056_v27 = vpack.c.bf16 %v1232_v22, %v1228_v21  ;;  %v7059_v28 = vpack.c.bf16 %v1241_v26, %v1237_v25  ;;  %v1490_v21 = vld [vmem:[#allocation14 + $0x1c8] sm:$0xff]  ;;  %v7123_v25 = vpack.c.bf16 %v1485_v16, %v1481_v15 }
  0xe2   :  { %5352 = vmatpush1.bf16.msra.mxu1 %v6990_v18  ;;  %847 = vmatprep.mubr.bf16.mxu1 %v6790_v0  ;;  %v1185_v0 = vld [vmem:[#allocation16 + $0x38] sm:$0xff]  ;;  %v1494_v22 = vld [vmem:[#allocation14 + $0x1e8] sm:$0xff]  ;;  %v7125_v26 = vshrl.u32 %v182_v60, 7 }
  0xe3   :  { %5354 = vmatprep.subr.bf16.mxu1 %v6993_v33  ;;  %v7015_v36 = vpack.c.bf16 %v1185_v0, %v1181_v34  ;;  %v7062_v34 = vpack.c.bf16 %v1240_v31, %v1236_v30  ;;  %v1449_v0 = vld [vmem:[#allocation14 + $0x80] sm:$0xff]  ;;  %v7128_v30 = vpack.c.bf16 %v1494_v22, %v1490_v21 }
  0xe4   :  { %v1489_v31 = vld [vmem:[#allocation14 + $0x1c0] sm:$0xff] }
  0xe6   :  { %5356 = vmatpush1.bf16.msra.mxu1 %v6997_v23 }
  0xe7   :  { %5358 = vmatprep.subr.bf16.mxu1 %v7001_v24 }
  0xe9   :  { %848 = vmatmul.mubr.bf16.gmra.mrb[44].mxu1 %v6942_v13  ;;  %v7021_v13 = vpack.c.bf16 %v1193_v40, %v1189_v39  ;;  %v7103_v39 = vpack.c.bf16 %v1462_v38, %v1458_v37  ;;  %v1457_v40 = vld [vmem:[#allocation14 + $0xc0] sm:$0xff] }
  0xea   :  { %5360 = vmatpush1.bf16.msra.mxu1 %v7004_v29  ;;  %1134 = vmatprep.mubr.f32.mxu1 %v8323_v32  ;;  %v7105_v43 = vpack.c.bf16 %v1461_v42, %v1457_v40 }
  0xeb   :  { %5362 = vmatprep.subr.bf16.mxu1 %v7007_v54 }
  0xee   :  { %5364 = vmatpush1.bf16.msra.mxu1 %v7011_v35 }
  0xef   :  { %5398 = vmatprep.subr.bf16.mxu1 %v7015_v36 }
  0xf1   :  { %1135 = vmatmul.mubr.f32.vlgmr.msra.gmra.mrb[48].mxu1 %v8323_v32 }
  0xf2   :  { %5400 = vmatpush1.bf16.msra.mxu1 %v7018_v41  ;;  %1377 = vmatprep.mubr.f32.mxu1 %v8323_v32 }
  0xf3   :  { %5402 = vmatprep.subr.bf16.mxu1 %v7021_v13 }
  0xf6   :  { %5404 = vmatpush1.bf16.msra.mxu1 %v7025_v46 }
  0xf7   :  { %5406 = vmatprep.subr.bf16.mxu1 %v7029_v47 }
  0xfa   :  { %5408 = vmatpush1.bf16.msra.mxu1 %v7032_v53 }
  0xfb   :  { %5410 = vmatprep.subr.bf16.mxu1 %v7035_v55 }
  0xfe   :  { %5412 = vmatpush1.bf16.msra.mxu1 %v7038_v1 }
  0xff   :  { %5414 = vmatprep.subr.bf16.mxu1 %v7041_v2 }
 0x102   :  { %5416 = vmatpush1.bf16.msra.mxu1 %v7044_v8 }
 0x103   :  { %5418 = vmatprep.subr.bf16.mxu1 %v7047_v9 }
 0x106   :  { %5420 = vmatpush1.bf16.msra.mxu1 %v7050_v19 }
 0x107   :  { %5422 = vmatprep.subr.bf16.mxu1 %v7053_v20 }
 0x10a   :  { %5424 = vmatpush1.bf16.msra.mxu1 %v7056_v27 }
 0x10b   :  { %5426 = vmatprep.subr.bf16.mxu1 %v7059_v28 }
 0x10e   :  { %5428 = vmatpush1.bf16.msra.mxu1 %v7062_v34 }
 0x10f   :  { %5462 = vmatprep.subr.bf16.mxu1 %v6958_v49  ;;  %v1434_v49 = vld [vmem:[#allocation14 + $0x8] sm:$0xff] }
 0x111   :  { %1378 = vmatmul.mubr.f32.vlgmr.msra.gmra.mrb[50].mxu1 %v8323_v32 }
 0x112   :  { %5464 = vmatpush1.bf16.msra.mxu1 %v6960_v56  ;;  %1632 = vmatprep.mubr.f32.mxu1 %v8323_v32  ;;  %v1438_v56 = vld [vmem:[#allocation14 + $0x28] sm:$0xff] }
 0x113   :  { %5466 = vmatprep.subr.bf16.mxu1 %v6963_v57  ;;  %v7085_v57 = vpack.c.bf16 %v1438_v56, %v1434_v49  ;;  %v1493_v49 = vld [vmem:[#allocation14 + $0x1e0] sm:$0xff]  ;;  %v200_v56 = vsub.s32 4, %v7125_v26 }
 0x115   :  { %5430 = vmatprep.subr.bf16.mxu0 %v7085_v57 }
 0x116   :  { %5468 = vmatpush1.bf16.msra.mxu1 %v6967_v62  ;;  %v1433_v62 = vld [vmem:[#allocation14] sm:$0xff] }
 0x117   :  { %5470 = vmatprep.subr.bf16.mxu1 %v6971_v63  ;;  %v1437_v63 = vld [vmem:[#allocation14 + $0x20] sm:$0xff] }
 0x11a   :  { %5472 = vmatpush1.bf16.msra.mxu1 %v6976_v12  ;;  %v7087_v12 = vpack.c.bf16 %v1437_v63, %v1433_v62  ;;  %v7132_v62 = vpack.c.bf16 %v1493_v49, %v1489_v31  ;;  %v184_v63 = vsub.s32 0, %v7125_v26 }
 0x11b   :  { %5474 = vmatprep.subr.bf16.mxu1 %v6979_v5  ;;  %v1442_v5 = vld [vmem:[#allocation14 + $0x48] sm:$0xff] }
 0x11c   :  { %5432 = vmatpush1.bf16.msra.mxu0 %v7087_v12 }
 0x11e   :  { %5476 = vmatpush1.bf16.msra.mxu1 %v6983_v10  ;;  %v1446_v10 = vld [vmem:[#allocation14 + $0x68] sm:$0xff] }
 0x11f   :  { %5478 = vmatprep.subr.bf16.mxu1 %v6987_v11  ;;  %v7091_v11 = vpack.c.bf16 %v1446_v10, %v1442_v5  ;;  %v204_v5 = vsub.s32 5, %v7125_v26  ;;  %v7137_v10 = vld [vmem:[#allocation13] sm:$0xff] }
 0x121   :  { %5434 = vmatprep.subr.bf16.mxu0 %v7091_v11 }
 0x122   :  { %5480 = vmatpush1.bf16.msra.mxu1 %v6990_v18  ;;  %v1441_v18 = vld [vmem:[#allocation14 + $0x40] sm:$0xff] }
 0x123   :  { %5482 = vmatprep.subr.bf16.mxu1 %v6993_v33  ;;  %v1445_v33 = vld [vmem:[#allocation14 + $0x60] sm:$0xff] }
 0x126   :  { %5484 = vmatpush1.bf16.msra.mxu1 %v6997_v23  ;;  %v7093_v23 = vpack.c.bf16 %v1445_v33, %v1441_v18  ;;  %v188_v18 = vsub.s32 1, %v7125_v26  ;;  %v7141_v33 = vrot.slane %v7137_v10, %v200_v56 }
 0x127   :  { %5486 = vmatprep.subr.bf16.mxu1 %v7001_v24  ;;  %v1450_v24 = vld [vmem:[#allocation14 + $0x88] sm:$0xff] }
 0x128   :  { %5436 = vmatpush1.bf16.msra.mxu0 %v7093_v23  ;;  %v7158_v44 = vrot.slane %v7137_v10, %v188_v18 }
 0x12a   :  { %5488 = vmatpush1.bf16.msra.mxu1 %v7004_v29  ;;  %v1454_v29 = vld [vmem:[#allocation14 + $0xa8] sm:$0xff] }
 0x12b   :  { %5490 = vmatprep.subr.bf16.mxu1 %v7007_v54  ;;  %v7097_v54 = vpack.c.bf16 %v1454_v29, %v1450_v24  ;;  %v1677_v24 = vld [vmem:[#allocation16 + $0x8] sm:$0xff] }
 0x12c   :  { %v1681_v29 = vld [vmem:[#allocation16 + $0x28] sm:$0xff] }
 0x12d   :  { %5438 = vmatprep.subr.bf16.mxu0 %v7097_v54  ;;  %v7150_v37 = vpack.c.bf16 %v1681_v29, %v1677_v24 }
 0x12e   :  { %5492 = vmatpush1.bf16.msra.mxu1 %v7011_v35  ;;  %v1453_v35 = vld [vmem:[#allocation14 + $0xa0] sm:$0xff] }
 0x12f   :  { %5526 = vmatprep.subr.bf16.mxu1 %v7015_v36  ;;  %v7099_v36 = vpack.c.bf16 %v1453_v35, %v1449_v0  ;;  %v7145_v0 = vrot.slane %v7137_v10, %v184_v63  ;;  %v7148_v35 = vrot.slane %v7137_v10, %v204_v5 }
 0x131   :  { %5440 = vmatpush1.bf16.msra.mxu0 %v7099_v36 }
 0x132   :  { %5442 = vmatprep.subr.bf16.mxu0 %v7103_v39 }
 0x135   :  { %5444 = vmatpush1.bf16.msra.mxu0 %v7105_v43 }
 0x136   :  { %5446 = vmatprep.subr.bf16.mxu0 %v7109_v48 }
 0x139   :  { %5448 = vmatpush1.bf16.msra.mxu0 %v7111_v52 }
 0x13a   :  { %5450 = vmatprep.subr.bf16.mxu0 %v7115_v61 }
 0x13d   :  { %5452 = vmatpush1.bf16.msra.mxu0 %v7117_v7 }
 0x13e   :  { %5454 = vmatprep.subr.bf16.mxu0 %v7120_v17 }
 0x141   :  { %5456 = vmatpush1.bf16.msra.mxu0 %v7123_v25 }
 0x142   :  { %5458 = vmatprep.subr.bf16.mxu0 %v7128_v30 }
 0x145   :  { %5460 = vmatpush1.bf16.msra.mxu0 %v7132_v62 }
 0x146   :  { %5494 = vmatprep.subr.bf16.mxu0 %v7150_v37 }
 0x164   :  { %v7152_v38 = vpop.f32.mrb[0].mxu1  ;;  %v746_v42 = vpop.f32.mrb[0].mxu0 }
 0x165   :  { %v7154_v40 = vpop.f32.mrb[1].mxu1  ;;  %v7161_v50 = vadd.f32 %v746_v42, %v7141_v33  ;;  %v748_v51 = vpop.f32.mrb[1].mxu0 }
 0x166   :  { %v604_v45 = vpop.f32.mrb[2].mxu1  ;;  %v7167_v60 = vadd.f32 %v748_v51, %v7148_v35  ;;  %v750_v3 = vpop.f32.mrb[2].mxu0 }
 0x167   :  { %8326 = vst [vmem:[#allocation25_spill] sm:$0xff] %v7161_v50  ;;  %v7164_v58 = vadd.f32 %v604_v45, %v7145_v0  ;;  %v606_v59 = vpop.f32.mrb[3].mxu1  ;;  %v7173_v6 = vadd.f32 %v750_v3, %v7141_v33  ;;  %v752_v14 = vpop.f32.mrb[3].mxu0 }
 0x168   :  { %8327 = vst [vmem:[#allocation26_spill] sm:$0xff] %v7167_v60  ;;  %v7170_v4 = vadd.f32 %v606_v59, %v7158_v44  ;;  %v7176_v15 = vadd.f32 %v752_v14, %v7148_v35 }
 0x169   :  { %8328 = vst [vmem:[#allocation27_spill] sm:$0xff] %v7173_v6 }
 0x16a   :  { %8329 = vst [vmem:[#allocation28_spill] sm:$0xff] %v7176_v15 }
 0x16c   :  { %v610_v16 = vpop.f32.mrb[4].mxu1  ;;  %v756_v31 = vpop.f32.mrb[4].mxu0 }
 0x16d   :  { %v7179_v21 = vadd.f32 %v610_v16, %v7145_v0  ;;  %v612_v22 = vpop.f32.mrb[5].mxu1  ;;  %v7185_v63 = vadd.f32 %v756_v31, %v7141_v33  ;;  %v758_v5 = vpop.f32.mrb[5].mxu0 }
 0x16e   :  { %v7182_v49 = vadd.f32 %v612_v22, %v7158_v44  ;;  %v614_v56 = vpop.f32.mrb[6].mxu1  ;;  %v7191_v29 = vadd.f32 %v758_v5, %v7148_v35  ;;  %v760_v42 = vpop.f32.mrb[6].mxu0 }
 0x16f   :  { %8330 = vst [vmem:[#allocation29_spill] sm:$0xff] %v7179_v21  ;;  %8332 = vst [vmem:[#allocation31_spill] sm:$0xff] %v7185_v63  ;;  %v7188_v18 = vadd.f32 %v614_v56, %v7145_v0  ;;  %v616_v24 = vpop.f32.mrb[7].mxu1  ;;  %v7197_v51 = vadd.f32 %v760_v42, %v7141_v33  ;;  %v762_v59 = vpop.f32.mrb[7].mxu0 }
 0x170   :  { %8331 = vst [vmem:[#allocation30_spill] sm:$0xff] %v7182_v49  ;;  %8334 = vst [vmem:[#allocation33_spill] sm:$0xff] %v7191_v29  ;;  %v7194_v45 = vadd.f32 %v616_v24, %v7158_v44  ;;  %v7200_v3 = vadd.f32 %v762_v59, %v7148_v35 }
 0x171   :  { %8333 = vst [vmem:[#allocation32_spill] sm:$0xff] %v7188_v18  ;;  %8336 = vst [vmem:[#allocation35_spill] sm:$0xff] %v7197_v51 }
 0x172   :  { %8335 = vst [vmem:[#allocation34_spill] sm:$0xff] %v7194_v45  ;;  %8337 = vst [vmem:[#allocation36_spill] sm:$0xff] %v7200_v3 }
 0x174   :  { %v620_v14 = vpop.f32.mrb[8].mxu1  ;;  %v766_v31 = vpop.f32.mrb[8].mxu0 }
 0x175   :  { %v7203_v16 = vadd.f32 %v620_v14, %v7145_v0  ;;  %v622_v22 = vpop.f32.mrb[9].mxu1  ;;  %v7209_v24 = vadd.f32 %v766_v31, %v7141_v33  ;;  %v768_v32 = vpop.f32.mrb[9].mxu0 }
 0x176   :  { %v7206_v56 = vadd.f32 %v622_v22, %v7158_v44  ;;  %v624_v5 = vpop.f32.mrb[10].mxu1  ;;  %v7215_v59 = vadd.f32 %v768_v32, %v7148_v35  ;;  %v770_v50 = vpop.f32.mrb[10].mxu0 }
 0x177   :  { %8338 = vst [vmem:[#allocation37_spill] sm:$0xff] %v7203_v16  ;;  %8340 = vst [vmem:[#allocation39_spill] sm:$0xff] %v7209_v24  ;;  %v7212_v42 = vadd.f32 %v624_v5, %v7145_v0  ;;  %v626_v60 = vpop.f32.mrb[11].mxu1  ;;  %v7221_v15 = vadd.f32 %v770_v50, %v7141_v33  ;;  %v772_v22 = vpop.f32.mrb[11].mxu0 }
 0x178   :  { %8339 = vst [vmem:[#allocation38_spill] sm:$0xff] %v7206_v56  ;;  %8342 = vst [vmem:[#allocation41_spill] sm:$0xff] %v7215_v59  ;;  %v7218_v14 = vadd.f32 %v626_v60, %v7158_v44  ;;  %v7224_v6 = vadd.f32 %v772_v22, %v7148_v35 }
 0x179   :  { %8341 = vst [vmem:[#allocation40_spill] sm:$0xff] %v7212_v42  ;;  %8344 = vst [vmem:[#allocation43_spill] sm:$0xff] %v7221_v15 }
 0x17a   :  { %8343 = vst [vmem:[#allocation42_spill] sm:$0xff] %v7218_v14  ;;  %8345 = vst [vmem:[#allocation44_spill] sm:$0xff] %v7224_v6 }
 0x17c   :  { %v630_v31 = vpop.f32.mrb[12].mxu1  ;;  %v776_v63 = vpop.f32.mrb[12].mxu0 }
 0x17d   :  { %v7227_v29 = vadd.f32 %v630_v31, %v7145_v0  ;;  %v632_v5 = vpop.f32.mrb[13].mxu1  ;;  %v7233_v60 = vadd.f32 %v776_v63, %v7141_v33  ;;  %v778_v14 = vpop.f32.mrb[13].mxu0  ;;  %v192_v31 = vsub.s32 2, %v7125_v26 }
 0x17e   :  { %v7230_v32 = vadd.f32 %v632_v5, %v7158_v44  ;;  %v634_v42 = vpop.f32.mrb[14].mxu1  ;;  %v7239_v22 = vadd.f32 %v778_v14, %v7148_v35  ;;  %v780_v51 = vpop.f32.mrb[14].mxu0  ;;  %v603_v14 = vadd.f32 %v7154_v40, %v7158_v44 }
 0x17f   :  { %8346 = vst [vmem:[#allocation45_spill] sm:$0xff] %v7227_v29  ;;  %v7236_v50 = vadd.f32 %v634_v42, %v7145_v0  ;;  %v636_v3 = vpop.f32.mrb[15].mxu1  ;;  %v782_v5 = vpop.f32.mrb[15].mxu0  ;;  %v7247_v63 = vrot.slane %v7137_v10, %v192_v31  ;;  %v601_v42 = vadd.f32 %v7152_v38, %v7145_v0 }
 0x180   :  { %8347 = vst [vmem:[#allocation46_spill] sm:$0xff] %v7230_v32  ;;  %8349 = vst [vmem:[#allocation48_spill] sm:$0xff] %v7239_v22  ;;  %v7243_v29 = vadd.f32 %v636_v3, %v7158_v44  ;;  %v196_v32 = vsub.s32 3, %v7125_v26 }
 0x181   :  { %8348 = vst [vmem:[#allocation47_spill] sm:$0xff] %v7236_v50 }
 0x182   :  { %8350 = vst [vmem:[#allocation49_spill] sm:$0xff] %v7243_v29  ;;  %v7258_v3 = vrot.slane %v7137_v10, %v196_v32 }
 0x184   :  { %v7251_v50 = vpop.f32.mrb[16].mxu1  ;;  %v1065_v56 = vpop.f32.mrb[16].mxu0 }
 0x185   :  { %v7255_v16 = vpop.f32.mrb[17].mxu1  ;;  %v1141_v59 = vadd.f32 %v1065_v56, %v601_v42  ;;  %v1067_v29 = vpop.f32.mrb[17].mxu0 }
 0x186   :  { %v677_v24 = vpop.f32.mrb[18].mxu1  ;;  %v1142_v45 = vadd.f32 %v1067_v29, %v603_v14 }
 0x187   :  { %v7261_v31 = vadd.f32 %v677_v24, %v7247_v63  ;;  %v679_v18 = vpop.f32.mrb[19].mxu1 }
 0x188   :  { %v7264_v0 = vadd.f32 %v679_v18, %v7258_v3 }
 0x18c   :  { %v683_v38 = vpop.f32.mrb[20].mxu1 }
 0x18d   :  { %v7267_v40 = vadd.f32 %v683_v38, %v7247_v63  ;;  %v685_v44 = vpop.f32.mrb[21].mxu1 }
 0x18e   :  { %v7270_v56 = vadd.f32 %v685_v44, %v7258_v3  ;;  %v687_v32 = vpop.f32.mrb[22].mxu1 }
 0x18f   :  { %8351 = vst [vmem:[#allocation50_spill] sm:$0xff] %v7267_v40  ;;  %v7273_v42 = vadd.f32 %v687_v32, %v7247_v63  ;;  %v689_v29 = vpop.f32.mrb[23].mxu1 }
 0x190   :  { %8352 = vst [vmem:[#allocation51_spill] sm:$0xff] %v7270_v56  ;;  %v7276_v24 = vadd.f32 %v689_v29, %v7258_v3 }
 0x191   :  { %8353 = vst [vmem:[#allocation52_spill] sm:$0xff] %v7273_v42 }
 0x192   :  { %8354 = vst [vmem:[#allocation53_spill] sm:$0xff] %v7276_v24 }
 0x194   :  { %v693_v14 = vpop.f32.mrb[24].mxu1 }
 0x195   :  { %v7279_v18 = vadd.f32 %v693_v14, %v7247_v63  ;;  %v695_v6 = vpop.f32.mrb[25].mxu1  ;;  %v208_v14 = vsub.s32 6, %v7125_v26 }
 0x196   :  { %v7282_v38 = vadd.f32 %v695_v6, %v7258_v3  ;;  %v697_v15 = vpop.f32.mrb[26].mxu1 }
 0x197   :  { %8355 = vst [vmem:[#allocation54_spill] sm:$0xff] %v7279_v18  ;;  %v7285_v44 = vadd.f32 %v697_v15, %v7247_v63  ;;  %v699_v56 = vpop.f32.mrb[27].mxu1 }
 0x198   :  { %8356 = vst [vmem:[#allocation55_spill] sm:$0xff] %v7282_v38  ;;  %v7288_v32 = vadd.f32 %v699_v56, %v7258_v3  ;;  %v212_v38 = vsub.s32 7, %v7125_v26 }
 0x199   :  { %8357 = vst [vmem:[#allocation56_spill] sm:$0xff] %v7285_v44 }
 0x19a   :  { %8358 = vst [vmem:[#allocation57_spill] sm:$0xff] %v7288_v32  ;;  %v7305_v32 = vrot.slane %v7137_v10, %v208_v14 }
 0x19c   :  { %v703_v42 = vpop.f32.mrb[28].mxu1 }
 0x19d   :  { %v7291_v29 = vadd.f32 %v703_v42, %v7247_v63  ;;  %v705_v24 = vpop.f32.mrb[29].mxu1  ;;  %v7308_v42 = vrot.slane %v7137_v10, %v212_v38 }
 0x19e   :  { %v7295_v18 = vadd.f32 %v705_v24, %v7258_v3  ;;  %v707_v6 = vpop.f32.mrb[30].mxu1  ;;  %v783_v24 = vadd.f32 %v782_v5, %v7148_v35 }
 0x19f   :  { %8359 = vst [vmem:[#allocation58_spill] sm:$0xff] %v7291_v29  ;;  %v7299_v15 = vadd.f32 %v707_v6, %v7247_v63  ;;  %v709_v44 = vpop.f32.mrb[31].mxu1  ;;  %v781_v29 = vadd.f32 %v780_v51, %v7141_v33 }
 0x1a0   :  { %8360 = vst [vmem:[#allocation59_spill] sm:$0xff] %v7295_v18  ;;  %v7302_v56 = vadd.f32 %v709_v44, %v7258_v3 }
 0x1a1   :  { %8361 = vst [vmem:[#allocation60_spill] sm:$0xff] %v7299_v15 }
 0x1a2   :  { %8362 = vst [vmem:[#allocation61_spill] sm:$0xff] %v7302_v56 }
 0x1a4   :  { %v819_v18 = vpop.f32.mrb[32].mxu1 }
 0x1a5   :  { %v7313_v26 = vadd.f32 %v819_v18, %v7305_v32  ;;  %v821_v6 = vpop.f32.mrb[33].mxu1 }
 0x1a6   :  { %v7316_v15 = vadd.f32 %v821_v6, %v7308_v42  ;;  %v823_v44 = vpop.f32.mrb[34].mxu1  ;;  %v1308_v56 = vpop.f32.mrb[18].mxu0 }
 0x1a7   :  { %8363 = vst [vmem:[#allocation62_spill] sm:$0xff] %v7313_v26  ;;  %v7319_v14 = vadd.f32 %v823_v44, %v7305_v32  ;;  %v825_v49 = vpop.f32.mrb[35].mxu1  ;;  %v1384_v10 = vadd.f32 %v1308_v56, %v781_v29  ;;  %v1310_v38 = vpop.f32.mrb[19].mxu0 }
 0x1a8   :  { %8364 = vst [vmem:[#allocation63_spill] sm:$0xff] %v7316_v15  ;;  %v7322_v33 = vadd.f32 %v825_v49, %v7308_v42  ;;  %v1385_v35 = vadd.f32 %v1310_v38, %v783_v24  ;;  %v5196_v49 = vmul.f32 -1.442695, %v1141_v59 }
 0x1a9   :  { %8365 = vst [vmem:[#allocation64_spill] sm:$0xff] %v7319_v14  ;;  %v5197_v14 = vmul.f32 -1.442695, %v1142_v45 }
 0x1aa   :  { %8366 = vst [vmem:[#allocation65_spill] sm:$0xff] %v7322_v33  ;;  %v5200_v21 = vmul.f32 -1.442695, %v1385_v35 }
 0x1ab   :  { %6360 = vpow2.f32 %v5197_v14 }
 0x1ac   :  { %v829_v51 = vpop.f32.mrb[36].mxu1  ;;  %6362 = vpow2.f32 %v5196_v49 }
 0x1ad   :  { %v7325_v5 = vadd.f32 %v829_v51, %v7305_v32  ;;  %v831_v18 = vpop.f32.mrb[37].mxu1 }
 0x1ae   :  { %v7328_v6 = vadd.f32 %v831_v18, %v7308_v42  ;;  %v833_v15 = vpop.f32.mrb[38].mxu1 }
 0x1af   :  { %8367 = vst [vmem:[#allocation66_spill] sm:$0xff] %v7325_v5  ;;  %v7331_v26 = vadd.f32 %v833_v15, %v7305_v32  ;;  %v835_v44 = vpop.f32.mrb[39].mxu1 }
 0x1b0   :  { %8368 = vst [vmem:[#allocation67_spill] sm:$0xff] %v7328_v6  ;;  %v7334_v29 = vadd.f32 %v835_v44, %v7308_v42 }
 0x1b1   :  { %8369 = vst [vmem:[#allocation68_spill] sm:$0xff] %v7331_v26 }
 0x1b2   :  { %8370 = vst [vmem:[#allocation69_spill] sm:$0xff] %v7334_v29 }
 0x1b4   :  { %v839_v56 = vpop.f32.mrb[40].mxu1 }
 0x1b5   :  { %v7337_v24 = vadd.f32 %v839_v56, %v7305_v32  ;;  %v841_v38 = vpop.f32.mrb[41].mxu1  ;;  %v6361_v49 = vpop.eup %6360 }
 0x1b6   :  { %v7340_v51 = vadd.f32 %v841_v38, %v7308_v42  ;;  %v843_v18 = vpop.f32.mrb[42].mxu1  ;;  %v6363_v38 = vpop.eup %6362  ;;  %v1154_v29 = vadd.f32 1.0, %v6361_v49 }
 0x1b7   :  { %8371 = vst [vmem:[#allocation70_spill] sm:$0xff] %v7337_v24  ;;  %v7343_v15 = vadd.f32 %v843_v18, %v7305_v32  ;;  %v845_v33 = vpop.f32.mrb[43].mxu1  ;;  %v1148_v26 = vadd.f32 1.0, %v6363_v38  ;;  %v674_v18 = vadd.f32 %v7251_v50, %v7247_v63  ;;  %v5199_v38 = vmul.f32 -1.442695, %v1384_v10 }
 0x1b8   :  { %8372 = vst [vmem:[#allocation71_spill] sm:$0xff] %v7340_v51  ;;  %v7346_v45 = vadd.f32 %v845_v33, %v7308_v42  ;;  %v676_v33 = vadd.f32 %v7255_v16, %v7258_v3  ;;  %6364 = vrcp.f32 %v1154_v29  ;;  %v1680_v29 = vld [vmem:[#allocation16 + $0x20] sm:$0xff] }
 0x1b9   :  { %8373 = vst [vmem:[#allocation72_spill] sm:$0xff] %v7343_v15  ;;  %6366 = vrcp.f32 %v1148_v26  ;;  %v1676_v26 = vld [vmem:[#allocation16] sm:$0xff] }
 0x1ba   :  { %8374 = vst [vmem:[#allocation73_spill] sm:$0xff] %v7346_v45 }
 0x1bc   :  { %v849_v44 = vpop.f32.mrb[44].mxu1 }
 0x1bd   :  { %v7349_v59 = vadd.f32 %v849_v44, %v7305_v32  ;;  %v851_v14 = vpop.f32.mrb[45].mxu1 }
 0x1be   :  { %v7352_v56 = vadd.f32 %v851_v14, %v7308_v42  ;;  %v853_v6 = vpop.f32.mrb[46].mxu1 }
 0x1bf   :  { %v855_v5 = vpop.f32.mrb[47].mxu1 }
 0x1c0   :  { %8375 = vst [vmem:[#allocation74_spill] sm:$0xff] %v7352_v56 }
 0x1c2   :  { %v6365_v15 = vpop.eup %6364 }
 0x1c3   :  { %v6367_v40 = vpop.eup %6366  ;;  %v1164_v56 = vmul.f32 0.0, %v6365_v15  ;;  %v7361_v15 = vpack.c.bf16 %v1680_v29, %v1676_v26  ;;  %v1701_v29 = vld [vmem:[#allocation16 + $0xc8] sm:$0xff] }
 0x1c4   :  { %v1136_v51 = vpop.f32.mrb[48].mxu1 }
 0x1c5   :  { %v1143_v44 = vadd.f32 %v1136_v51, %v674_v18  ;;  %v1138_v24 = vpop.f32.mrb[49].mxu1  ;;  %v1685_v51 = vld [vmem:[#allocation16 + $0x48] sm:$0xff] }
 0x1c6   :  { %v1144_v45 = vadd.f32 %v1138_v24, %v676_v33  ;;  %v1688_v33 = vld [vmem:[#allocation16 + $0x60] sm:$0xff] }
 0x1c7   :  { %6368 = vtanh.f32 %v1143_v44  ;;  %v854_v44 = vadd.f32 %v853_v6, %v7305_v32  ;;  %v1696_v6 = vld [vmem:[#allocation16 + $0xa0] sm:$0xff] }
 0x1c8   :  { %v5198_v14 = vmul.f32 -1.442695, %v1144_v45  ;;  %v1689_v45 = vld [vmem:[#allocation16 + $0x68] sm:$0xff] }
 0x1ca   :  { %6370 = vpow2.f32 %v5198_v14  ;;  %v1693_v14 = vld [vmem:[#allocation16 + $0x88] sm:$0xff] }
 0x1cb   :  { %6372 = vpow2.f32 %v5200_v21 }
 0x1cc   :  { %6374 = vpow2.f32 %v5199_v38  ;;  %v856_v38 = vadd.f32 %v855_v5, %v7308_v42  ;;  %v1692_v5 = vld [vmem:[#allocation16 + $0x80] sm:$0xff] }
 0x1d1   :  { %v6369_v49 = vpop.eup %6368 }
 0x1d2   :  { %v1165_v22 = vmul.f32 %v6369_v49, %v6367_v40  ;;  %v1697_v49 = vld [vmem:[#allocation16 + $0xa8] sm:$0xff] }
 0x1d3   :  { %v7377_v42 = vpack.c.bf16 %v1697_v49, %v1693_v14  ;;  %v1717_v14 = vld [vmem:[#allocation16 + $0x148] sm:$0xff] }
 0x1d4   :  { %v6371_v50 = vpop.eup %6370  ;;  %v7358_v63 = vadd.f32 %v1165_v22, %v1164_v56  ;;  %v7365_v22 = vpack.c.bf16 %v1689_v45, %v1685_v51  ;;  %v1684_v56 = vld [vmem:[#allocation16 + $0x40] sm:$0xff]  ;;  %v8376_v51 = vmov 0.0   ;;  %v7383_v45 = vpack.c.bf16 %v1696_v6, %v1692_v5  ;;  %v1721_v49 = vld [vmem:[#allocation16 + $0x168] sm:$0xff] }
 0x1d5   :  { %v1161_v16 = vadd.f32 1.0, %v6371_v50  ;;  %v6373_v3 = vpop.eup %6372  ;;  %v7373_v26 = vpack.c.bf16 %v1688_v33, %v1684_v56  ;;  %v1708_v33 = vld [vmem:[#allocation16 + $0x100] sm:$0xff]  ;;  %v1725_v6 = vld [vmem:[#allocation16 + $0x188] sm:$0xff] }
 0x1d6   :  { %6376 = vtanh.f32 %v7358_v63  ;;  %v6375_v24 = vpop.eup %6374  ;;  %v1397_v10 = vadd.f32 1.0, %v6373_v3  ;;  %v1720_v5 = vld [vmem:[#allocation16 + $0x160] sm:$0xff] }
 0x1d7   :  { %6378 = vrcp.f32 %v1161_v16  ;;  %v1391_v40 = vadd.f32 1.0, %v6375_v24  ;;  %v1705_v24 = vld [vmem:[#allocation16 + $0xe8] sm:$0xff] }
 0x1d8   :  { %6380 = vrcp.f32 %v1397_v10  ;;  %v1709_v10 = vld [vmem:[#allocation16 + $0x108] sm:$0xff] }
 0x1d9   :  { %6382 = vrcp.f32 %v1391_v40  ;;  %v1713_v40 = vld [vmem:[#allocation16 + $0x128] sm:$0xff] }
 0x1e0   :  { %v6377_v35 = vpop.eup %6376 }
 0x1e1   :  { %v6379_v18 = vpop.eup %6378 }
 0x1e2   :  { %v7363_v21 = vmul.f32 %v6379_v18, %v6377_v35  ;;  %v1700_v35 = vld [vmem:[#allocation16 + $0xc0] sm:$0xff] }
 0x1e3   :  { %v1704_v18 = vld [vmem:[#allocation16 + $0xe0] sm:$0xff] }
 0x1e4   :  { %v1379_v50 = vpop.f32.mrb[50].mxu1  ;;  %1562 = vmatmul.mubr.f32.vlgmr.msra.gmra.mrb[20].mxu0 %v7363_v21  ;;  %1633 = vmatmul.mubr.f32.vlgmr.msra.gmra.mrb[52].mxu1 %v7363_v21  ;;  %v7391_v56 = vpack.c.bf16 %v1704_v18, %v1700_v35  ;;  %v1724_v18 = vld [vmem:[#allocation16 + $0x180] sm:$0xff] }
 0x1e5   :  { %v1386_v16 = vadd.f32 %v1379_v50, %v854_v44  ;;  %v1381_v3 = vpop.f32.mrb[51].mxu1  ;;  %5496 = vmatpush1.bf16.msra.mxu0 %v7361_v15  ;;  %5528 = vmatpush1.bf16.msra.mxu1 %v7018_v41  ;;  %v6381_v44 = vpop.eup %6380 }
 0x1e6   :  { %v1387_v32 = vadd.f32 %v1381_v3, %v856_v38  ;;  %5498 = vmatprep.subr.bf16.mxu0 %v7365_v22  ;;  %5530 = vmatprep.subr.bf16.mxu1 %v7021_v13  ;;  %v7387_v13 = vpack.c.bf16 %v1705_v24, %v1701_v29  ;;  %v6383_v38 = vpop.eup %6382  ;;  %v1729_v29 = vld [vmem:[#allocation16 + $0x1a8] sm:$0xff] }
 0x1e7   :  { %6384 = vtanh.f32 %v1386_v16  ;;  %1804 = vmatprep.mubr.f32.mxu0 %v8376_v51  ;;  %1875 = vmatprep.mubr.f32.mxu1 %v8376_v51  ;;  %v1407_v16 = vmul.f32 0.0, %v6381_v44  ;;  %v1736_v44 = vld [vmem:[#allocation16 + $0x1e0] sm:$0xff] }
 0x1e8   :  { %v5201_v41 = vmul.f32 -1.442695, %v1387_v32  ;;  %v1716_v32 = vld [vmem:[#allocation16 + $0x140] sm:$0xff] }
 0x1e9   :  { %5500 = vmatpush1.bf16.msra.mxu0 %v7373_v26  ;;  %5532 = vmatpush1.bf16.msra.mxu1 %v7025_v46  ;;  %v7395_v46 = vpack.c.bf16 %v1713_v40, %v1709_v10  ;;  %v1728_v10 = vld [vmem:[#allocation16 + $0x1a0] sm:$0xff]  ;;  %v1733_v40 = vld [vmem:[#allocation16 + $0x1c8] sm:$0xff] }
 0x1ea   :  { %6386 = vpow2.f32 %v5201_v41  ;;  %5502 = vmatprep.subr.bf16.mxu0 %v7377_v42  ;;  %5534 = vmatprep.subr.bf16.mxu1 %v7029_v47  ;;  %v1712_v47 = vld [vmem:[#allocation16 + $0x120] sm:$0xff] }
 0x1ed   :  { %5504 = vmatpush1.bf16.msra.mxu0 %v7383_v45  ;;  %5536 = vmatpush1.bf16.msra.mxu1 %v7032_v53  ;;  %v7399_v53 = vpack.c.bf16 %v1712_v47, %v1708_v33  ;;  %v1737_v33 = vld [vmem:[#allocation16 + $0x1e8] sm:$0xff] }
 0x1ee   :  { %5506 = vmatprep.subr.bf16.mxu0 %v7387_v13  ;;  %5538 = vmatprep.subr.bf16.mxu1 %v7035_v55  ;;  %v7403_v55 = vpack.c.bf16 %v1721_v49, %v1717_v14  ;;  %v7422_v47 = vpack.c.bf16 %v1737_v33, %v1733_v40  ;;  %v1973_v33 = vld [vmem:[#allocation14 + $0x150] sm:$0xff] }
 0x1f1   :  { %v6385_v50 = vpop.eup %6384  ;;  %5508 = vmatpush1.bf16.msra.mxu0 %v7391_v56  ;;  %5540 = vmatpush1.bf16.msra.mxu1 %v7038_v1  ;;  %v7409_v1 = vpack.c.bf16 %v1720_v5, %v1716_v32  ;;  %v1966_v32 = vld [vmem:[#allocation14 + $0x118] sm:$0xff] }
 0x1f2   :  { %v1408_v3 = vmul.f32 %v6385_v50, %v6383_v38  ;;  %5510 = vmatprep.subr.bf16.mxu0 %v7395_v46  ;;  %5542 = vmatprep.subr.bf16.mxu1 %v7041_v2  ;;  %v7414_v2 = vpack.c.bf16 %v1729_v29, %v1725_v6  ;;  %v1957_v50 = vld [vmem:[#allocation14 + $0xd0] sm:$0xff]  ;;  %v1970_v5 = vld [vmem:[#allocation14 + $0x138] sm:$0xff] }
 0x1f3   :  { %v7479_v6 = vpack.c.bf16 %v1970_v5, %v1966_v32  ;;  %v1965_v29 = vld [vmem:[#allocation14 + $0x110] sm:$0xff] }
 0x1f4   :  { %v6387_v24 = vpop.eup %6386  ;;  %v7405_v41 = vadd.f32 %v1408_v3, %v1407_v16  ;;  %v1961_v16 = vld [vmem:[#allocation14 + $0xf0] sm:$0xff] }
 0x1f5   :  { %v1404_v35 = vadd.f32 1.0, %v6387_v24  ;;  %5512 = vmatpush1.bf16.msra.mxu0 %v7399_v53  ;;  %5544 = vmatpush1.bf16.msra.mxu1 %v7044_v8  ;;  %v7418_v8 = vpack.c.bf16 %v1728_v10, %v1724_v18  ;;  %v7475_v3 = vpack.c.bf16 %v1961_v16, %v1957_v50  ;;  %v1969_v24 = vld [vmem:[#allocation14 + $0x130] sm:$0xff]  ;;  %v1974_v18 = vld [vmem:[#allocation14 + $0x158] sm:$0xff] }
 0x1f6   :  { %6388 = vtanh.f32 %v7405_v41  ;;  %5514 = vmatprep.subr.bf16.mxu0 %v7403_v55  ;;  %5546 = vmatprep.subr.bf16.mxu1 %v7047_v9  ;;  %v1732_v9 = vld [vmem:[#allocation16 + $0x1c0] sm:$0xff]  ;;  %v1978_v10 = vld [vmem:[#allocation14 + $0x178] sm:$0xff] }
 0x1f7   :  { %6390 = vrcp.f32 %v1404_v35  ;;  %v7426_v14 = vpack.c.bf16 %v1736_v44, %v1732_v9  ;;  %v7481_v35 = vpack.c.bf16 %v1969_v24, %v1965_v29  ;;  %v7485_v40 = vpack.c.bf16 %v1978_v10, %v1974_v18  ;;  %v1977_v9 = vld [vmem:[#allocation14 + $0x170] sm:$0xff] }
 0x1f8   :  { %v7487_v44 = vpack.c.bf16 %v1977_v9, %v1973_v33 }
 0x1f9   :  { %5516 = vmatpush1.bf16.msra.mxu0 %v7409_v1  ;;  %5548 = vmatpush1.bf16.msra.mxu1 %v7050_v19 }
 0x1fa   :  { %5518 = vmatprep.subr.bf16.mxu0 %v7414_v2  ;;  %5550 = vmatprep.subr.bf16.mxu1 %v7053_v20 }
 0x1fd   :  { %5520 = vmatpush1.bf16.msra.mxu0 %v7418_v8  ;;  %5552 = vmatpush1.bf16.msra.mxu1 %v7056_v27  ;;  %v1934_v27 = vld [vmem:[#allocation14 + $0x18] sm:$0xff] }
 0x1fe   :  { %5522 = vmatprep.subr.bf16.mxu0 %v7422_v47  ;;  %5554 = vmatprep.subr.bf16.mxu1 %v7059_v28  ;;  %v1938_v28 = vld [vmem:[#allocation14 + $0x38] sm:$0xff] }
 0x200   :  { %v6389_v19 = vpop.eup %6388 }
 0x201   :  { %v6391_v49 = vpop.eup %6390  ;;  %5524 = vmatpush1.bf16.msra.mxu0 %v7426_v14  ;;  %5556 = vmatpush1.bf16.msra.mxu1 %v7062_v34  ;;  %v7455_v34 = vpack.c.bf16 %v1938_v28, %v1934_v27  ;;  %v1981_v28 = vld [vmem:[#allocation14 + $0x190] sm:$0xff] }
 0x202   :  { %v7432_v20 = vmul.f32 %v6391_v49, %v6389_v19  ;;  %5558 = vmatprep.subr.bf16.mxu0 %v7085_v57  ;;  %v1933_v57 = vld [vmem:[#allocation14 + $0x10] sm:$0xff]  ;;  %v1982_v19 = vld [vmem:[#allocation14 + $0x198] sm:$0xff] }
 0x203   :  { %5590 = vmatprep.subr.bf16.mxu1 %v7455_v34  ;;  %v1986_v49 = vld [vmem:[#allocation14 + $0x1b8] sm:$0xff] }
 0x204   :  { %8377 = vst [vmem:[#allocation75_spill] sm:$0xff] %v7432_v20  ;;  %1805 = vmatmul.mubr.f32.vlgmr.msra.gmra.mrb[22].mxu0 %v7432_v20  ;;  %1876 = vmatmul.mubr.f32.vlgmr.msra.gmra.mrb[54].mxu1 %v7432_v20  ;;  %v7491_v27 = vpack.c.bf16 %v1986_v49, %v1982_v19 }
 0x205   :  { %5560 = vmatpush1.bf16.msra.mxu0 %v7087_v12  ;;  %2059 = vmatprep.mubr.f32.mxu0 %v8376_v51  ;;  %v1937_v12 = vld [vmem:[#allocation14 + $0x30] sm:$0xff] }
 0x206   :  { %5562 = vmatprep.subr.bf16.mxu0 %v7091_v11  ;;  %2130 = vmatprep.mubr.f32.mxu1 %v8376_v51  ;;  %v7457_v11 = vpack.c.bf16 %v1937_v12, %v1933_v57  ;;  %v1985_v57 = vld [vmem:[#allocation14 + $0x1b0] sm:$0xff] }
 0x207   :  { %v7493_v12 = vpack.c.bf16 %v1985_v57, %v1981_v28 }
 0x208   :  { %5592 = vmatpush1.bf16.msra.mxu1 %v7457_v11 }
 0x209   :  { %5564 = vmatpush1.bf16.msra.mxu0 %v7093_v23  ;;  %v1942_v23 = vld [vmem:[#allocation14 + $0x58] sm:$0xff] }
 0x20a   :  { %5566 = vmatprep.subr.bf16.mxu0 %v7097_v54  ;;  %v1946_v54 = vld [vmem:[#allocation14 + $0x78] sm:$0xff] }
 0x20d   :  { %5568 = vmatpush1.bf16.msra.mxu0 %v7099_v36  ;;  %v7461_v36 = vpack.c.bf16 %v1946_v54, %v1942_v23  ;;  %v1990_v23 = vld [vmem:[#allocation14 + $0x1d8] sm:$0xff] }
 0x20e   :  { %5570 = vmatprep.subr.bf16.mxu0 %v7103_v39  ;;  %v1941_v39 = vld [vmem:[#allocation14 + $0x50] sm:$0xff]  ;;  %v1994_v54 = vld [vmem:[#allocation14 + $0x1f8] sm:$0xff] }
 0x20f   :  { %5594 = vmatprep.subr.bf16.mxu1 %v7461_v36 }
 0x211   :  { %5572 = vmatpush1.bf16.msra.mxu0 %v7105_v43  ;;  %v1945_v43 = vld [vmem:[#allocation14 + $0x70] sm:$0xff] }
 0x212   :  { %5574 = vmatprep.subr.bf16.mxu0 %v7109_v48  ;;  %v7463_v48 = vpack.c.bf16 %v1945_v43, %v1941_v39  ;;  %v7497_v39 = vpack.c.bf16 %v1994_v54, %v1990_v23  ;;  %v1989_v43 = vld [vmem:[#allocation14 + $0x1d0] sm:$0xff] }
 0x214   :  { %5596 = vmatpush1.bf16.msra.mxu1 %v7463_v48 }
 0x215   :  { %5576 = vmatpush1.bf16.msra.mxu0 %v7111_v52  ;;  %v1950_v52 = vld [vmem:[#allocation14 + $0x98] sm:$0xff] }
 0x216   :  { %5578 = vmatprep.subr.bf16.mxu0 %v7115_v61  ;;  %v1954_v61 = vld [vmem:[#allocation14 + $0xb8] sm:$0xff] }
 0x219   :  { %5580 = vmatpush1.bf16.msra.mxu0 %v7117_v7  ;;  %v7467_v7 = vpack.c.bf16 %v1954_v61, %v1950_v52  ;;  %v1993_v52 = vld [vmem:[#allocation14 + $0x1f0] sm:$0xff] }
 0x21a   :  { %5582 = vmatprep.subr.bf16.mxu0 %v7120_v17  ;;  %v1949_v17 = vld [vmem:[#allocation14 + $0x90] sm:$0xff]  ;;  %v7499_v61 = vpack.c.bf16 %v1993_v52, %v1989_v43 }
 0x21b   :  { %5598 = vmatprep.subr.bf16.mxu1 %v7467_v7 }
 0x21d   :  { %5584 = vmatpush1.bf16.msra.mxu0 %v7123_v25  ;;  %v1953_v25 = vld [vmem:[#allocation14 + $0xb0] sm:$0xff] }
 0x21e   :  { %5586 = vmatprep.subr.bf16.mxu0 %v7128_v30  ;;  %v7469_v30 = vpack.c.bf16 %v1953_v25, %v1949_v17  ;;  %v2177_v17 = vld [vmem:[#allocation16 + $0x18] sm:$0xff] }
 0x21f   :  { %v2181_v25 = vld [vmem:[#allocation16 + $0x38] sm:$0xff] }
 0x220   :  { %5600 = vmatpush1.bf16.msra.mxu1 %v7469_v30 }
 0x221   :  { %5588 = vmatpush1.bf16.msra.mxu0 %v7132_v62  ;;  %v1958_v62 = vld [vmem:[#allocation14 + $0xd8] sm:$0xff] }
 0x222   :  { %5622 = vmatprep.subr.bf16.mxu0 %v7150_v37  ;;  %v1962_v37 = vld [vmem:[#allocation14 + $0xf8] sm:$0xff] }
 0x223   :  { %v7473_v38 = vpack.c.bf16 %v1962_v37, %v1958_v62  ;;  %v7503_v62 = vpack.c.bf16 %v2181_v25, %v2177_v17 }
 0x225   :  { %5602 = vmatprep.subr.bf16.mxu1 %v7473_v38 }
 0x226   :  { %5604 = vmatpush1.bf16.msra.mxu1 %v7475_v3 }
 0x227   :  { %5606 = vmatprep.subr.bf16.mxu1 %v7479_v6 }
 0x22a   :  { %5608 = vmatpush1.bf16.msra.mxu1 %v7481_v35 }
 0x22b   :  { %5610 = vmatprep.subr.bf16.mxu1 %v7485_v40 }
 0x22e   :  { %5612 = vmatpush1.bf16.msra.mxu1 %v7487_v44 }
 0x22f   :  { %5614 = vmatprep.subr.bf16.mxu1 %v7491_v27 }
 0x232   :  { %5616 = vmatpush1.bf16.msra.mxu1 %v7493_v12 }
 0x233   :  { %5618 = vmatprep.subr.bf16.mxu1 %v7497_v39 }
 0x236   :  { %5620 = vmatpush1.bf16.msra.mxu1 %v7499_v61 }
 0x237   :  { %5654 = vmatprep.subr.bf16.mxu1 %v7503_v62 }
 0x2b7   :  { %v1563_v37 = vpop.f32.mrb[20].mxu0  ;;  %v1634_v50 = vpop.f32.mrb[52].mxu1 }
 0x2b8   :  { %v1639_v16 = vadd.f32 %v1563_v37, %v7164_v58  ;;  %v1641_v32 = vadd.f32 %v1634_v50, %v7261_v31  ;;  %v1565_v5 = vpop.f32.mrb[21].mxu0  ;;  %v1636_v29 = vpop.f32.mrb[53].mxu1 }
 0x2b9   :  { %v1640_v24 = vadd.f32 %v1565_v5, %v7170_v4  ;;  %v1642_v18 = vadd.f32 %v1636_v29, %v7264_v0  ;;  %v8378_v5 = vld [vmem:[#allocation48_spill] sm:$0xff] }
 0x2ba   :  { %v5202_v10 = vmul.f32 -1.442695, %v1639_v16 }
 0x2bb   :  { %v5203_v33 = vmul.f32 -1.442695, %v1640_v24  ;;  %v5204_v9 = vmul.f32 -1.442695, %v1642_v18  ;;  %v8379_v24 = vld [vmem:[#allocation74_spill] sm:$0xff] }
 0x2bc   :  { %6392 = vpow2.f32 %v5202_v10 }
 0x2bd   :  { %6394 = vpow2.f32 %v5203_v33 }
 0x2be   :  { %6396 = vpow2.f32 %v5204_v9  ;;  %v2180_v9 = vld [vmem:[#allocation16 + $0x30] sm:$0xff] }
 0x2bf   :  { %6398 = vtanh.f32 %v1641_v32 }
 0x2c6   :  { %v6393_v19 = vpop.eup %6392 }
 0x2c7   :  { %v6395_v49 = vpop.eup %6394  ;;  %v1646_v28 = vadd.f32 1.0, %v6393_v19  ;;  %v2185_v19 = vld [vmem:[#allocation16 + $0x58] sm:$0xff] }
 0x2c8   :  { %v1652_v57 = vadd.f32 1.0, %v6395_v49  ;;  %v6397_v58 = vpop.eup %6396  ;;  %v2189_v49 = vld [vmem:[#allocation16 + $0x78] sm:$0xff] }
 0x2c9   :  { %6400 = vrcp.f32 %v1646_v28  ;;  %v6399_v31 = vpop.eup %6398  ;;  %v1659_v43 = vadd.f32 1.0, %v6397_v58 }
 0x2ca   :  { %6402 = vrcp.f32 %v1652_v57 }
 0x2cb   :  { %6404 = vrcp.f32 %v1659_v43  ;;  %v2197_v43 = vld [vmem:[#allocation16 + $0xb8] sm:$0xff] }
 0x2d3   :  { %v6401_v23 = vpop.eup %6400 }
 0x2d4   :  { %v6403_v54 = vpop.eup %6402  ;;  %v1663_v4 = vmul.f32 %v6401_v23, %v6399_v31  ;;  %v7522_v31 = vpack.c.bf16 %v2189_v49, %v2185_v19  ;;  %v2184_v23 = vld [vmem:[#allocation16 + $0x50] sm:$0xff] }
 0x2d5   :  { %v1662_v0 = vmul.f32 %v6403_v54, %v7358_v63  ;;  %v2176_v63 = vld [vmem:[#allocation16 + $0x10] sm:$0xff]  ;;  %v6405_v28 = vpop.eup %6404 }
 0x2d6   :  { %v2188_v54 = vld [vmem:[#allocation16 + $0x70] sm:$0xff] }
 0x2d7   :  { %v7511_v52 = vadd.f32 %v1663_v4, %v1662_v0  ;;  %v1806_v17 = vpop.f32.mrb[22].mxu0  ;;  %v1877_v25 = vpop.f32.mrb[54].mxu1  ;;  %v2193_v4 = vld [vmem:[#allocation16 + $0x98] sm:$0xff]  ;;  %v2212_v19 = vld [vmem:[#allocation16 + $0x130] sm:$0xff] }
 0x2d8   :  { %v1882_v37 = vadd.f32 %v1806_v17, %v7233_v60  ;;  %v1884_v50 = vadd.f32 %v1877_v25, %v7349_v59  ;;  %v1808_v16 = vpop.f32.mrb[23].mxu0  ;;  %v1879_v32 = vpop.f32.mrb[55].mxu1  ;;  %v7518_v59 = vpack.c.bf16 %v2180_v9, %v2176_v63  ;;  %v2213_v63 = vld [vmem:[#allocation16 + $0x138] sm:$0xff] }
 0x2d9   :  { %v1883_v29 = vadd.f32 %v1808_v16, %v8378_v5  ;;  %v1885_v18 = vadd.f32 %v1879_v32, %v8379_v24  ;;  %6406 = vtanh.f32 %v7511_v52  ;;  %v7532_v32 = vpack.c.bf16 %v2197_v43, %v2193_v4  ;;  %v2192_v5 = vld [vmem:[#allocation16 + $0x90] sm:$0xff]  ;;  %v2201_v24 = vld [vmem:[#allocation16 + $0xd8] sm:$0xff] }
 0x2da   :  { %v5205_v10 = vmul.f32 -1.442695, %v1882_v37  ;;  %v7528_v37 = vpack.c.bf16 %v2188_v54, %v2184_v23 }
 0x2db   :  { %v5206_v33 = vmul.f32 -1.442695, %v1883_v29  ;;  %v5207_v57 = vmul.f32 -1.442695, %v1885_v18  ;;  %v2196_v29 = vld [vmem:[#allocation16 + $0xb0] sm:$0xff]  ;;  %v2205_v18 = vld [vmem:[#allocation16 + $0xf8] sm:$0xff] }
 0x2dc   :  { %6408 = vpow2.f32 %v5205_v10  ;;  %v2204_v10 = vld [vmem:[#allocation16 + $0xf0] sm:$0xff] }
 0x2dd   :  { %6410 = vpow2.f32 %v5206_v33  ;;  %v2209_v33 = vld [vmem:[#allocation16 + $0x118] sm:$0xff] }
 0x2de   :  { %6412 = vpow2.f32 %v5207_v57 }
 0x2df   :  { %6414 = vtanh.f32 %v1884_v50  ;;  %v2200_v50 = vld [vmem:[#allocation16 + $0xd0] sm:$0xff] }
 0x2e0   :  { %v7546_v9 = vpack.c.bf16 %v2204_v10, %v2200_v50  ;;  %v2237_v50 = vld [vmem:[#allocation16 + $0x1f8] sm:$0xff]  ;;  %v2232_v10 = vld [vmem:[#allocation16 + $0x1d0] sm:$0xff] }
 0x2e3   :  { %v6407_v60 = vpop.eup %6406 }
 0x2e4   :  { %v7520_v58 = vmul.f32 %v6407_v60, %v6405_v28  ;;  %v2217_v28 = vld [vmem:[#allocation16 + $0x158] sm:$0xff] }
 0x2e5   :  { %v2221_v60 = vld [vmem:[#allocation16 + $0x178] sm:$0xff] }
 0x2e6   :  { %v6409_v0 = vpop.eup %6408  ;;  %2060 = vmatmul.mubr.f32.vlgmr.msra.gmra.mrb[24].mxu0 %v7520_v58  ;;  %2131 = vmatmul.mubr.f32.vlgmr.msra.gmra.mrb[56].mxu1 %v7520_v58  ;;  %v7558_v43 = vpack.c.bf16 %v2221_v60, %v2217_v28  ;;  %v2457_v28 = vld [vmem:[#allocation14 + $0xe0] sm:$0xff] }
 0x2e7   :  { %v6411_v17 = vpop.eup %6410  ;;  %v1889_v25 = vadd.f32 1.0, %v6409_v0  ;;  %5624 = vmatpush1.bf16.msra.mxu0 %v7361_v15  ;;  %5656 = vmatpush1.bf16.msra.mxu1 %v7518_v59  ;;  %v7538_v15 = vpack.c.bf16 %v2196_v29, %v2192_v5  ;;  %v2216_v0 = vld [vmem:[#allocation16 + $0x150] sm:$0xff]  ;;  %v2229_v5 = vld [vmem:[#allocation16 + $0x1b8] sm:$0xff] }
 0x2e8   :  { %v1895_v16 = vadd.f32 1.0, %v6411_v17  ;;  %5626 = vmatprep.subr.bf16.mxu0 %v7365_v22  ;;  %5658 = vmatprep.subr.bf16.mxu1 %v7522_v31  ;;  %v7542_v22 = vpack.c.bf16 %v2205_v18, %v2201_v24  ;;  %v6413_v49 = vpop.eup %6412  ;;  %v2220_v17 = vld [vmem:[#allocation16 + $0x170] sm:$0xff] }
 0x2e9   :  { %6416 = vrcp.f32 %v1889_v25  ;;  %2302 = vmatprep.mubr.f32.mxu0 %v8376_v51  ;;  %2373 = vmatprep.mubr.f32.mxu1 %v8376_v51  ;;  %v6415_v57 = vpop.eup %6414  ;;  %v7565_v29 = vpack.c.bf16 %v2220_v17, %v2216_v0  ;;  %v2224_v24 = vld [vmem:[#allocation16 + $0x190] sm:$0xff]  ;;  %v2470_v17 = vld [vmem:[#allocation14 + $0x148] sm:$0xff] }
 0x2ea   :  { %6418 = vrcp.f32 %v1895_v16  ;;  %v2225_v16 = vld [vmem:[#allocation16 + $0x198] sm:$0xff]  ;;  %v2228_v18 = vld [vmem:[#allocation16 + $0x1b0] sm:$0xff] }
 0x2eb   :  { %5628 = vmatpush1.bf16.msra.mxu0 %v7373_v26  ;;  %5660 = vmatpush1.bf16.msra.mxu1 %v7528_v37  ;;  %v7550_v26 = vpack.c.bf16 %v2213_v63, %v2209_v33  ;;  %v2236_v33 = vld [vmem:[#allocation16 + $0x1f0] sm:$0xff] }
 0x2ec   :  { %5630 = vmatprep.subr.bf16.mxu0 %v7377_v42  ;;  %5662 = vmatprep.subr.bf16.mxu1 %v7532_v32  ;;  %v2208_v42 = vld [vmem:[#allocation16 + $0x110] sm:$0xff]  ;;  %v7582_v63 = vpack.c.bf16 %v2236_v33, %v2232_v10  ;;  %v2477_v33 = vld [vmem:[#allocation14 + $0x180] sm:$0xff] }
 0x2ef   :  { %5632 = vmatpush1.bf16.msra.mxu0 %v7383_v45  ;;  %5664 = vmatpush1.bf16.msra.mxu1 %v7538_v15  ;;  %v7554_v45 = vpack.c.bf16 %v2212_v19, %v2208_v42 }
 0x2f0   :  { %5634 = vmatprep.subr.bf16.mxu0 %v7387_v13  ;;  %5666 = vmatprep.subr.bf16.mxu1 %v7542_v22  ;;  %v1902_v13 = vadd.f32 1.0, %v6413_v49  ;;  %v2453_v49 = vld [vmem:[#allocation14 + $0xc0] sm:$0xff] }
 0x2f1   :  { %v7631_v60 = vpack.c.bf16 %v2457_v28, %v2453_v49 }
 0x2f2   :  { %6420 = vrcp.f32 %v1902_v13  ;;  %v2465_v13 = vld [vmem:[#allocation14 + $0x120] sm:$0xff] }
 0x2f3   :  { %v6417_v23 = vpop.eup %6416  ;;  %5636 = vmatpush1.bf16.msra.mxu0 %v7391_v56  ;;  %5668 = vmatpush1.bf16.msra.mxu1 %v7546_v9 }
 0x2f4   :  { %v6419_v54 = vpop.eup %6418  ;;  %v1906_v4 = vmul.f32 %v6417_v23, %v6415_v57  ;;  %5638 = vmatprep.subr.bf16.mxu0 %v7395_v46  ;;  %5670 = vmatprep.subr.bf16.mxu1 %v7550_v26  ;;  %v7569_v46 = vpack.c.bf16 %v2229_v5, %v2225_v16  ;;  %v2462_v57 = vld [vmem:[#allocation14 + $0x108] sm:$0xff]  ;;  %v2469_v5 = vld [vmem:[#allocation14 + $0x140] sm:$0xff] }
 0x2f5   :  { %v1905_v25 = vmul.f32 %v6419_v54, %v7405_v41  ;;  %v2233_v41 = vld [vmem:[#allocation16 + $0x1d8] sm:$0xff]  ;;  %v2466_v23 = vld [vmem:[#allocation14 + $0x128] sm:$0xff] }
 0x2f6   :  { %v7635_v54 = vpack.c.bf16 %v2466_v23, %v2462_v57  ;;  %v8382_v23 = vld [vmem:[#allocation30_spill] sm:$0xff] }
 0x2f7   :  { %v7561_v56 = vadd.f32 %v1906_v4, %v1905_v25  ;;  %5640 = vmatpush1.bf16.msra.mxu0 %v7399_v53  ;;  %5672 = vmatpush1.bf16.msra.mxu1 %v7554_v45  ;;  %v7574_v53 = vpack.c.bf16 %v2228_v18, %v2224_v24  ;;  %v2461_v4 = vld [vmem:[#allocation14 + $0x100] sm:$0xff]  ;;  %v2474_v25 = vld [vmem:[#allocation14 + $0x168] sm:$0xff] }
 0x2f8   :  { %5642 = vmatprep.subr.bf16.mxu0 %v7403_v55  ;;  %5674 = vmatprep.subr.bf16.mxu1 %v7558_v43  ;;  %v7578_v55 = vpack.c.bf16 %v2237_v50, %v2233_v41  ;;  %v7637_v0 = vpack.c.bf16 %v2465_v13, %v2461_v4  ;;  %v7641_v16 = vpack.c.bf16 %v2474_v25, %v2470_v17  ;;  %v2473_v24 = vld [vmem:[#allocation14 + $0x160] sm:$0xff]  ;;  %v2478_v41 = vld [vmem:[#allocation14 + $0x188] sm:$0xff]  ;;  %v8383_v13 = vld [vmem:[#allocation51_spill] sm:$0xff] }
 0x2f9   :  { %6422 = vtanh.f32 %v7561_v56  ;;  %v7643_v18 = vpack.c.bf16 %v2473_v24, %v2469_v5  ;;  %v2482_v50 = vld [vmem:[#allocation14 + $0x1a8] sm:$0xff] }
 0x2fa   :  { %v7647_v10 = vpack.c.bf16 %v2482_v50, %v2478_v41 }
 0x2fb   :  { %5644 = vmatpush1.bf16.msra.mxu0 %v7409_v1  ;;  %5676 = vmatpush1.bf16.msra.mxu1 %v7565_v29 }
 0x2fc   :  { %5646 = vmatprep.subr.bf16.mxu0 %v7414_v2  ;;  %5678 = vmatprep.subr.bf16.mxu1 %v7569_v46  ;;  %v6421_v1 = vpop.eup %6420 }
 0x2ff   :  { %5648 = vmatpush1.bf16.msra.mxu0 %v7418_v8  ;;  %5680 = vmatpush1.bf16.msra.mxu1 %v7574_v53  ;;  %v2430_v8 = vld [vmem:[#allocation14 + $0x8] sm:$0xff] }
 0x300   :  { %5650 = vmatprep.subr.bf16.mxu0 %v7422_v47  ;;  %5682 = vmatprep.subr.bf16.mxu1 %v7578_v55  ;;  %v2434_v47 = vld [vmem:[#allocation14 + $0x28] sm:$0xff] }
 0x303   :  { %v6423_v42 = vpop.eup %6422  ;;  %5652 = vmatpush1.bf16.msra.mxu0 %v7426_v14  ;;  %5684 = vmatpush1.bf16.msra.mxu1 %v7582_v63  ;;  %v7611_v14 = vpack.c.bf16 %v2434_v47, %v2430_v8  ;;  %v2486_v8 = vld [vmem:[#allocation14 + $0x1c8] sm:$0xff] }
 0x304   :  { %v7588_v2 = vmul.f32 %v6423_v42, %v6421_v1  ;;  %5718 = vmatprep.subr.bf16.mxu1 %v7455_v34  ;;  %v2429_v34 = vld [vmem:[#allocation14] sm:$0xff]  ;;  %v2490_v47 = vld [vmem:[#allocation14 + $0x1e8] sm:$0xff] }
 0x305   :  { %5686 = vmatprep.subr.bf16.mxu0 %v7611_v14  ;;  %v2481_v1 = vld [vmem:[#allocation14 + $0x1a0] sm:$0xff] }
 0x306   :  { %2303 = vmatmul.mubr.f32.vlgmr.msra.gmra.mrb[26].mxu0 %v7588_v2  ;;  %2374 = vmatmul.mubr.f32.vlgmr.msra.gmra.mrb[58].mxu1 %v7588_v2  ;;  %v7649_v42 = vpack.c.bf16 %v2481_v1, %v2477_v33 }
 0x307   :  { %5720 = vmatpush1.bf16.msra.mxu1 %v7457_v11  ;;  %2557 = vmatprep.mubr.f32.mxu0 %v8376_v51  ;;  %v2433_v11 = vld [vmem:[#allocation14 + $0x20] sm:$0xff] }
 0x308   :  { %5722 = vmatprep.subr.bf16.mxu1 %v7461_v36  ;;  %2628 = vmatprep.mubr.f32.mxu1 %v8376_v51  ;;  %v7613_v36 = vpack.c.bf16 %v2433_v11, %v2429_v34  ;;  %v7653_v34 = vpack.c.bf16 %v2490_v47, %v2486_v8  ;;  %v2485_v11 = vld [vmem:[#allocation14 + $0x1c0] sm:$0xff] }
 0x30a   :  { %5688 = vmatpush1.bf16.msra.mxu0 %v7613_v36 }
 0x30b   :  { %5724 = vmatpush1.bf16.msra.mxu1 %v7463_v48  ;;  %v2438_v48 = vld [vmem:[#allocation14 + $0x48] sm:$0xff] }
 0x30c   :  { %5726 = vmatprep.subr.bf16.mxu1 %v7467_v7  ;;  %v2442_v7 = vld [vmem:[#allocation14 + $0x68] sm:$0xff] }
 0x30f   :  { %5728 = vmatpush1.bf16.msra.mxu1 %v7469_v30  ;;  %v7617_v30 = vpack.c.bf16 %v2442_v7, %v2438_v48  ;;  %v2489_v48 = vld [vmem:[#allocation14 + $0x1e0] sm:$0xff] }
 0x310   :  { %5730 = vmatprep.subr.bf16.mxu1 %v7473_v38  ;;  %v2437_v38 = vld [vmem:[#allocation14 + $0x40] sm:$0xff]  ;;  %v7655_v7 = vpack.c.bf16 %v2489_v48, %v2485_v11 }
 0x311   :  { %5690 = vmatprep.subr.bf16.mxu0 %v7617_v30 }
 0x313   :  { %5732 = vmatpush1.bf16.msra.mxu1 %v7475_v3  ;;  %v2441_v3 = vld [vmem:[#allocation14 + $0x60] sm:$0xff] }
 0x314   :  { %5734 = vmatprep.subr.bf16.mxu1 %v7479_v6  ;;  %v7619_v6 = vpack.c.bf16 %v2441_v3, %v2437_v38  ;;  %v2673_v38 = vld [vmem:[#allocation16 + $0x8] sm:$0xff] }
 0x315   :  { %v2677_v3 = vld [vmem:[#allocation16 + $0x28] sm:$0xff] }
 0x316   :  { %5692 = vmatpush1.bf16.msra.mxu0 %v7619_v6 }
 0x317   :  { %5736 = vmatpush1.bf16.msra.mxu1 %v7481_v35  ;;  %v2446_v35 = vld [vmem:[#allocation14 + $0x88] sm:$0xff] }
 0x318   :  { %5738 = vmatprep.subr.bf16.mxu1 %v7485_v40  ;;  %v2450_v40 = vld [vmem:[#allocation14 + $0xa8] sm:$0xff] }
 0x31b   :  { %5740 = vmatpush1.bf16.msra.mxu1 %v7487_v44  ;;  %v7623_v44 = vpack.c.bf16 %v2450_v40, %v2446_v35  ;;  %v7659_v35 = vpack.c.bf16 %v2677_v3, %v2673_v38 }
 0x31c   :  { %5742 = vmatprep.subr.bf16.mxu1 %v7491_v27  ;;  %v2445_v27 = vld [vmem:[#allocation14 + $0x80] sm:$0xff] }
 0x31d   :  { %5694 = vmatprep.subr.bf16.mxu0 %v7623_v44 }
 0x31f   :  { %5744 = vmatpush1.bf16.msra.mxu1 %v7493_v12  ;;  %v2449_v12 = vld [vmem:[#allocation14 + $0xa0] sm:$0xff] }
 0x320   :  { %5746 = vmatprep.subr.bf16.mxu1 %v7497_v39  ;;  %v7625_v39 = vpack.c.bf16 %v2449_v12, %v2445_v27  ;;  %v8380_v12 = vld [vmem:[#allocation29_spill] sm:$0xff] }
 0x322   :  { %5696 = vmatpush1.bf16.msra.mxu0 %v7625_v39 }
 0x323   :  { %5748 = vmatpush1.bf16.msra.mxu1 %v7499_v61  ;;  %v2454_v61 = vld [vmem:[#allocation14 + $0xc8] sm:$0xff] }
 0x324   :  { %5782 = vmatprep.subr.bf16.mxu1 %v7503_v62  ;;  %v2458_v62 = vld [vmem:[#allocation14 + $0xe8] sm:$0xff] }
 0x325   :  { %v7629_v19 = vpack.c.bf16 %v2458_v62, %v2454_v61  ;;  %v8381_v62 = vld [vmem:[#allocation50_spill] sm:$0xff] }
 0x327   :  { %5698 = vmatprep.subr.bf16.mxu0 %v7629_v19 }
 0x328   :  { %5700 = vmatpush1.bf16.msra.mxu0 %v7631_v60 }
 0x329   :  { %5702 = vmatprep.subr.bf16.mxu0 %v7635_v54 }
 0x32c   :  { %5704 = vmatpush1.bf16.msra.mxu0 %v7637_v0 }
 0x32d   :  { %5706 = vmatprep.subr.bf16.mxu0 %v7641_v16 }
 0x330   :  { %5708 = vmatpush1.bf16.msra.mxu0 %v7643_v18 }
 0x331   :  { %5710 = vmatprep.subr.bf16.mxu0 %v7647_v10 }
 0x334   :  { %5712 = vmatpush1.bf16.msra.mxu0 %v7649_v42 }
 0x335   :  { %5714 = vmatprep.subr.bf16.mxu0 %v7653_v34 }
 0x338   :  { %5716 = vmatpush1.bf16.msra.mxu0 %v7655_v7 }
 0x339   :  { %5750 = vmatprep.subr.bf16.mxu0 %v7659_v35 }
 0x3b9   :  { %v2061_v40 = vpop.f32.mrb[24].mxu0  ;;  %v2132_v27 = vpop.f32.mrb[56].mxu1 }
 0x3ba   :  { %v2137_v61 = vadd.f32 %v2061_v40, %v8380_v12  ;;  %v2139_v49 = vadd.f32 %v2132_v27, %v8381_v62  ;;  %v2063_v28 = vpop.f32.mrb[25].mxu0  ;;  %v2134_v57 = vpop.f32.mrb[57].mxu1  ;;  %v8384_v62 = vld [vmem:[#allocation43_spill] sm:$0xff] }
 0x3bb   :  { %v2138_v4 = vadd.f32 %v2063_v28, %v8382_v23  ;;  %v2140_v17 = vadd.f32 %v2134_v57, %v8383_v13  ;;  %v8385_v57 = vld [vmem:[#allocation72_spill] sm:$0xff] }
 0x3bc   :  { %v5208_v25 = vmul.f32 -1.442695, %v2137_v61  ;;  %v8386_v13 = vld [vmem:[#allocation44_spill] sm:$0xff] }
 0x3bd   :  { %v5209_v5 = vmul.f32 -1.442695, %v2138_v4  ;;  %v5210_v24 = vmul.f32 -1.442695, %v2140_v17 }
 0x3be   :  { %6424 = vpow2.f32 %v5208_v25  ;;  %v8387_v25 = vld [vmem:[#allocation73_spill] sm:$0xff] }
 0x3bf   :  { %6426 = vpow2.f32 %v5209_v5 }
 0x3c0   :  { %6428 = vpow2.f32 %v5210_v24 }
 0x3c1   :  { %6430 = vtanh.f32 %v2139_v49 }
 0x3c8   :  { %v6425_v41 = vpop.eup %6424 }
 0x3c9   :  { %v6427_v50 = vpop.eup %6426  ;;  %v2144_v33 = vadd.f32 1.0, %v6425_v41 }
 0x3ca   :  { %v2150_v1 = vadd.f32 1.0, %v6427_v50  ;;  %v6429_v8 = vpop.eup %6428  ;;  %v2676_v50 = vld [vmem:[#allocation16 + $0x20] sm:$0xff] }
 0x3cb   :  { %6432 = vrcp.f32 %v2144_v33  ;;  %v6431_v47 = vpop.eup %6430  ;;  %v2157_v3 = vadd.f32 1.0, %v6429_v8  ;;  %v2681_v33 = vld [vmem:[#allocation16 + $0x48] sm:$0xff] }
 0x3cc   :  { %6434 = vrcp.f32 %v2150_v1  ;;  %v2685_v1 = vld [vmem:[#allocation16 + $0x68] sm:$0xff] }
 0x3cd   :  { %6436 = vrcp.f32 %v2157_v3  ;;  %v7678_v3 = vpack.c.bf16 %v2685_v1, %v2681_v33  ;;  %v2709_v33 = vld [vmem:[#allocation16 + $0x128] sm:$0xff] }
 0x3d5   :  { %v6433_v11 = vpop.eup %6432 }
 0x3d6   :  { %v6435_v48 = vpop.eup %6434  ;;  %v2161_v38 = vmul.f32 %v6433_v11, %v6431_v47 }
 0x3d7   :  { %v2160_v40 = vmul.f32 %v6435_v48, %v7511_v52  ;;  %v2672_v52 = vld [vmem:[#allocation16] sm:$0xff]  ;;  %v6437_v8 = vpop.eup %6436 }
 0x3d8   :  { %v7674_v48 = vpack.c.bf16 %v2676_v50, %v2672_v52  ;;  %v2700_v52 = vld [vmem:[#allocation16 + $0xe0] sm:$0xff]  ;;  %v2705_v50 = vld [vmem:[#allocation16 + $0x108] sm:$0xff] }
 0x3d9   :  { %v7667_v27 = vadd.f32 %v2161_v38, %v2160_v40  ;;  %v2304_v12 = vpop.f32.mrb[26].mxu0  ;;  %v2375_v61 = vpop.f32.mrb[58].mxu1  ;;  %v2680_v40 = vld [vmem:[#allocation16 + $0x40] sm:$0xff] }
 0x3da   :  { %v2380_v28 = vadd.f32 %v2304_v12, %v8384_v62  ;;  %v2382_v49 = vadd.f32 %v2375_v61, %v8385_v57  ;;  %v2306_v23 = vpop.f32.mrb[27].mxu0  ;;  %v2377_v4 = vpop.f32.mrb[59].mxu1  ;;  %v2684_v12 = vld [vmem:[#allocation16 + $0x60] sm:$0xff]  ;;  %v2689_v61 = vld [vmem:[#allocation16 + $0x88] sm:$0xff] }
 0x3db   :  { %v2381_v17 = vadd.f32 %v2306_v23, %v8386_v13  ;;  %v2383_v5 = vadd.f32 %v2377_v4, %v8387_v25  ;;  %6438 = vtanh.f32 %v7667_v27  ;;  %v2693_v62 = vld [vmem:[#allocation16 + $0xa8] sm:$0xff]  ;;  %v7684_v4 = vpack.c.bf16 %v2684_v12, %v2680_v40  ;;  %v2688_v25 = vld [vmem:[#allocation16 + $0x80] sm:$0xff] }
 0x3dc   :  { %v5211_v24 = vmul.f32 -1.442695, %v2380_v28  ;;  %v2717_v40 = vld [vmem:[#allocation16 + $0x168] sm:$0xff] }
 0x3dd   :  { %v5212_v41 = vmul.f32 -1.442695, %v2381_v17  ;;  %v5213_v11 = vmul.f32 -1.442695, %v2383_v5  ;;  %v7688_v17 = vpack.c.bf16 %v2693_v62, %v2689_v61  ;;  %v2692_v5 = vld [vmem:[#allocation16 + $0xa0] sm:$0xff] }
 0x3de   :  { %6440 = vpow2.f32 %v5211_v24  ;;  %v2697_v24 = vld [vmem:[#allocation16 + $0xc8] sm:$0xff] }
 0x3df   :  { %6442 = vpow2.f32 %v5212_v41  ;;  %v2701_v41 = vld [vmem:[#allocation16 + $0xe8] sm:$0xff] }
 0x3e0   :  { %6444 = vpow2.f32 %v5213_v11  ;;  %v2713_v11 = vld [vmem:[#allocation16 + $0x148] sm:$0xff] }
 0x3e1   :  { %6446 = vtanh.f32 %v2382_v49  ;;  %v2696_v49 = vld [vmem:[#allocation16 + $0xc0] sm:$0xff] }
 0x3e2   :  { %v7702_v1 = vpack.c.bf16 %v2700_v52, %v2696_v49  ;;  %v2720_v49 = vld [vmem:[#allocation16 + $0x180] sm:$0xff] }
 0x3e3   :  { %v2724_v52 = vld [vmem:[#allocation16 + $0x1a0] sm:$0xff] }
 0x3e5   :  { %v6439_v47 = vpop.eup %6438 }
 0x3e6   :  { %v7676_v38 = vmul.f32 %v6439_v47, %v6437_v8  ;;  %v2704_v8 = vld [vmem:[#allocation16 + $0x100] sm:$0xff] }
 0x3e8   :  { %v6441_v28 = vpop.eup %6440  ;;  %2558 = vmatmul.mubr.f32.vlgmr.msra.gmra.mrb[28].mxu0 %v7676_v38  ;;  %2629 = vmatmul.mubr.f32.vlgmr.msra.gmra.mrb[60].mxu1 %v7676_v38 }
 0x3e9   :  { %v6443_v57 = vpop.eup %6442  ;;  %v2387_v23 = vadd.f32 1.0, %v6441_v28  ;;  %5752 = vmatpush1.bf16.msra.mxu0 %v7674_v48  ;;  %5784 = vmatpush1.bf16.msra.mxu1 %v7518_v59  ;;  %v7694_v59 = vpack.c.bf16 %v2692_v5, %v2688_v25  ;;  %v2721_v5 = vld [vmem:[#allocation16 + $0x188] sm:$0xff] }
 0x3ea   :  { %v2393_v13 = vadd.f32 1.0, %v6443_v57  ;;  %5754 = vmatprep.subr.bf16.mxu0 %v7678_v3  ;;  %5786 = vmatprep.subr.bf16.mxu1 %v7522_v31  ;;  %v7698_v31 = vpack.c.bf16 %v2701_v41, %v2697_v24  ;;  %v6445_v47 = vpop.eup %6444  ;;  %v2725_v24 = vld [vmem:[#allocation16 + $0x1a8] sm:$0xff] }
 0x3eb   :  { %6448 = vrcp.f32 %v2387_v23  ;;  %2800 = vmatprep.mubr.f32.mxu0 %v8376_v51  ;;  %2871 = vmatprep.mubr.f32.mxu1 %v8376_v51  ;;  %v6447_v12 = vpop.eup %6446  ;;  %v2400_v57 = vadd.f32 1.0, %v6445_v47  ;;  %v2712_v23 = vld [vmem:[#allocation16 + $0x140] sm:$0xff] }
 0x3ec   :  { %6450 = vrcp.f32 %v2393_v13  ;;  %v2716_v13 = vld [vmem:[#allocation16 + $0x160] sm:$0xff] }
 0x3ed   :  { %5756 = vmatpush1.bf16.msra.mxu0 %v7684_v4  ;;  %5788 = vmatpush1.bf16.msra.mxu1 %v7528_v37  ;;  %v7706_v37 = vpack.c.bf16 %v2709_v33, %v2705_v50  ;;  %6452 = vrcp.f32 %v2400_v57  ;;  %v2733_v50 = vld [vmem:[#allocation16 + $0x1e8] sm:$0xff] }
 0x3ee   :  { %5758 = vmatprep.subr.bf16.mxu0 %v7688_v17  ;;  %5790 = vmatprep.subr.bf16.mxu1 %v7532_v32  ;;  %v2708_v32 = vld [vmem:[#allocation16 + $0x120] sm:$0xff] }
 0x3f1   :  { %5760 = vmatpush1.bf16.msra.mxu0 %v7694_v59  ;;  %5792 = vmatpush1.bf16.msra.mxu1 %v7538_v15  ;;  %v7710_v15 = vpack.c.bf16 %v2708_v32, %v2704_v8  ;;  %v2732_v8 = vld [vmem:[#allocation16 + $0x1e0] sm:$0xff] }
 0x3f2   :  { %5762 = vmatprep.subr.bf16.mxu0 %v7698_v31  ;;  %5794 = vmatprep.subr.bf16.mxu1 %v7542_v22  ;;  %v7714_v22 = vpack.c.bf16 %v2717_v40, %v2713_v11  ;;  %v2950_v40 = vld [vmem:[#allocation14 + $0xd0] sm:$0xff] }
 0x3f5   :  { %v6449_v61 = vpop.eup %6448  ;;  %5764 = vmatpush1.bf16.msra.mxu0 %v7702_v1  ;;  %5796 = vmatpush1.bf16.msra.mxu1 %v7546_v9  ;;  %v7721_v9 = vpack.c.bf16 %v2716_v13, %v2712_v23  ;;  %v2958_v23 = vld [vmem:[#allocation14 + $0x110] sm:$0xff] }
 0x3f6   :  { %v6451_v62 = vpop.eup %6450  ;;  %v2404_v28 = vmul.f32 %v6449_v61, %v6447_v12  ;;  %5766 = vmatprep.subr.bf16.mxu0 %v7706_v37  ;;  %5798 = vmatprep.subr.bf16.mxu1 %v7550_v26  ;;  %v7725_v26 = vpack.c.bf16 %v2725_v24, %v2721_v5  ;;  %v2954_v12 = vld [vmem:[#allocation14 + $0xf0] sm:$0xff]  ;;  %v2967_v5 = vld [vmem:[#allocation14 + $0x158] sm:$0xff] }
 0x3f7   :  { %v2403_v25 = vmul.f32 %v6451_v62, %v7561_v56  ;;  %v2729_v56 = vld [vmem:[#allocation16 + $0x1c8] sm:$0xff]  ;;  %v7787_v61 = vpack.c.bf16 %v2954_v12, %v2950_v40  ;;  %v2959_v62 = vld [vmem:[#allocation14 + $0x118] sm:$0xff]  ;;  %v2962_v13 = vld [vmem:[#allocation14 + $0x130] sm:$0xff] }
 0x3f8   :  { %v7734_v33 = vpack.c.bf16 %v2733_v50, %v2729_v56  ;;  %v2971_v24 = vld [vmem:[#allocation14 + $0x178] sm:$0xff]  ;;  %v2970_v56 = vld [vmem:[#allocation14 + $0x170] sm:$0xff] }
 0x3f9   :  { %v7717_v41 = vadd.f32 %v2404_v28, %v2403_v25  ;;  %5768 = vmatpush1.bf16.msra.mxu0 %v7710_v15  ;;  %5800 = vmatpush1.bf16.msra.mxu1 %v7554_v45  ;;  %v7730_v45 = vpack.c.bf16 %v2724_v52, %v2720_v49  ;;  %v2963_v28 = vld [vmem:[#allocation14 + $0x138] sm:$0xff]  ;;  %v7793_v25 = vpack.c.bf16 %v2962_v13, %v2958_v23  ;;  %v2966_v52 = vld [vmem:[#allocation14 + $0x150] sm:$0xff]  ;;  %v8390_v13 = vld [vmem:[#allocation34_spill] sm:$0xff] }
 0x3fa   :  { %5770 = vmatprep.subr.bf16.mxu0 %v7714_v22  ;;  %5802 = vmatprep.subr.bf16.mxu1 %v7558_v43  ;;  %v2728_v43 = vld [vmem:[#allocation16 + $0x1c0] sm:$0xff]  ;;  %v7791_v57 = vpack.c.bf16 %v2963_v28, %v2959_v62  ;;  %v7797_v49 = vpack.c.bf16 %v2971_v24, %v2967_v5  ;;  %v7799_v50 = vpack.c.bf16 %v2970_v56, %v2966_v52  ;;  %v8389_v12 = vld [vmem:[#allocation52_spill] sm:$0xff] }
 0x3fb   :  { %6454 = vtanh.f32 %v7717_v41  ;;  %v7738_v32 = vpack.c.bf16 %v2732_v8, %v2728_v43  ;;  %v2975_v43 = vld [vmem:[#allocation14 + $0x198] sm:$0xff]  ;;  %v8391_v24 = vld [vmem:[#allocation53_spill] sm:$0xff] }
 0x3fc   :  { %v2979_v8 = vld [vmem:[#allocation14 + $0x1b8] sm:$0xff] }
 0x3fd   :  { %5772 = vmatpush1.bf16.msra.mxu0 %v7721_v9  ;;  %5804 = vmatpush1.bf16.msra.mxu1 %v7565_v29  ;;  %v6453_v29 = vpop.eup %6452 }
 0x3fe   :  { %5774 = vmatprep.subr.bf16.mxu0 %v7725_v26  ;;  %5806 = vmatprep.subr.bf16.mxu1 %v7569_v46 }
 0x401   :  { %5776 = vmatpush1.bf16.msra.mxu0 %v7730_v45  ;;  %5808 = vmatpush1.bf16.msra.mxu1 %v7574_v53  ;;  %v2927_v53 = vld [vmem:[#allocation14 + $0x18] sm:$0xff] }
 0x402   :  { %5778 = vmatprep.subr.bf16.mxu0 %v7734_v33  ;;  %5810 = vmatprep.subr.bf16.mxu1 %v7578_v55  ;;  %v2931_v55 = vld [vmem:[#allocation14 + $0x38] sm:$0xff] }
 0x405   :  { %v6455_v47 = vpop.eup %6454  ;;  %5780 = vmatpush1.bf16.msra.mxu0 %v7738_v32  ;;  %5812 = vmatpush1.bf16.msra.mxu1 %v7582_v63  ;;  %v7767_v63 = vpack.c.bf16 %v2931_v55, %v2927_v53  ;;  %v2978_v53 = vld [vmem:[#allocation14 + $0x1b0] sm:$0xff] }
 0x406   :  { %v7744_v46 = vmul.f32 %v6455_v47, %v6453_v29  ;;  %5814 = vmatprep.subr.bf16.mxu0 %v7611_v14  ;;  %v2926_v14 = vld [vmem:[#allocation14 + $0x10] sm:$0xff]  ;;  %v7803_v29 = vpack.c.bf16 %v2979_v8, %v2975_v43 }
 0x407   :  { %5846 = vmatprep.subr.bf16.mxu1 %v7767_v63  ;;  %v2974_v47 = vld [vmem:[#allocation14 + $0x190] sm:$0xff] }
 0x408   :  { %2801 = vmatmul.mubr.f32.vlgmr.msra.gmra.mrb[30].mxu0 %v7744_v46  ;;  %2872 = vmatmul.mubr.f32.vlgmr.msra.gmra.mrb[62].mxu1 %v7744_v46  ;;  %v7805_v55 = vpack.c.bf16 %v2978_v53, %v2974_v47 }
 0x409   :  { %5816 = vmatpush1.bf16.msra.mxu0 %v7613_v36  ;;  %3052 = vmatprep.mubr.f32.mxu0 %v8376_v51  ;;  %v2930_v36 = vld [vmem:[#allocation14 + $0x30] sm:$0xff] }
 0x40a   :  { %5818 = vmatprep.subr.bf16.mxu0 %v7617_v30  ;;  %3123 = vmatprep.mubr.f32.mxu1 %v8376_v51  ;;  %v7769_v30 = vpack.c.bf16 %v2930_v36, %v2926_v14  ;;  %v2983_v14 = vld [vmem:[#allocation14 + $0x1d8] sm:$0xff] }
 0x40b   :  { %v2987_v36 = vld [vmem:[#allocation14 + $0x1f8] sm:$0xff] }
 0x40c   :  { %5848 = vmatpush1.bf16.msra.mxu1 %v7769_v30 }
 0x40d   :  { %5820 = vmatpush1.bf16.msra.mxu0 %v7619_v6  ;;  %v2935_v6 = vld [vmem:[#allocation14 + $0x58] sm:$0xff] }
 0x40e   :  { %5822 = vmatprep.subr.bf16.mxu0 %v7623_v44  ;;  %v2939_v44 = vld [vmem:[#allocation14 + $0x78] sm:$0xff] }
 0x411   :  { %5824 = vmatpush1.bf16.msra.mxu0 %v7625_v39  ;;  %v7773_v39 = vpack.c.bf16 %v2939_v44, %v2935_v6  ;;  %v7809_v6 = vpack.c.bf16 %v2987_v36, %v2983_v14  ;;  %v2982_v44 = vld [vmem:[#allocation14 + $0x1d0] sm:$0xff] }
 0x412   :  { %5826 = vmatprep.subr.bf16.mxu0 %v7629_v19  ;;  %v2934_v19 = vld [vmem:[#allocation14 + $0x50] sm:$0xff] }
 0x413   :  { %5850 = vmatprep.subr.bf16.mxu1 %v7773_v39 }
 0x415   :  { %5828 = vmatpush1.bf16.msra.mxu0 %v7631_v60  ;;  %v2938_v60 = vld [vmem:[#allocation14 + $0x70] sm:$0xff] }
 0x416   :  { %5830 = vmatprep.subr.bf16.mxu0 %v7635_v54  ;;  %v7775_v54 = vpack.c.bf16 %v2938_v60, %v2934_v19  ;;  %v2986_v19 = vld [vmem:[#allocation14 + $0x1f0] sm:$0xff] }
 0x417   :  { %v7811_v60 = vpack.c.bf16 %v2986_v19, %v2982_v44 }
 0x418   :  { %5852 = vmatpush1.bf16.msra.mxu1 %v7775_v54 }
 0x419   :  { %5832 = vmatpush1.bf16.msra.mxu0 %v7637_v0  ;;  %v2943_v0 = vld [vmem:[#allocation14 + $0x98] sm:$0xff] }
 0x41a   :  { %5834 = vmatprep.subr.bf16.mxu0 %v7641_v16  ;;  %v2947_v16 = vld [vmem:[#allocation14 + $0xb8] sm:$0xff] }
 0x41d   :  { %5836 = vmatpush1.bf16.msra.mxu0 %v7643_v18  ;;  %v7779_v18 = vpack.c.bf16 %v2947_v16, %v2943_v0  ;;  %v3167_v0 = vld [vmem:[#allocation16 + $0x18] sm:$0xff] }
 0x41e   :  { %5838 = vmatprep.subr.bf16.mxu0 %v7647_v10  ;;  %v2942_v10 = vld [vmem:[#allocation14 + $0x90] sm:$0xff]  ;;  %v3171_v16 = vld [vmem:[#allocation16 + $0x38] sm:$0xff] }
 0x41f   :  { %5854 = vmatprep.subr.bf16.mxu1 %v7779_v18 }
 0x421   :  { %5840 = vmatpush1.bf16.msra.mxu0 %v7649_v42  ;;  %v2946_v42 = vld [vmem:[#allocation14 + $0xb0] sm:$0xff] }
 0x422   :  { %5842 = vmatprep.subr.bf16.mxu0 %v7653_v34  ;;  %v7781_v34 = vpack.c.bf16 %v2946_v42, %v2942_v10  ;;  %v7815_v10 = vpack.c.bf16 %v3171_v16, %v3167_v0 }
 0x424   :  { %5856 = vmatpush1.bf16.msra.mxu1 %v7781_v34 }
 0x425   :  { %5844 = vmatpush1.bf16.msra.mxu0 %v7655_v7  ;;  %v2951_v7 = vld [vmem:[#allocation14 + $0xd8] sm:$0xff] }
 0x426   :  { %5878 = vmatprep.subr.bf16.mxu0 %v7659_v35  ;;  %v2955_v35 = vld [vmem:[#allocation14 + $0xf8] sm:$0xff] }
 0x427   :  { %v7785_v11 = vpack.c.bf16 %v2955_v35, %v2951_v7  ;;  %v8388_v35 = vld [vmem:[#allocation32_spill] sm:$0xff] }
 0x429   :  { %5858 = vmatprep.subr.bf16.mxu1 %v7785_v11 }
 0x42a   :  { %5860 = vmatpush1.bf16.msra.mxu1 %v7787_v61 }
 0x42b   :  { %5862 = vmatprep.subr.bf16.mxu1 %v7791_v57 }
 0x42e   :  { %5864 = vmatpush1.bf16.msra.mxu1 %v7793_v25 }
 0x42f   :  { %5866 = vmatprep.subr.bf16.mxu1 %v7797_v49 }
 0x432   :  { %5868 = vmatpush1.bf16.msra.mxu1 %v7799_v50 }
 0x433   :  { %5870 = vmatprep.subr.bf16.mxu1 %v7803_v29 }
 0x436   :  { %5872 = vmatpush1.bf16.msra.mxu1 %v7805_v55 }
 0x437   :  { %5874 = vmatprep.subr.bf16.mxu1 %v7809_v6 }
 0x43a   :  { %5876 = vmatpush1.bf16.msra.mxu1 %v7811_v60 }
 0x43b   :  { %5910 = vmatprep.subr.bf16.mxu1 %v7815_v10 }
 0x4bb   :  { %v2559_v42 = vpop.f32.mrb[28].mxu0  ;;  %v2630_v7 = vpop.f32.mrb[60].mxu1 }
 0x4bc   :  { %v2635_v40 = vadd.f32 %v2559_v42, %v8388_v35  ;;  %v2637_v62 = vadd.f32 %v2630_v7, %v8389_v12  ;;  %v2561_v28 = vpop.f32.mrb[29].mxu0  ;;  %v2632_v23 = vpop.f32.mrb[61].mxu1 }
 0x4bd   :  { %v2636_v5 = vadd.f32 %v2561_v28, %v8390_v13  ;;  %v2638_v52 = vadd.f32 %v2632_v23, %v8391_v24  ;;  %v8392_v23 = vld [vmem:[#allocation39_spill] sm:$0xff] }
 0x4be   :  { %v5214_v56 = vmul.f32 -1.442695, %v2635_v40 }
 0x4bf   :  { %v5215_v43 = vmul.f32 -1.442695, %v2636_v5  ;;  %v5216_v8 = vmul.f32 -1.442695, %v2638_v52  ;;  %v8393_v5 = vld [vmem:[#allocation70_spill] sm:$0xff] }
 0x4c0   :  { %6456 = vpow2.f32 %v5214_v56  ;;  %v8394_v56 = vld [vmem:[#allocation41_spill] sm:$0xff] }
 0x4c1   :  { %6458 = vpow2.f32 %v5215_v43 }
 0x4c2   :  { %6460 = vpow2.f32 %v5216_v8  ;;  %v8395_v8 = vld [vmem:[#allocation71_spill] sm:$0xff] }
 0x4c3   :  { %6462 = vtanh.f32 %v2637_v62 }
 0x4ca   :  { %v6457_v47 = vpop.eup %6456 }
 0x4cb   :  { %v6459_v53 = vpop.eup %6458  ;;  %v2642_v14 = vadd.f32 1.0, %v6457_v47 }
 0x4cc   :  { %v2648_v36 = vadd.f32 1.0, %v6459_v53  ;;  %v6461_v44 = vpop.eup %6460 }
 0x4cd   :  { %6464 = vrcp.f32 %v2642_v14  ;;  %v6463_v19 = vpop.eup %6462  ;;  %v2655_v7 = vadd.f32 1.0, %v6461_v44  ;;  %v3175_v44 = vld [vmem:[#allocation16 + $0x58] sm:$0xff] }
 0x4ce   :  { %6466 = vrcp.f32 %v2648_v36  ;;  %v3170_v36 = vld [vmem:[#allocation16 + $0x30] sm:$0xff] }
 0x4cf   :  { %6468 = vrcp.f32 %v2655_v7 }
 0x4d7   :  { %v6465_v0 = vpop.eup %6464 }
 0x4d8   :  { %v6467_v16 = vpop.eup %6466  ;;  %v2659_v42 = vmul.f32 %v6465_v0, %v6463_v19  ;;  %v3179_v19 = vld [vmem:[#allocation16 + $0x78] sm:$0xff] }
 0x4d9   :  { %v2658_v35 = vmul.f32 %v6467_v16, %v7667_v27  ;;  %v3166_v27 = vld [vmem:[#allocation16 + $0x10] sm:$0xff]  ;;  %v6469_v0 = vpop.eup %6468 }
 0x4da   :  { %v7830_v7 = vpack.c.bf16 %v3170_v36, %v3166_v27  ;;  %v3191_v27 = vld [vmem:[#allocation16 + $0xd8] sm:$0xff] }
 0x4db   :  { %v7823_v40 = vadd.f32 %v2659_v42, %v2658_v35  ;;  %v2802_v12 = vpop.f32.mrb[30].mxu0  ;;  %v2873_v28 = vpop.f32.mrb[62].mxu1  ;;  %v3195_v36 = vld [vmem:[#allocation16 + $0xf8] sm:$0xff] }
 0x4dc   :  { %v2878_v13 = vadd.f32 %v2802_v12, %v8392_v23  ;;  %v2880_v62 = vadd.f32 %v2873_v28, %v8393_v5  ;;  %v2804_v24 = vpop.f32.mrb[31].mxu0  ;;  %v2875_v52 = vpop.f32.mrb[63].mxu1  ;;  %v7834_v12 = vpack.c.bf16 %v3179_v19, %v3175_v44  ;;  %v3174_v28 = vld [vmem:[#allocation16 + $0x50] sm:$0xff]  ;;  %v3183_v5 = vld [vmem:[#allocation16 + $0x98] sm:$0xff] }
 0x4dd   :  { %v2879_v43 = vadd.f32 %v2804_v24, %v8394_v56  ;;  %v2881_v47 = vadd.f32 %v2875_v52, %v8395_v8  ;;  %6470 = vtanh.f32 %v7823_v40  ;;  %v3178_v23 = vld [vmem:[#allocation16 + $0x70] sm:$0xff]  ;;  %v3199_v19 = vld [vmem:[#allocation16 + $0x118] sm:$0xff] }
 0x4de   :  { %v5217_v53 = vmul.f32 -1.442695, %v2878_v13  ;;  %v3187_v13 = vld [vmem:[#allocation16 + $0xb8] sm:$0xff]  ;;  %v3194_v44 = vld [vmem:[#allocation16 + $0xf0] sm:$0xff] }
 0x4df   :  { %v5218_v14 = vmul.f32 -1.442695, %v2879_v43  ;;  %v5219_v42 = vmul.f32 -1.442695, %v2881_v47  ;;  %v7840_v43 = vpack.c.bf16 %v3178_v23, %v3174_v28  ;;  %v7844_v47 = vpack.c.bf16 %v3187_v13, %v3183_v5  ;;  %v3207_v23 = vld [vmem:[#allocation16 + $0x158] sm:$0xff] }
 0x4e0   :  { %6472 = vpow2.f32 %v5217_v53  ;;  %v3182_v53 = vld [vmem:[#allocation16 + $0x90] sm:$0xff]  ;;  %v3211_v5 = vld [vmem:[#allocation16 + $0x178] sm:$0xff] }
 0x4e1   :  { %6474 = vpow2.f32 %v5218_v14  ;;  %v3186_v14 = vld [vmem:[#allocation16 + $0xb0] sm:$0xff] }
 0x4e2   :  { %6476 = vpow2.f32 %v5219_v42  ;;  %v3202_v42 = vld [vmem:[#allocation16 + $0x130] sm:$0xff] }
 0x4e3   :  { %6478 = vtanh.f32 %v2880_v62  ;;  %v3190_v62 = vld [vmem:[#allocation16 + $0xd0] sm:$0xff] }
 0x4e7   :  { %v6471_v16 = vpop.eup %6470 }
 0x4e8   :  { %v7832_v35 = vmul.f32 %v6471_v16, %v6469_v0  ;;  %v3203_v0 = vld [vmem:[#allocation16 + $0x138] sm:$0xff]  ;;  %v7858_v16 = vpack.c.bf16 %v3194_v44, %v3190_v62 }
 0x4e9   :  { %v3219_v62 = vld [vmem:[#allocation16 + $0x1b8] sm:$0xff] }
 0x4ea   :  { %v6473_v24 = vpop.eup %6472  ;;  %3053 = vmatmul.mubr.f32.vlgmr.msra.gmra.mrb[32].mxu0 %v7832_v35  ;;  %3124 = vmatmul.mubr.f32.vlgmr.msra.gmra.mrb[64].mxu1 %v7832_v35 }
 0x4eb   :  { %v6475_v52 = vpop.eup %6474  ;;  %v2885_v56 = vadd.f32 1.0, %v6473_v24  ;;  %5880 = vmatpush1.bf16.msra.mxu0 %v7674_v48  ;;  %5912 = vmatpush1.bf16.msra.mxu1 %v7830_v7  ;;  %v7850_v48 = vpack.c.bf16 %v3186_v14, %v3182_v53  ;;  %v3206_v53 = vld [vmem:[#allocation16 + $0x150] sm:$0xff] }
 0x4ec   :  { %v2891_v8 = vadd.f32 1.0, %v6475_v52  ;;  %5882 = vmatprep.subr.bf16.mxu0 %v7678_v3  ;;  %5914 = vmatprep.subr.bf16.mxu1 %v7834_v12  ;;  %v7854_v3 = vpack.c.bf16 %v3195_v36, %v3191_v27  ;;  %v6477_v28 = vpop.eup %6476  ;;  %v3210_v14 = vld [vmem:[#allocation16 + $0x170] sm:$0xff]  ;;  %v3215_v36 = vld [vmem:[#allocation16 + $0x198] sm:$0xff] }
 0x4ed   :  { %6480 = vrcp.f32 %v2885_v56  ;;  %3292 = vmatprep.mubr.f32.mxu0 %v8376_v51  ;;  %3363 = vmatprep.mubr.f32.mxu1 %v8376_v51  ;;  %v6479_v13 = vpop.eup %6478  ;;  %v7877_v44 = vpack.c.bf16 %v3210_v14, %v3206_v53  ;;  %v3447_v53 = vld [vmem:[#allocation14 + $0x128] sm:$0xff] }
 0x4ee   :  { %6482 = vrcp.f32 %v2891_v8  ;;  %v7870_v8 = vpack.c.bf16 %v3211_v5, %v3207_v23 }
 0x4ef   :  { %5884 = vmatpush1.bf16.msra.mxu0 %v7684_v4  ;;  %5916 = vmatpush1.bf16.msra.mxu1 %v7840_v43  ;;  %v7862_v4 = vpack.c.bf16 %v3203_v0, %v3199_v19  ;;  %v3214_v19 = vld [vmem:[#allocation16 + $0x190] sm:$0xff] }
 0x4f0   :  { %5886 = vmatprep.subr.bf16.mxu0 %v7688_v17  ;;  %5918 = vmatprep.subr.bf16.mxu1 %v7844_v47  ;;  %v3198_v17 = vld [vmem:[#allocation16 + $0x110] sm:$0xff] }
 0x4f1   :  { %v3218_v0 = vld [vmem:[#allocation16 + $0x1b0] sm:$0xff] }
 0x4f3   :  { %5888 = vmatpush1.bf16.msra.mxu0 %v7694_v59  ;;  %5920 = vmatpush1.bf16.msra.mxu1 %v7850_v48  ;;  %v7866_v59 = vpack.c.bf16 %v3202_v42, %v3198_v17  ;;  %v3227_v17 = vld [vmem:[#allocation16 + $0x1f8] sm:$0xff]  ;;  %v3222_v42 = vld [vmem:[#allocation16 + $0x1d0] sm:$0xff] }
 0x4f4   :  { %5890 = vmatprep.subr.bf16.mxu0 %v7698_v31  ;;  %5922 = vmatprep.subr.bf16.mxu1 %v7854_v3  ;;  %v2898_v31 = vadd.f32 1.0, %v6477_v28  ;;  %v3226_v28 = vld [vmem:[#allocation16 + $0x1f0] sm:$0xff] }
 0x4f5   :  { %v7894_v23 = vpack.c.bf16 %v3226_v28, %v3222_v42  ;;  %v3454_v42 = vld [vmem:[#allocation14 + $0x160] sm:$0xff] }
 0x4f6   :  { %6484 = vrcp.f32 %v2898_v31  ;;  %v3443_v31 = vld [vmem:[#allocation14 + $0x108] sm:$0xff] }
 0x4f7   :  { %v6481_v24 = vpop.eup %6480  ;;  %5892 = vmatpush1.bf16.msra.mxu0 %v7702_v1  ;;  %5924 = vmatpush1.bf16.msra.mxu1 %v7858_v16  ;;  %v7947_v14 = vpack.c.bf16 %v3447_v53, %v3443_v31  ;;  %v8397_v53 = vld [vmem:[#allocation54_spill] sm:$0xff] }
 0x4f8   :  { %v6483_v52 = vpop.eup %6482  ;;  %v2902_v56 = vmul.f32 %v6481_v24, %v6479_v13  ;;  %5894 = vmatprep.subr.bf16.mxu0 %v7706_v37  ;;  %5926 = vmatprep.subr.bf16.mxu1 %v7862_v4  ;;  %v7881_v37 = vpack.c.bf16 %v3219_v62, %v3215_v36  ;;  %v3434_v24 = vld [vmem:[#allocation14 + $0xc0] sm:$0xff] }
 0x4f9   :  { %v2901_v27 = vmul.f32 %v6483_v52, %v7717_v41  ;;  %v3223_v41 = vld [vmem:[#allocation16 + $0x1d8] sm:$0xff]  ;;  %v3438_v52 = vld [vmem:[#allocation14 + $0xe0] sm:$0xff] }
 0x4fa   :  { %v3446_v36 = vld [vmem:[#allocation14 + $0x120] sm:$0xff] }
 0x4fb   :  { %v7873_v1 = vadd.f32 %v2902_v56, %v2901_v27  ;;  %5896 = vmatpush1.bf16.msra.mxu0 %v7710_v15  ;;  %5928 = vmatpush1.bf16.msra.mxu1 %v7866_v59  ;;  %v7886_v15 = vpack.c.bf16 %v3218_v0, %v3214_v19  ;;  %v7943_v56 = vpack.c.bf16 %v3438_v52, %v3434_v24  ;;  %v3442_v27 = vld [vmem:[#allocation14 + $0x100] sm:$0xff]  ;;  %v3451_v19 = vld [vmem:[#allocation14 + $0x148] sm:$0xff] }
 0x4fc   :  { %5898 = vmatprep.subr.bf16.mxu0 %v7714_v22  ;;  %5930 = vmatprep.subr.bf16.mxu1 %v7870_v8  ;;  %v7890_v22 = vpack.c.bf16 %v3227_v17, %v3223_v41  ;;  %v7949_v62 = vpack.c.bf16 %v3446_v36, %v3442_v27  ;;  %v3455_v0 = vld [vmem:[#allocation14 + $0x168] sm:$0xff]  ;;  %v3450_v17 = vld [vmem:[#allocation14 + $0x140] sm:$0xff] }
 0x4fd   :  { %6486 = vtanh.f32 %v7873_v1  ;;  %v7953_v41 = vpack.c.bf16 %v3455_v0, %v3451_v19  ;;  %v7955_v28 = vpack.c.bf16 %v3454_v42, %v3450_v17  ;;  %v8396_v52 = vld [vmem:[#allocation37_spill] sm:$0xff]  ;;  %v8398_v0 = vld [vmem:[#allocation38_spill] sm:$0xff]  ;;  %v8399_v42 = vld [vmem:[#allocation55_spill] sm:$0xff] }
 0x4ff   :  { %5900 = vmatpush1.bf16.msra.mxu0 %v7721_v9  ;;  %5932 = vmatpush1.bf16.msra.mxu1 %v7877_v44 }
 0x500   :  { %5902 = vmatprep.subr.bf16.mxu0 %v7725_v26  ;;  %5934 = vmatprep.subr.bf16.mxu1 %v7881_v37  ;;  %v6485_v9 = vpop.eup %6484 }
 0x503   :  { %5904 = vmatpush1.bf16.msra.mxu0 %v7730_v45  ;;  %5936 = vmatpush1.bf16.msra.mxu1 %v7886_v15  ;;  %v3411_v45 = vld [vmem:[#allocation14 + $0x8] sm:$0xff] }
 0x504   :  { %5906 = vmatprep.subr.bf16.mxu0 %v7734_v33  ;;  %5938 = vmatprep.subr.bf16.mxu1 %v7890_v22  ;;  %v3415_v33 = vld [vmem:[#allocation14 + $0x28] sm:$0xff] }
 0x507   :  { %v6487_v5 = vpop.eup %6486  ;;  %5908 = vmatpush1.bf16.msra.mxu0 %v7738_v32  ;;  %5940 = vmatpush1.bf16.msra.mxu1 %v7894_v23  ;;  %v7923_v32 = vpack.c.bf16 %v3415_v33, %v3411_v45  ;;  %v3458_v33 = vld [vmem:[#allocation14 + $0x180] sm:$0xff] }
 0x508   :  { %v7900_v26 = vmul.f32 %v6487_v5, %v6485_v9  ;;  %5974 = vmatprep.subr.bf16.mxu1 %v7767_v63  ;;  %v3410_v63 = vld [vmem:[#allocation14] sm:$0xff]  ;;  %v3459_v9 = vld [vmem:[#allocation14 + $0x188] sm:$0xff] }
 0x509   :  { %5942 = vmatprep.subr.bf16.mxu0 %v7923_v32  ;;  %v3463_v5 = vld [vmem:[#allocation14 + $0x1a8] sm:$0xff] }
 0x50a   :  { %3293 = vmatmul.mubr.f32.vlgmr.msra.gmra.mrb[34].mxu0 %v7900_v26  ;;  %3364 = vmatmul.mubr.f32.vlgmr.msra.gmra.mrb[66].mxu1 %v7900_v26  ;;  %v7959_v45 = vpack.c.bf16 %v3463_v5, %v3459_v9 }
 0x50b   :  { %5976 = vmatpush1.bf16.msra.mxu1 %v7769_v30  ;;  %3538 = vmatprep.mubr.f32.mxu0 %v8376_v51  ;;  %v3414_v30 = vld [vmem:[#allocation14 + $0x20] sm:$0xff] }
 0x50c   :  { %5978 = vmatprep.subr.bf16.mxu1 %v7773_v39  ;;  %3609 = vmatprep.mubr.f32.mxu1 %v8376_v51  ;;  %v7925_v39 = vpack.c.bf16 %v3414_v30, %v3410_v63  ;;  %v3462_v63 = vld [vmem:[#allocation14 + $0x1a0] sm:$0xff] }
 0x50d   :  { %v7961_v30 = vpack.c.bf16 %v3462_v63, %v3458_v33 }
 0x50e   :  { %5944 = vmatpush1.bf16.msra.mxu0 %v7925_v39 }
 0x50f   :  { %5980 = vmatpush1.bf16.msra.mxu1 %v7775_v54  ;;  %v3419_v54 = vld [vmem:[#allocation14 + $0x48] sm:$0xff] }
 0x510   :  { %5982 = vmatprep.subr.bf16.mxu1 %v7779_v18  ;;  %v3423_v18 = vld [vmem:[#allocation14 + $0x68] sm:$0xff] }
 0x513   :  { %5984 = vmatpush1.bf16.msra.mxu1 %v7781_v34  ;;  %v7929_v34 = vpack.c.bf16 %v3423_v18, %v3419_v54  ;;  %v3467_v54 = vld [vmem:[#allocation14 + $0x1c8] sm:$0xff] }
 0x514   :  { %5986 = vmatprep.subr.bf16.mxu1 %v7785_v11  ;;  %v3418_v11 = vld [vmem:[#allocation14 + $0x40] sm:$0xff]  ;;  %v3471_v18 = vld [vmem:[#allocation14 + $0x1e8] sm:$0xff] }
 0x515   :  { %5946 = vmatprep.subr.bf16.mxu0 %v7929_v34 }
 0x517   :  { %5988 = vmatpush1.bf16.msra.mxu1 %v7787_v61  ;;  %v3422_v61 = vld [vmem:[#allocation14 + $0x60] sm:$0xff] }
 0x518   :  { %5990 = vmatprep.subr.bf16.mxu1 %v7791_v57  ;;  %v7931_v57 = vpack.c.bf16 %v3422_v61, %v3418_v11  ;;  %v7965_v11 = vpack.c.bf16 %v3471_v18, %v3467_v54  ;;  %v3466_v61 = vld [vmem:[#allocation14 + $0x1c0] sm:$0xff] }
 0x51a   :  { %5948 = vmatpush1.bf16.msra.mxu0 %v7931_v57 }
 0x51b   :  { %5992 = vmatpush1.bf16.msra.mxu1 %v7793_v25  ;;  %v3427_v25 = vld [vmem:[#allocation14 + $0x88] sm:$0xff] }
 0x51c   :  { %5994 = vmatprep.subr.bf16.mxu1 %v7797_v49  ;;  %v3431_v49 = vld [vmem:[#allocation14 + $0xa8] sm:$0xff] }
 0x51f   :  { %5996 = vmatpush1.bf16.msra.mxu1 %v7799_v50  ;;  %v7935_v50 = vpack.c.bf16 %v3431_v49, %v3427_v25  ;;  %v3470_v25 = vld [vmem:[#allocation14 + $0x1e0] sm:$0xff] }
 0x520   :  { %5998 = vmatprep.subr.bf16.mxu1 %v7803_v29  ;;  %v3426_v29 = vld [vmem:[#allocation14 + $0x80] sm:$0xff]  ;;  %v7967_v49 = vpack.c.bf16 %v3470_v25, %v3466_v61 }
 0x521   :  { %5950 = vmatprep.subr.bf16.mxu0 %v7935_v50 }
 0x523   :  { %6000 = vmatpush1.bf16.msra.mxu1 %v7805_v55  ;;  %v3430_v55 = vld [vmem:[#allocation14 + $0xa0] sm:$0xff] }
 0x524   :  { %6002 = vmatprep.subr.bf16.mxu1 %v7809_v6  ;;  %v7937_v6 = vpack.c.bf16 %v3430_v55, %v3426_v29  ;;  %v3651_v29 = vld [vmem:[#allocation16 + $0x8] sm:$0xff] }
 0x525   :  { %v3655_v55 = vld [vmem:[#allocation16 + $0x28] sm:$0xff] }
 0x526   :  { %5952 = vmatpush1.bf16.msra.mxu0 %v7937_v6 }
 0x527   :  { %6004 = vmatpush1.bf16.msra.mxu1 %v7811_v60  ;;  %v3435_v60 = vld [vmem:[#allocation14 + $0xc8] sm:$0xff] }
 0x528   :  { %6038 = vmatprep.subr.bf16.mxu1 %v7815_v10  ;;  %v3439_v10 = vld [vmem:[#allocation14 + $0xe8] sm:$0xff] }
 0x529   :  { %v7941_v13 = vpack.c.bf16 %v3439_v10, %v3435_v60  ;;  %v7971_v60 = vpack.c.bf16 %v3655_v55, %v3651_v29 }
 0x52b   :  { %5954 = vmatprep.subr.bf16.mxu0 %v7941_v13 }
 0x52c   :  { %5956 = vmatpush1.bf16.msra.mxu0 %v7943_v56 }
 0x52d   :  { %5958 = vmatprep.subr.bf16.mxu0 %v7947_v14 }
 0x530   :  { %5960 = vmatpush1.bf16.msra.mxu0 %v7949_v62 }
 0x531   :  { %5962 = vmatprep.subr.bf16.mxu0 %v7953_v41 }
 0x534   :  { %5964 = vmatpush1.bf16.msra.mxu0 %v7955_v28 }
 0x535   :  { %5966 = vmatprep.subr.bf16.mxu0 %v7959_v45 }
 0x538   :  { %5968 = vmatpush1.bf16.msra.mxu0 %v7961_v30 }
 0x539   :  { %5970 = vmatprep.subr.bf16.mxu0 %v7965_v11 }
 0x53c   :  { %5972 = vmatpush1.bf16.msra.mxu0 %v7967_v49 }
 0x53d   :  { %6006 = vmatprep.subr.bf16.mxu0 %v7971_v60 }
 0x5bd   :  { %v3054_v10 = vpop.f32.mrb[32].mxu0  ;;  %v3125_v24 = vpop.f32.mrb[64].mxu1 }
 0x5be   :  { %v3130_v31 = vadd.f32 %v3054_v10, %v8396_v52  ;;  %v3132_v27 = vadd.f32 %v3125_v24, %v8397_v53  ;;  %v3056_v36 = vpop.f32.mrb[33].mxu0  ;;  %v3127_v19 = vpop.f32.mrb[65].mxu1 }
 0x5bf   :  { %v3131_v17 = vadd.f32 %v3056_v36, %v8398_v0  ;;  %v3133_v9 = vadd.f32 %v3127_v19, %v8399_v42 }
 0x5c0   :  { %v5220_v5 = vmul.f32 -1.442695, %v3130_v31 }
 0x5c1   :  { %v5221_v33 = vmul.f32 -1.442695, %v3131_v17  ;;  %v5222_v63 = vmul.f32 -1.442695, %v3133_v9  ;;  %v8400_v17 = vld [vmem:[#allocation35_spill] sm:$0xff]  ;;  %v8401_v9 = vld [vmem:[#allocation68_spill] sm:$0xff] }
 0x5c2   :  { %6488 = vpow2.f32 %v5220_v5 }
 0x5c3   :  { %6490 = vpow2.f32 %v5221_v33 }
 0x5c4   :  { %6492 = vpow2.f32 %v5222_v63  ;;  %v8402_v63 = vld [vmem:[#allocation36_spill] sm:$0xff] }
 0x5c5   :  { %6494 = vtanh.f32 %v3132_v27 }
 0x5cc   :  { %v6489_v54 = vpop.eup %6488 }
 0x5cd   :  { %v6491_v18 = vpop.eup %6490  ;;  %v3137_v61 = vadd.f32 1.0, %v6489_v54 }
 0x5ce   :  { %v3143_v25 = vadd.f32 1.0, %v6491_v18  ;;  %v6493_v29 = vpop.eup %6492  ;;  %v8403_v18 = vld [vmem:[#allocation69_spill] sm:$0xff] }
 0x5cf   :  { %6496 = vrcp.f32 %v3137_v61  ;;  %v6495_v55 = vpop.eup %6494  ;;  %v3150_v53 = vadd.f32 1.0, %v6493_v29 }
 0x5d0   :  { %6498 = vrcp.f32 %v3143_v25 }
 0x5d1   :  { %6500 = vrcp.f32 %v3150_v53 }
 0x5d9   :  { %v6497_v10 = vpop.eup %6496 }
 0x5da   :  { %v6499_v24 = vpop.eup %6498  ;;  %v3154_v52 = vmul.f32 %v6497_v10, %v6495_v55  ;;  %v3654_v55 = vld [vmem:[#allocation16 + $0x20] sm:$0xff]  ;;  %v3659_v10 = vld [vmem:[#allocation16 + $0x48] sm:$0xff] }
 0x5db   :  { %v3153_v31 = vmul.f32 %v6499_v24, %v7823_v40  ;;  %v3650_v40 = vld [vmem:[#allocation16] sm:$0xff]  ;;  %v3663_v24 = vld [vmem:[#allocation16 + $0x68] sm:$0xff] }
 0x5dd   :  { %v7979_v36 = vadd.f32 %v3154_v52, %v3153_v31  ;;  %v3294_v19 = vpop.f32.mrb[34].mxu0  ;;  %v3365_v0 = vpop.f32.mrb[66].mxu1 }
 0x5de   :  { %v3370_v42 = vadd.f32 %v3294_v19, %v8400_v17  ;;  %v3372_v27 = vadd.f32 %v3365_v0, %v8401_v9  ;;  %v3296_v5 = vpop.f32.mrb[35].mxu0  ;;  %v3367_v33 = vpop.f32.mrb[67].mxu1  ;;  %v7986_v19 = vpack.c.bf16 %v3654_v55, %v3650_v40  ;;  %v7990_v17 = vpack.c.bf16 %v3663_v24, %v3659_v10  ;;  %v3658_v9 = vld [vmem:[#allocation16 + $0x40] sm:$0xff]  ;;  %v3675_v10 = vld [vmem:[#allocation16 + $0xc8] sm:$0xff] }
 0x5df   :  { %v3371_v54 = vadd.f32 %v3296_v5, %v8402_v63  ;;  %v3373_v61 = vadd.f32 %v3367_v33, %v8403_v18  ;;  %6502 = vtanh.f32 %v7979_v36  ;;  %v6501_v52 = vpop.eup %6500  ;;  %v3662_v5 = vld [vmem:[#allocation16 + $0x60] sm:$0xff]  ;;  %v3667_v33 = vld [vmem:[#allocation16 + $0x88] sm:$0xff] }
 0x5e0   :  { %v5223_v25 = vmul.f32 -1.442695, %v3370_v42  ;;  %v3671_v42 = vld [vmem:[#allocation16 + $0xa8] sm:$0xff]  ;;  %v3666_v40 = vld [vmem:[#allocation16 + $0x80] sm:$0xff] }
 0x5e1   :  { %v5224_v29 = vmul.f32 -1.442695, %v3371_v54  ;;  %v5225_v31 = vmul.f32 -1.442695, %v3373_v61  ;;  %v7996_v61 = vpack.c.bf16 %v3662_v5, %v3658_v9  ;;  %v3670_v55 = vld [vmem:[#allocation16 + $0xa0] sm:$0xff]  ;;  %v3679_v24 = vld [vmem:[#allocation16 + $0xe8] sm:$0xff] }
 0x5e2   :  { %6504 = vpow2.f32 %v5223_v25  ;;  %v3682_v5 = vld [vmem:[#allocation16 + $0x100] sm:$0xff] }
 0x5e3   :  { %6506 = vpow2.f32 %v5224_v29  ;;  %v8000_v29 = vpack.c.bf16 %v3671_v42, %v3667_v33  ;;  %v3691_v42 = vld [vmem:[#allocation16 + $0x148] sm:$0xff] }
 0x5e4   :  { %6508 = vpow2.f32 %v5225_v31  ;;  %v3687_v31 = vld [vmem:[#allocation16 + $0x128] sm:$0xff] }
 0x5e5   :  { %6510 = vtanh.f32 %v3372_v27  ;;  %v3674_v27 = vld [vmem:[#allocation16 + $0xc0] sm:$0xff] }
 0x5e9   :  { %v6503_v53 = vpop.eup %6502 }
 0x5ea   :  { %v7988_v0 = vmul.f32 %v6503_v53, %v6501_v52  ;;  %v3678_v52 = vld [vmem:[#allocation16 + $0xe0] sm:$0xff]  ;;  %v3683_v53 = vld [vmem:[#allocation16 + $0x108] sm:$0xff] }
 0x5eb   :  { %v8014_v9 = vpack.c.bf16 %v3678_v52, %v3674_v27  ;;  %v3699_v52 = vld [vmem:[#allocation16 + $0x188] sm:$0xff] }
 0x5ec   :  { %v6505_v63 = vpop.eup %6504  ;;  %3539 = vmatmul.mubr.f32.vlgmr.msra.gmra.mrb[36].mxu0 %v7988_v0  ;;  %3610 = vmatmul.mubr.f32.vlgmr.msra.gmra.mrb[68].mxu1 %v7988_v0 }
 0x5ed   :  { %v6507_v54 = vpop.eup %6506  ;;  %v3377_v18 = vadd.f32 1.0, %v6505_v63  ;;  %6008 = vmatpush1.bf16.msra.mxu0 %v7986_v19  ;;  %6040 = vmatpush1.bf16.msra.mxu1 %v7830_v7  ;;  %v8006_v7 = vpack.c.bf16 %v3670_v55, %v3666_v40  ;;  %v3695_v63 = vld [vmem:[#allocation16 + $0x168] sm:$0xff] }
 0x5ee   :  { %v3383_v25 = vadd.f32 1.0, %v6507_v54  ;;  %6010 = vmatprep.subr.bf16.mxu0 %v7990_v17  ;;  %6042 = vmatprep.subr.bf16.mxu1 %v7834_v12  ;;  %v8010_v12 = vpack.c.bf16 %v3679_v24, %v3675_v10  ;;  %v6509_v33 = vpop.eup %6508  ;;  %v3690_v10 = vld [vmem:[#allocation16 + $0x140] sm:$0xff] }
 0x5ef   :  { %6512 = vrcp.f32 %v3377_v18  ;;  %3778 = vmatprep.mubr.f32.mxu0 %v8376_v51  ;;  %3849 = vmatprep.mubr.f32.mxu1 %v8376_v51  ;;  %v6511_v54 = vpop.eup %6510  ;;  %v3390_v55 = vadd.f32 1.0, %v6509_v33  ;;  %v3694_v24 = vld [vmem:[#allocation16 + $0x160] sm:$0xff]  ;;  %v3711_v33 = vld [vmem:[#allocation16 + $0x1e8] sm:$0xff] }
 0x5f0   :  { %6514 = vrcp.f32 %v3383_v25 }
 0x5f1   :  { %6012 = vmatpush1.bf16.msra.mxu0 %v7996_v61  ;;  %6044 = vmatpush1.bf16.msra.mxu1 %v7840_v43  ;;  %v8018_v43 = vpack.c.bf16 %v3687_v31, %v3683_v53  ;;  %v3703_v53 = vld [vmem:[#allocation16 + $0x1a8] sm:$0xff]  ;;  %6516 = vrcp.f32 %v3390_v55  ;;  %v3926_v55 = vld [vmem:[#allocation14 + $0xf0] sm:$0xff] }
 0x5f2   :  { %6014 = vmatprep.subr.bf16.mxu0 %v8000_v29  ;;  %6046 = vmatprep.subr.bf16.mxu1 %v7844_v47  ;;  %v3686_v47 = vld [vmem:[#allocation16 + $0x120] sm:$0xff] }
 0x5f5   :  { %6016 = vmatpush1.bf16.msra.mxu0 %v8006_v7  ;;  %6048 = vmatpush1.bf16.msra.mxu1 %v7850_v48  ;;  %v8022_v48 = vpack.c.bf16 %v3686_v47, %v3682_v5  ;;  %v3698_v5 = vld [vmem:[#allocation16 + $0x180] sm:$0xff] }
 0x5f6   :  { %6018 = vmatprep.subr.bf16.mxu0 %v8010_v12  ;;  %6050 = vmatprep.subr.bf16.mxu1 %v7854_v3  ;;  %v8026_v3 = vpack.c.bf16 %v3695_v63, %v3691_v42  ;;  %v3702_v47 = vld [vmem:[#allocation16 + $0x1a0] sm:$0xff] }
 0x5f7   :  { %v3710_v63 = vld [vmem:[#allocation16 + $0x1e0] sm:$0xff] }
 0x5f9   :  { %v6513_v18 = vpop.eup %6512  ;;  %6020 = vmatpush1.bf16.msra.mxu0 %v8014_v9  ;;  %6052 = vmatpush1.bf16.msra.mxu1 %v7858_v16  ;;  %v8033_v16 = vpack.c.bf16 %v3694_v24, %v3690_v10  ;;  %v3931_v24 = vld [vmem:[#allocation14 + $0x118] sm:$0xff] }
 0x5fa   :  { %v6515_v25 = vpop.eup %6514  ;;  %v3394_v40 = vmul.f32 %v6513_v18, %v6511_v54  ;;  %6022 = vmatprep.subr.bf16.mxu0 %v8018_v43  ;;  %6054 = vmatprep.subr.bf16.mxu1 %v7862_v4  ;;  %v8037_v4 = vpack.c.bf16 %v3703_v53, %v3699_v52  ;;  %v3930_v53 = vld [vmem:[#allocation14 + $0x110] sm:$0xff] }
 0x5fb   :  { %v3393_v27 = vmul.f32 %v6515_v25, %v7873_v1  ;;  %v3707_v1 = vld [vmem:[#allocation16 + $0x1c8] sm:$0xff] }
 0x5fc   :  { %v8046_v42 = vpack.c.bf16 %v3711_v33, %v3707_v1  ;;  %v3939_v1 = vld [vmem:[#allocation14 + $0x158] sm:$0xff] }
 0x5fd   :  { %v8029_v31 = vadd.f32 %v3394_v40, %v3393_v27  ;;  %6024 = vmatpush1.bf16.msra.mxu0 %v8022_v48  ;;  %6056 = vmatpush1.bf16.msra.mxu1 %v7866_v59  ;;  %v8042_v59 = vpack.c.bf16 %v3702_v47, %v3698_v5  ;;  %v3922_v40 = vld [vmem:[#allocation14 + $0xd0] sm:$0xff]  ;;  %v3935_v27 = vld [vmem:[#allocation14 + $0x138] sm:$0xff] }
 0x5fe   :  { %6026 = vmatprep.subr.bf16.mxu0 %v8026_v3  ;;  %6058 = vmatprep.subr.bf16.mxu1 %v7870_v8  ;;  %v3706_v8 = vld [vmem:[#allocation16 + $0x1c0] sm:$0xff]  ;;  %v8099_v10 = vpack.c.bf16 %v3926_v55, %v3922_v40  ;;  %v8103_v52 = vpack.c.bf16 %v3935_v27, %v3931_v24  ;;  %v3934_v5 = vld [vmem:[#allocation14 + $0x130] sm:$0xff]  ;;  %v3943_v33 = vld [vmem:[#allocation14 + $0x178] sm:$0xff] }
 0x5ff   :  { %6518 = vtanh.f32 %v8029_v31  ;;  %v8050_v54 = vpack.c.bf16 %v3710_v63, %v3706_v8  ;;  %v8105_v47 = vpack.c.bf16 %v3934_v5, %v3930_v53  ;;  %v8109_v8 = vpack.c.bf16 %v3943_v33, %v3939_v1  ;;  %v3938_v63 = vld [vmem:[#allocation14 + $0x150] sm:$0xff]  ;;  %v8404_v27 = vld [vmem:[#allocation40_spill] sm:$0xff] }
 0x600   :  { %v8405_v5 = vld [vmem:[#allocation56_spill] sm:$0xff] }
 0x601   :  { %6028 = vmatpush1.bf16.msra.mxu0 %v8033_v16  ;;  %6060 = vmatpush1.bf16.msra.mxu1 %v7877_v44  ;;  %v6517_v44 = vpop.eup %6516 }
 0x602   :  { %6030 = vmatprep.subr.bf16.mxu0 %v8037_v4  ;;  %6062 = vmatprep.subr.bf16.mxu1 %v7881_v37 }
 0x605   :  { %6032 = vmatpush1.bf16.msra.mxu0 %v8042_v59  ;;  %6064 = vmatpush1.bf16.msra.mxu1 %v7886_v15  ;;  %v3899_v15 = vld [vmem:[#allocation14 + $0x18] sm:$0xff] }
 0x606   :  { %6034 = vmatprep.subr.bf16.mxu0 %v8046_v42  ;;  %6066 = vmatprep.subr.bf16.mxu1 %v7890_v22  ;;  %v3903_v22 = vld [vmem:[#allocation14 + $0x38] sm:$0xff] }
 0x609   :  { %v6519_v18 = vpop.eup %6518  ;;  %6036 = vmatpush1.bf16.msra.mxu0 %v8050_v54  ;;  %6068 = vmatpush1.bf16.msra.mxu1 %v7894_v23  ;;  %v8079_v23 = vpack.c.bf16 %v3903_v22, %v3899_v15  ;;  %v3947_v15 = vld [vmem:[#allocation14 + $0x198] sm:$0xff] }
 0x60a   :  { %v8056_v37 = vmul.f32 %v6519_v18, %v6517_v44  ;;  %6070 = vmatprep.subr.bf16.mxu0 %v7923_v32  ;;  %v3898_v32 = vld [vmem:[#allocation14 + $0x10] sm:$0xff]  ;;  %v3951_v22 = vld [vmem:[#allocation14 + $0x1b8] sm:$0xff] }
 0x60b   :  { %6102 = vmatprep.subr.bf16.mxu1 %v8079_v23  ;;  %v3942_v44 = vld [vmem:[#allocation14 + $0x170] sm:$0xff] }
 0x60c   :  { %3779 = vmatmul.mubr.f32.vlgmr.msra.gmra.mrb[38].mxu0 %v8056_v37  ;;  %3850 = vmatmul.mubr.f32.vlgmr.msra.gmra.mrb[70].mxu1 %v8056_v37  ;;  %v8111_v18 = vpack.c.bf16 %v3942_v44, %v3938_v63  ;;  %v8406_v44 = vld [vmem:[#allocation42_spill] sm:$0xff] }
 0x60d   :  { %6072 = vmatpush1.bf16.msra.mxu0 %v7925_v39  ;;  %4024 = vmatprep.mubr.f32.mxu0 %v8376_v51  ;;  %v3902_v39 = vld [vmem:[#allocation14 + $0x30] sm:$0xff] }
 0x60e   :  { %6074 = vmatprep.subr.bf16.mxu0 %v7929_v34  ;;  %4095 = vmatprep.mubr.f32.mxu1 %v8376_v51  ;;  %v8081_v34 = vpack.c.bf16 %v3902_v39, %v3898_v32  ;;  %v8115_v32 = vpack.c.bf16 %v3951_v22, %v3947_v15  ;;  %v3946_v39 = vld [vmem:[#allocation14 + $0x190] sm:$0xff]  ;;  %v8407_v22 = vld [vmem:[#allocation57_spill] sm:$0xff] }
 0x610   :  { %6104 = vmatpush1.bf16.msra.mxu1 %v8081_v34 }
 0x611   :  { %6076 = vmatpush1.bf16.msra.mxu0 %v7931_v57  ;;  %v3907_v57 = vld [vmem:[#allocation14 + $0x58] sm:$0xff] }
 0x612   :  { %6078 = vmatprep.subr.bf16.mxu0 %v7935_v50  ;;  %v3911_v50 = vld [vmem:[#allocation14 + $0x78] sm:$0xff] }
 0x615   :  { %6080 = vmatpush1.bf16.msra.mxu0 %v7937_v6  ;;  %v8085_v6 = vpack.c.bf16 %v3911_v50, %v3907_v57  ;;  %v3950_v57 = vld [vmem:[#allocation14 + $0x1b0] sm:$0xff] }
 0x616   :  { %6082 = vmatprep.subr.bf16.mxu0 %v7941_v13  ;;  %v3906_v13 = vld [vmem:[#allocation14 + $0x50] sm:$0xff]  ;;  %v8117_v50 = vpack.c.bf16 %v3950_v57, %v3946_v39 }
 0x617   :  { %6106 = vmatprep.subr.bf16.mxu1 %v8085_v6 }
 0x619   :  { %6084 = vmatpush1.bf16.msra.mxu0 %v7943_v56  ;;  %v3910_v56 = vld [vmem:[#allocation14 + $0x70] sm:$0xff] }
 0x61a   :  { %6086 = vmatprep.subr.bf16.mxu0 %v7947_v14  ;;  %v8087_v14 = vpack.c.bf16 %v3910_v56, %v3906_v13  ;;  %v3955_v13 = vld [vmem:[#allocation14 + $0x1d8] sm:$0xff] }
 0x61b   :  { %v3959_v56 = vld [vmem:[#allocation14 + $0x1f8] sm:$0xff] }
 0x61c   :  { %6108 = vmatpush1.bf16.msra.mxu1 %v8087_v14 }
 0x61d   :  { %6088 = vmatpush1.bf16.msra.mxu0 %v7949_v62  ;;  %v3915_v62 = vld [vmem:[#allocation14 + $0x98] sm:$0xff] }
 0x61e   :  { %6090 = vmatprep.subr.bf16.mxu0 %v7953_v41  ;;  %v3919_v41 = vld [vmem:[#allocation14 + $0xb8] sm:$0xff] }
 0x621   :  { %6092 = vmatpush1.bf16.msra.mxu0 %v7955_v28  ;;  %v8091_v28 = vpack.c.bf16 %v3919_v41, %v3915_v62  ;;  %v8121_v62 = vpack.c.bf16 %v3959_v56, %v3955_v13  ;;  %v3954_v41 = vld [vmem:[#allocation14 + $0x1d0] sm:$0xff] }
 0x622   :  { %6094 = vmatprep.subr.bf16.mxu0 %v7959_v45  ;;  %v3914_v45 = vld [vmem:[#allocation14 + $0x90] sm:$0xff] }
 0x623   :  { %6110 = vmatprep.subr.bf16.mxu1 %v8091_v28 }
 0x625   :  { %6096 = vmatpush1.bf16.msra.mxu0 %v7961_v30  ;;  %v3918_v30 = vld [vmem:[#allocation14 + $0xb0] sm:$0xff] }
 0x626   :  { %6098 = vmatprep.subr.bf16.mxu0 %v7965_v11  ;;  %v8093_v11 = vpack.c.bf16 %v3918_v30, %v3914_v45  ;;  %v3958_v45 = vld [vmem:[#allocation14 + $0x1f0] sm:$0xff] }
 0x627   :  { %v8123_v30 = vpack.c.bf16 %v3958_v45, %v3954_v41 }
 0x628   :  { %6112 = vmatpush1.bf16.msra.mxu1 %v8093_v11 }
 0x629   :  { %6100 = vmatpush1.bf16.msra.mxu0 %v7967_v49  ;;  %v3923_v49 = vld [vmem:[#allocation14 + $0xd8] sm:$0xff] }
 0x62a   :  { %6134 = vmatprep.subr.bf16.mxu0 %v7971_v60  ;;  %v3927_v60 = vld [vmem:[#allocation14 + $0xf8] sm:$0xff] }
 0x62b   :  { %v8097_v25 = vpack.c.bf16 %v3927_v60, %v3923_v49  ;;  %v4139_v49 = vld [vmem:[#allocation16 + $0x18] sm:$0xff] }
 0x62c   :  { %v4143_v60 = vld [vmem:[#allocation16 + $0x38] sm:$0xff] }
 0x62d   :  { %6114 = vmatprep.subr.bf16.mxu1 %v8097_v25  ;;  %v8127_v40 = vpack.c.bf16 %v4143_v60, %v4139_v49 }
 0x62e   :  { %6116 = vmatpush1.bf16.msra.mxu1 %v8099_v10 }
 0x62f   :  { %6118 = vmatprep.subr.bf16.mxu1 %v8103_v52 }
 0x632   :  { %6120 = vmatpush1.bf16.msra.mxu1 %v8105_v47 }
 0x633   :  { %6122 = vmatprep.subr.bf16.mxu1 %v8109_v8 }
 0x636   :  { %6124 = vmatpush1.bf16.msra.mxu1 %v8111_v18 }
 0x637   :  { %6126 = vmatprep.subr.bf16.mxu1 %v8115_v32 }
 0x63a   :  { %6128 = vmatpush1.bf16.msra.mxu1 %v8117_v50 }
 0x63b   :  { %6130 = vmatprep.subr.bf16.mxu1 %v8121_v62 }
 0x63e   :  { %6132 = vmatpush1.bf16.msra.mxu1 %v8123_v30 }
 0x63f   :  { %6166 = vmatprep.subr.bf16.mxu1 %v8127_v40 }
 0x6bf   :  { %v3540_v55 = vpop.f32.mrb[36].mxu0  ;;  %v3611_v24 = vpop.f32.mrb[68].mxu1 }
 0x6c0   :  { %v3616_v53 = vadd.f32 %v3540_v55, %v8404_v27  ;;  %v3618_v1 = vadd.f32 %v3611_v24, %v8405_v5  ;;  %v3542_v33 = vpop.f32.mrb[37].mxu0  ;;  %v3613_v63 = vpop.f32.mrb[69].mxu1 }
 0x6c1   :  { %v3617_v15 = vadd.f32 %v3542_v33, %v8406_v44  ;;  %v3619_v39 = vadd.f32 %v3613_v63, %v8407_v22 }
 0x6c2   :  { %v5226_v57 = vmul.f32 -1.442695, %v3616_v53 }
 0x6c3   :  { %v5227_v13 = vmul.f32 -1.442695, %v3617_v15  ;;  %v5228_v56 = vmul.f32 -1.442695, %v3619_v39  ;;  %v8408_v39 = vld [vmem:[#allocation31_spill] sm:$0xff] }
 0x6c4   :  { %6520 = vpow2.f32 %v5226_v57 }
 0x6c5   :  { %6522 = vpow2.f32 %v5227_v13  ;;  %v8409_v13 = vld [vmem:[#allocation66_spill] sm:$0xff] }
 0x6c6   :  { %6524 = vpow2.f32 %v5228_v56 }
 0x6c7   :  { %6526 = vtanh.f32 %v3618_v1 }
 0x6ce   :  { %v6521_v41 = vpop.eup %6520 }
 0x6cf   :  { %v6523_v45 = vpop.eup %6522  ;;  %v3623_v49 = vadd.f32 1.0, %v6521_v41 }
 0x6d0   :  { %v3629_v60 = vadd.f32 1.0, %v6523_v45  ;;  %v6525_v55 = vpop.eup %6524  ;;  %v8410_v45 = vld [vmem:[#allocation33_spill] sm:$0xff] }
 0x6d1   :  { %6528 = vrcp.f32 %v3623_v49  ;;  %v6527_v24 = vpop.eup %6526  ;;  %v3636_v44 = vadd.f32 1.0, %v6525_v55 }
 0x6d2   :  { %6530 = vrcp.f32 %v3629_v60  ;;  %v8411_v60 = vld [vmem:[#allocation67_spill] sm:$0xff] }
 0x6d3   :  { %6532 = vrcp.f32 %v3636_v44 }
 0x6db   :  { %v6529_v27 = vpop.eup %6528 }
 0x6dc   :  { %v6531_v5 = vpop.eup %6530  ;;  %v3640_v33 = vmul.f32 %v6529_v27, %v6527_v24  ;;  %v4142_v27 = vld [vmem:[#allocation16 + $0x30] sm:$0xff] }
 0x6dd   :  { %v3639_v53 = vmul.f32 %v6531_v5, %v7979_v36  ;;  %v4138_v36 = vld [vmem:[#allocation16 + $0x10] sm:$0xff]  ;;  %v4147_v5 = vld [vmem:[#allocation16 + $0x58] sm:$0xff]  ;;  %v6533_v44 = vpop.eup %6532 }
 0x6df   :  { %v8135_v63 = vadd.f32 %v3640_v33, %v3639_v53  ;;  %v3780_v15 = vpop.f32.mrb[38].mxu0  ;;  %v3851_v22 = vpop.f32.mrb[70].mxu1  ;;  %v4151_v33 = vld [vmem:[#allocation16 + $0x78] sm:$0xff] }
 0x6e0   :  { %v3856_v57 = vadd.f32 %v3780_v15, %v8408_v39  ;;  %v3858_v1 = vadd.f32 %v3851_v22, %v8409_v13  ;;  %v3782_v56 = vpop.f32.mrb[39].mxu0  ;;  %v3853_v41 = vpop.f32.mrb[71].mxu1  ;;  %v8142_v22 = vpack.c.bf16 %v4142_v27, %v4138_v36  ;;  %v8146_v13 = vpack.c.bf16 %v4151_v33, %v4147_v5  ;;  %v4154_v27 = vld [vmem:[#allocation16 + $0x90] sm:$0xff]  ;;  %v4163_v33 = vld [vmem:[#allocation16 + $0xd8] sm:$0xff] }
 0x6e1   :  { %v3857_v49 = vadd.f32 %v3782_v56, %v8410_v45  ;;  %v3859_v20 = vadd.f32 %v3853_v41, %v8411_v60  ;;  %6534 = vtanh.f32 %v8135_v63  ;;  %v4146_v56 = vld [vmem:[#allocation16 + $0x50] sm:$0xff]  ;;  %v4155_v45 = vld [vmem:[#allocation16 + $0x98] sm:$0xff] }
 0x6e2   :  { %v5229_v55 = vmul.f32 -1.442695, %v3856_v57  ;;  %v4150_v41 = vld [vmem:[#allocation16 + $0x70] sm:$0xff]  ;;  %v4159_v57 = vld [vmem:[#allocation16 + $0xb8] sm:$0xff] }
 0x6e3   :  { %v5230_v24 = vmul.f32 -1.442695, %v3857_v49  ;;  %v5231_v15 = vmul.f32 -1.442695, %v3859_v20  ;;  %v8152_v20 = vpack.c.bf16 %v4150_v41, %v4146_v56  ;;  %v8156_v36 = vpack.c.bf16 %v4159_v57, %v4155_v45  ;;  %v4158_v5 = vld [vmem:[#allocation16 + $0xb0] sm:$0xff]  ;;  %v4175_v56 = vld [vmem:[#allocation16 + $0x138] sm:$0xff] }
 0x6e4   :  { %6536 = vpow2.f32 %v5229_v55  ;;  %v4174_v45 = vld [vmem:[#allocation16 + $0x130] sm:$0xff] }
 0x6e5   :  { %6538 = vpow2.f32 %v5230_v24 }
 0x6e6   :  { %6540 = vpow2.f32 %v5231_v15  ;;  %v4171_v15 = vld [vmem:[#allocation16 + $0x118] sm:$0xff] }
 0x6e7   :  { %6542 = vtanh.f32 %v3858_v1  ;;  %v4162_v1 = vld [vmem:[#allocation16 + $0xd0] sm:$0xff] }
 0x6eb   :  { %v6535_v53 = vpop.eup %6534 }
 0x6ec   :  { %v8144_v39 = vmul.f32 %v6535_v53, %v6533_v44  ;;  %v4167_v44 = vld [vmem:[#allocation16 + $0xf8] sm:$0xff]  ;;  %v4166_v53 = vld [vmem:[#allocation16 + $0xf0] sm:$0xff] }
 0x6ed   :  { %v8170_v41 = vpack.c.bf16 %v4166_v53, %v4162_v1  ;;  %v4182_v1 = vld [vmem:[#allocation16 + $0x170] sm:$0xff] }
 0x6ee   :  { %v6537_v49 = vpop.eup %6536  ;;  %4025 = vmatmul.mubr.f32.vlgmr.msra.gmra.mrb[40].mxu0 %v8144_v39  ;;  %4096 = vmatmul.mubr.f32.vlgmr.msra.gmra.mrb[72].mxu1 %v8144_v39 }
 0x6ef   :  { %v6539_v60 = vpop.eup %6538  ;;  %v3863_v55 = vadd.f32 1.0, %v6537_v49  ;;  %6136 = vmatpush1.bf16.msra.mxu0 %v7986_v19  ;;  %6168 = vmatpush1.bf16.msra.mxu1 %v8142_v22  ;;  %v8162_v19 = vpack.c.bf16 %v4158_v5, %v4154_v27  ;;  %v4179_v49 = vld [vmem:[#allocation16 + $0x158] sm:$0xff] }
 0x6f0   :  { %v3869_v24 = vadd.f32 1.0, %v6539_v60  ;;  %6138 = vmatprep.subr.bf16.mxu0 %v7990_v17  ;;  %6170 = vmatprep.subr.bf16.mxu1 %v8146_v13  ;;  %v8166_v17 = vpack.c.bf16 %v4167_v44, %v4163_v33  ;;  %v6541_v57 = vpop.eup %6540  ;;  %v4183_v60 = vld [vmem:[#allocation16 + $0x178] sm:$0xff]  ;;  %v4178_v44 = vld [vmem:[#allocation16 + $0x150] sm:$0xff] }
 0x6f1   :  { %6544 = vrcp.f32 %v3863_v55  ;;  %4264 = vmatprep.mubr.f32.mxu0 %v8376_v51  ;;  %4335 = vmatprep.mubr.f32.mxu1 %v8376_v51  ;;  %v6543_v55 = vpop.eup %6542  ;;  %v8182_v33 = vpack.c.bf16 %v4183_v60, %v4179_v49  ;;  %v4199_v49 = vld [vmem:[#allocation16 + $0x1f8] sm:$0xff]  ;;  %v4194_v60 = vld [vmem:[#allocation16 + $0x1d0] sm:$0xff] }
 0x6f2   :  { %6546 = vrcp.f32 %v3869_v24 }
 0x6f3   :  { %6140 = vmatpush1.bf16.msra.mxu0 %v7996_v61  ;;  %6172 = vmatpush1.bf16.msra.mxu1 %v8152_v20  ;;  %v8174_v61 = vpack.c.bf16 %v4175_v56, %v4171_v15  ;;  %v4187_v15 = vld [vmem:[#allocation16 + $0x198] sm:$0xff] }
 0x6f4   :  { %6142 = vmatprep.subr.bf16.mxu0 %v8000_v29  ;;  %6174 = vmatprep.subr.bf16.mxu1 %v8156_v36  ;;  %v4170_v29 = vld [vmem:[#allocation16 + $0x110] sm:$0xff]  ;;  %v4191_v56 = vld [vmem:[#allocation16 + $0x1b8] sm:$0xff] }
 0x6f7   :  { %6144 = vmatpush1.bf16.msra.mxu0 %v8006_v7  ;;  %6176 = vmatpush1.bf16.msra.mxu1 %v8162_v19  ;;  %v8178_v7 = vpack.c.bf16 %v4174_v45, %v4170_v29  ;;  %v8189_v29 = vpack.c.bf16 %v4182_v1, %v4178_v44  ;;  %v4186_v45 = vld [vmem:[#allocation16 + $0x190] sm:$0xff]  ;;  %v4410_v44 = vld [vmem:[#allocation14 + $0xe0] sm:$0xff] }
 0x6f8   :  { %6146 = vmatprep.subr.bf16.mxu0 %v8010_v12  ;;  %6178 = vmatprep.subr.bf16.mxu1 %v8166_v17  ;;  %v3876_v12 = vadd.f32 1.0, %v6541_v57  ;;  %v4190_v57 = vld [vmem:[#allocation16 + $0x1b0] sm:$0xff] }
 0x6fa   :  { %6548 = vrcp.f32 %v3876_v12  ;;  %v4406_v12 = vld [vmem:[#allocation14 + $0xc0] sm:$0xff] }
 0x6fb   :  { %v6545_v24 = vpop.eup %6544  ;;  %6148 = vmatpush1.bf16.msra.mxu0 %v8014_v9  ;;  %6180 = vmatpush1.bf16.msra.mxu1 %v8170_v41  ;;  %v6211_v1 = vpack.c.bf16 %v4410_v44, %v4406_v12 }
 0x6fc   :  { %v6547_v27 = vpop.eup %6546  ;;  %v3880_v5 = vmul.f32 %v6545_v24, %v6543_v55  ;;  %6150 = vmatprep.subr.bf16.mxu0 %v8018_v43  ;;  %6182 = vmatprep.subr.bf16.mxu1 %v8174_v61  ;;  %v8193_v43 = vpack.c.bf16 %v4191_v56, %v4187_v15  ;;  %v4198_v55 = vld [vmem:[#allocation16 + $0x1f0] sm:$0xff]  ;;  %v4419_v15 = vld [vmem:[#allocation14 + $0x128] sm:$0xff] }
 0x6fd   :  { %v3879_v53 = vmul.f32 %v6547_v27, %v8029_v31  ;;  %v4195_v31 = vld [vmem:[#allocation16 + $0x1d8] sm:$0xff]  ;;  %v8206_v24 = vpack.c.bf16 %v4198_v55, %v4194_v60  ;;  %v4427_v60 = vld [vmem:[#allocation14 + $0x168] sm:$0xff] }
 0x6ff   :  { %v8185_v9 = vadd.f32 %v3880_v5, %v3879_v53  ;;  %6152 = vmatpush1.bf16.msra.mxu0 %v8022_v48  ;;  %6184 = vmatpush1.bf16.msra.mxu1 %v8178_v7  ;;  %v8198_v48 = vpack.c.bf16 %v4190_v57, %v4186_v45  ;;  %v4415_v53 = vld [vmem:[#allocation14 + $0x108] sm:$0xff]  ;;  %v4414_v45 = vld [vmem:[#allocation14 + $0x100] sm:$0xff] }
 0x700   :  { %6154 = vmatprep.subr.bf16.mxu0 %v8026_v3  ;;  %6186 = vmatprep.subr.bf16.mxu1 %v8182_v33  ;;  %v8202_v3 = vpack.c.bf16 %v4199_v49, %v4195_v31  ;;  %v6213_v56 = vpack.c.bf16 %v4419_v15, %v4415_v53  ;;  %v4418_v57 = vld [vmem:[#allocation14 + $0x120] sm:$0xff]  ;;  %v4423_v49 = vld [vmem:[#allocation14 + $0x148] sm:$0xff] }
 0x701   :  { %6550 = vtanh.f32 %v8185_v9  ;;  %v6215_v31 = vpack.c.bf16 %v4418_v57, %v4414_v45  ;;  %v6217_v55 = vpack.c.bf16 %v4427_v60, %v4423_v49  ;;  %v8414_v53 = vld [vmem:[#allocation46_spill] sm:$0xff] }
 0x703   :  { %6156 = vmatpush1.bf16.msra.mxu0 %v8033_v16  ;;  %6188 = vmatpush1.bf16.msra.mxu1 %v8189_v29 }
 0x704   :  { %6158 = vmatprep.subr.bf16.mxu0 %v8037_v4  ;;  %6190 = vmatprep.subr.bf16.mxu1 %v8193_v43  ;;  %v6549_v16 = vpop.eup %6548 }
 0x707   :  { %6160 = vmatpush1.bf16.msra.mxu0 %v8042_v59  ;;  %6192 = vmatpush1.bf16.msra.mxu1 %v8198_v48  ;;  %v4383_v59 = vld [vmem:[#allocation14 + $0x8] sm:$0xff] }
 0x708   :  { %6162 = vmatprep.subr.bf16.mxu0 %v8046_v42  ;;  %6194 = vmatprep.subr.bf16.mxu1 %v8202_v3  ;;  %v4387_v42 = vld [vmem:[#allocation14 + $0x28] sm:$0xff] }
 0x70b   :  { %v6551_v27 = vpop.eup %6550  ;;  %6164 = vmatpush1.bf16.msra.mxu0 %v8050_v54  ;;  %6196 = vmatpush1.bf16.msra.mxu1 %v8206_v24  ;;  %v6197_v54 = vpack.c.bf16 %v4387_v42, %v4383_v59  ;;  %v4431_v42 = vld [vmem:[#allocation14 + $0x188] sm:$0xff] }
 0x70c   :  { %v8212_v4 = vmul.f32 %v6551_v27, %v6549_v16  ;;  %6230 = vmatprep.subr.bf16.mxu1 %v8079_v23  ;;  %v4382_v23 = vld [vmem:[#allocation14] sm:$0xff] }
 0x70d   :  { %6198 = vmatprep.subr.bf16.mxu0 %v6197_v54  ;;  %v4422_v16 = vld [vmem:[#allocation14 + $0x140] sm:$0xff]  ;;  %v4435_v54 = vld [vmem:[#allocation14 + $0x1a8] sm:$0xff] }
 0x70e   :  { %4265 = vmatmul.mubr.f32.vlgmr.msra.gmra.mrb[42].mxu0 %v8212_v4  ;;  %4336 = vmatmul.mubr.f32.vlgmr.msra.gmra.mrb[74].mxu1 %v8212_v4  ;;  %v4426_v27 = vld [vmem:[#allocation14 + $0x160] sm:$0xff] }
 0x70f   :  { %6232 = vmatpush1.bf16.msra.mxu1 %v8081_v34  ;;  %4510 = vmatprep.mubr.f32.mxu0 %v8376_v51  ;;  %v4386_v34 = vld [vmem:[#allocation14 + $0x20] sm:$0xff]  ;;  %v6219_v59 = vpack.c.bf16 %v4426_v27, %v4422_v16 }
 0x710   :  { %6234 = vmatprep.subr.bf16.mxu1 %v8085_v6  ;;  %4581 = vmatprep.mubr.f32.mxu1 %v8376_v51  ;;  %v6199_v6 = vpack.c.bf16 %v4386_v34, %v4382_v23  ;;  %v6221_v23 = vpack.c.bf16 %v4435_v54, %v4431_v42  ;;  %v4430_v34 = vld [vmem:[#allocation14 + $0x180] sm:$0xff] }
 0x712   :  { %6200 = vmatpush1.bf16.msra.mxu0 %v6199_v6  ;;  %v4434_v6 = vld [vmem:[#allocation14 + $0x1a0] sm:$0xff] }
 0x713   :  { %6236 = vmatpush1.bf16.msra.mxu1 %v8087_v14  ;;  %v4391_v14 = vld [vmem:[#allocation14 + $0x48] sm:$0xff] }
 0x714   :  { %6238 = vmatprep.subr.bf16.mxu1 %v8091_v28  ;;  %v4395_v28 = vld [vmem:[#allocation14 + $0x68] sm:$0xff] }
 0x717   :  { %6240 = vmatpush1.bf16.msra.mxu1 %v8093_v11  ;;  %v6201_v11 = vpack.c.bf16 %v4395_v28, %v4391_v14  ;;  %v6223_v14 = vpack.c.bf16 %v4434_v6, %v4430_v34  ;;  %v4439_v28 = vld [vmem:[#allocation14 + $0x1c8] sm:$0xff] }
 0x718   :  { %6242 = vmatprep.subr.bf16.mxu1 %v8097_v25  ;;  %v4390_v25 = vld [vmem:[#allocation14 + $0x40] sm:$0xff] }
 0x719   :  { %6202 = vmatprep.subr.bf16.mxu0 %v6201_v11  ;;  %v4443_v11 = vld [vmem:[#allocation14 + $0x1e8] sm:$0xff] }
 0x71b   :  { %6244 = vmatpush1.bf16.msra.mxu1 %v8099_v10  ;;  %v4394_v10 = vld [vmem:[#allocation14 + $0x60] sm:$0xff] }
 0x71c   :  { %6246 = vmatprep.subr.bf16.mxu1 %v8103_v52  ;;  %v6203_v52 = vpack.c.bf16 %v4394_v10, %v4390_v25  ;;  %v6225_v25 = vpack.c.bf16 %v4443_v11, %v4439_v28  ;;  %v4438_v10 = vld [vmem:[#allocation14 + $0x1c0] sm:$0xff] }
 0x71e   :  { %6204 = vmatpush1.bf16.msra.mxu0 %v6203_v52  ;;  %v4442_v52 = vld [vmem:[#allocation14 + $0x1e0] sm:$0xff] }
 0x71f   :  { %6248 = vmatpush1.bf16.msra.mxu1 %v8105_v47  ;;  %v4399_v47 = vld [vmem:[#allocation14 + $0x88] sm:$0xff] }
 0x720   :  { %6250 = vmatprep.subr.bf16.mxu1 %v8109_v8  ;;  %v4403_v8 = vld [vmem:[#allocation14 + $0xa8] sm:$0xff] }
 0x723   :  { %6252 = vmatpush1.bf16.msra.mxu1 %v8111_v18  ;;  %v6205_v18 = vpack.c.bf16 %v4403_v8, %v4399_v47  ;;  %v6227_v47 = vpack.c.bf16 %v4442_v52, %v4438_v10  ;;  %v4623_v8 = vld [vmem:[#allocation16 + $0x8] sm:$0xff]  ;;  %v8416_v10 = vld [vmem:[#allocation27_spill] sm:$0xff] }
 0x724   :  { %6254 = vmatprep.subr.bf16.mxu1 %v8115_v32  ;;  %v4398_v32 = vld [vmem:[#allocation14 + $0x80] sm:$0xff] }
 0x725   :  { %6206 = vmatprep.subr.bf16.mxu0 %v6205_v18  ;;  %v4627_v18 = vld [vmem:[#allocation16 + $0x28] sm:$0xff] }
 0x727   :  { %6256 = vmatpush1.bf16.msra.mxu1 %v8117_v50  ;;  %v4402_v50 = vld [vmem:[#allocation14 + $0xa0] sm:$0xff] }
 0x728   :  { %6258 = vmatprep.subr.bf16.mxu1 %v8121_v62  ;;  %v6207_v62 = vpack.c.bf16 %v4402_v50, %v4398_v32  ;;  %v6261_v32 = vpack.c.bf16 %v4627_v18, %v4623_v8 }
 0x72a   :  { %6208 = vmatpush1.bf16.msra.mxu0 %v6207_v62 }
 0x72b   :  { %6260 = vmatpush1.bf16.msra.mxu1 %v8123_v30  ;;  %v4407_v30 = vld [vmem:[#allocation14 + $0xc8] sm:$0xff] }
 0x72c   :  { %6294 = vmatprep.subr.bf16.mxu1 %v8127_v40  ;;  %v4411_v40 = vld [vmem:[#allocation14 + $0xe8] sm:$0xff] }
 0x72d   :  { %v6209_v5 = vpack.c.bf16 %v4411_v40, %v4407_v30  ;;  %v8412_v30 = vld [vmem:[#allocation45_spill] sm:$0xff] }
 0x72f   :  { %6210 = vmatprep.subr.bf16.mxu0 %v6209_v5  ;;  %v8413_v5 = vld [vmem:[#allocation58_spill] sm:$0xff] }
 0x730   :  { %6212 = vmatpush1.bf16.msra.mxu0 %v6211_v1 }
 0x731   :  { %6214 = vmatprep.subr.bf16.mxu0 %v6213_v56  ;;  %v8415_v56 = vld [vmem:[#allocation59_spill] sm:$0xff] }
 0x734   :  { %6216 = vmatpush1.bf16.msra.mxu0 %v6215_v31 }
 0x735   :  { %6218 = vmatprep.subr.bf16.mxu0 %v6217_v55 }
 0x738   :  { %6220 = vmatpush1.bf16.msra.mxu0 %v6219_v59 }
 0x739   :  { %6222 = vmatprep.subr.bf16.mxu0 %v6221_v23 }
 0x73c   :  { %6224 = vmatpush1.bf16.msra.mxu0 %v6223_v14 }
 0x73d   :  { %6226 = vmatprep.subr.bf16.mxu0 %v6225_v25 }
 0x740   :  { %6228 = vmatpush1.bf16.msra.mxu0 %v6227_v47  ;;  %v8417_v47 = vld [vmem:[#allocation64_spill] sm:$0xff] }
 0x741   :  { %6262 = vmatprep.subr.bf16.mxu0 %v6261_v32 }
 0x7c1   :  { %v4026_v50 = vpop.f32.mrb[40].mxu0  ;;  %v4097_v62 = vpop.f32.mrb[72].mxu1 }
 0x7c2   :  { %v4102_v40 = vadd.f32 %v4026_v50, %v8412_v30  ;;  %v4104_v12 = vadd.f32 %v4097_v62, %v8413_v5  ;;  %v4028_v44 = vpop.f32.mrb[41].mxu0  ;;  %v4099_v1 = vpop.f32.mrb[73].mxu1  ;;  %v8418_v50 = vld [vmem:[#allocation28_spill] sm:$0xff]  ;;  %v8419_v30 = vld [vmem:[#allocation65_spill] sm:$0xff] }
 0x7c3   :  { %v4103_v15 = vadd.f32 %v4028_v44, %v8414_v53  ;;  %v4105_v45 = vadd.f32 %v4099_v1, %v8415_v56  ;;  %v4626_v44 = vld [vmem:[#allocation16 + $0x20] sm:$0xff]  ;;  %v4631_v1 = vld [vmem:[#allocation16 + $0x48] sm:$0xff] }
 0x7c4   :  { %v5232_v57 = vmul.f32 -1.442695, %v4102_v40  ;;  %v4635_v53 = vld [vmem:[#allocation16 + $0x68] sm:$0xff] }
 0x7c5   :  { %v5233_v31 = vmul.f32 -1.442695, %v4103_v15  ;;  %v5234_v49 = vmul.f32 -1.442695, %v4105_v45 }
 0x7c6   :  { %6552 = vpow2.f32 %v5232_v57 }
 0x7c7   :  { %6554 = vpow2.f32 %v5233_v31 }
 0x7c8   :  { %6556 = vpow2.f32 %v5234_v49  ;;  %v6265_v49 = vpack.c.bf16 %v4635_v53, %v4631_v1  ;;  %v4666_v53 = vld [vmem:[#allocation16 + $0x160] sm:$0xff] }
 0x7c9   :  { %6558 = vtanh.f32 %v4104_v12 }
 0x7d0   :  { %v6553_v60 = vpop.eup %6552 }
 0x7d1   :  { %v6555_v55 = vpop.eup %6554  ;;  %v4109_v16 = vadd.f32 1.0, %v6553_v60  ;;  %v4630_v60 = vld [vmem:[#allocation16 + $0x40] sm:$0xff] }
 0x7d2   :  { %v4115_v27 = vadd.f32 1.0, %v6555_v55  ;;  %v6557_v59 = vpop.eup %6556  ;;  %v4634_v55 = vld [vmem:[#allocation16 + $0x60] sm:$0xff] }
 0x7d3   :  { %6560 = vrcp.f32 %v4109_v16  ;;  %v6559_v42 = vpop.eup %6558  ;;  %v4122_v6 = vadd.f32 1.0, %v6557_v59  ;;  %v4639_v16 = vld [vmem:[#allocation16 + $0x88] sm:$0xff] }
 0x7d4   :  { %6562 = vrcp.f32 %v4115_v27  ;;  %v4643_v27 = vld [vmem:[#allocation16 + $0xa8] sm:$0xff] }
 0x7d5   :  { %6564 = vrcp.f32 %v4122_v6  ;;  %v6269_v6 = vpack.c.bf16 %v4643_v27, %v4639_v16  ;;  %v4683_v16 = vld [vmem:[#allocation16 + $0x1e8] sm:$0xff]  ;;  %v4678_v27 = vld [vmem:[#allocation16 + $0x1c0] sm:$0xff] }
 0x7dd   :  { %v6561_v54 = vpop.eup %6560 }
 0x7de   :  { %v6563_v23 = vpop.eup %6562  ;;  %v4126_v34 = vmul.f32 %v6561_v54, %v6559_v42 }
 0x7df   :  { %v4125_v14 = vmul.f32 %v6563_v23, %v8135_v63  ;;  %v4622_v63 = vld [vmem:[#allocation16] sm:$0xff]  ;;  %v6565_v15 = vpop.eup %6564  ;;  %v6267_v23 = vpack.c.bf16 %v4634_v55, %v4630_v60  ;;  %v4679_v55 = vld [vmem:[#allocation16 + $0x1c8] sm:$0xff] }
 0x7e0   :  { %v6263_v57 = vpack.c.bf16 %v4626_v44, %v4622_v63  ;;  %v4670_v60 = vld [vmem:[#allocation16 + $0x180] sm:$0xff] }
 0x7e1   :  { %v8240_v28 = vadd.f32 %v4126_v34, %v4125_v14  ;;  %v4266_v11 = vpop.f32.mrb[42].mxu0  ;;  %v4337_v25 = vpop.f32.mrb[74].mxu1  ;;  %v4638_v14 = vld [vmem:[#allocation16 + $0x80] sm:$0xff] }
 0x7e2   :  { %v4342_v52 = vadd.f32 %v4266_v11, %v8416_v10  ;;  %v4344_v8 = vadd.f32 %v4337_v25, %v8417_v47  ;;  %v4268_v18 = vpop.f32.mrb[43].mxu0  ;;  %v4339_v32 = vpop.f32.mrb[75].mxu1  ;;  %v4642_v11 = vld [vmem:[#allocation16 + $0xa0] sm:$0xff]  ;;  %v4647_v25 = vld [vmem:[#allocation16 + $0xc8] sm:$0xff] }
 0x7e3   :  { %v4343_v62 = vadd.f32 %v4268_v18, %v8418_v50  ;;  %v4345_v40 = vadd.f32 %v4339_v32, %v8419_v30  ;;  %6566 = vtanh.f32 %v8240_v28  ;;  %v4651_v10 = vld [vmem:[#allocation16 + $0xe8] sm:$0xff]  ;;  %v4650_v47 = vld [vmem:[#allocation16 + $0xe0] sm:$0xff] }
 0x7e4   :  { %v5235_v5 = vmul.f32 -1.442695, %v4342_v52  ;;  %v6273_v52 = vpack.c.bf16 %v4651_v10, %v4647_v25  ;;  %v4659_v18 = vld [vmem:[#allocation16 + $0x128] sm:$0xff]  ;;  %v4654_v50 = vld [vmem:[#allocation16 + $0x100] sm:$0xff] }
 0x7e5   :  { %v5236_v12 = vmul.f32 -1.442695, %v4343_v62  ;;  %v5237_v45 = vmul.f32 -1.442695, %v4345_v40  ;;  %v4658_v62 = vld [vmem:[#allocation16 + $0x120] sm:$0xff]  ;;  %v4663_v30 = vld [vmem:[#allocation16 + $0x148] sm:$0xff] }
 0x7e6   :  { %6568 = vpow2.f32 %v5235_v5  ;;  %v4667_v40 = vld [vmem:[#allocation16 + $0x168] sm:$0xff]  ;;  %v6353_v25 = vld [vmem:[#allocation17 + $0x20] sm:$0xff]  }
 0x7e7   :  { %6570 = vpow2.f32 %v5236_v12  ;;  %v6279_v12 = vpack.c.bf16 %v4658_v62, %v4654_v50  ;;  %v6354_v10 = vld [vmem:[#allocation17 + $0x68] sm:$0xff]   ;;  %v8421_v62 = vld [vmem:[#allocation60_spill] sm:$0xff] }
 0x7e8   :  { %6572 = vpow2.f32 %v5237_v45  ;;  %v4675_v45 = vld [vmem:[#allocation16 + $0x1a8] sm:$0xff] }
 0x7e9   :  { %6574 = vtanh.f32 %v4344_v8  ;;  %v4655_v8 = vld [vmem:[#allocation16 + $0x108] sm:$0xff] }
 0x7ed   :  { %v6567_v56 = vpop.eup %6566 }
 0x7ee   :  { %v8247_v31 = vmul.f32 %v6567_v56, %v6565_v15  ;;  %v4671_v56 = vld [vmem:[#allocation16 + $0x188] sm:$0xff] }
 0x7f0   :  { %v6569_v59 = vpop.eup %6568  ;;  %4511 = vmatmul.mubr.f32.vlgmr.msra.gmra.mrb[44].mxu0 %v8247_v31  ;;  %4582 = vmatmul.mubr.f32.vlgmr.msra.gmra.mrb[76].mxu1 %v8247_v31 }
 0x7f1   :  { %v6571_v42 = vpop.eup %6570  ;;  %v4349_v54 = vadd.f32 1.0, %v6569_v59  ;;  %6264 = vmatpush1.bf16.msra.mxu0 %v6263_v57  ;;  %6296 = vmatpush1.bf16.msra.mxu1 %v8142_v22  ;;  %v6271_v22 = vpack.c.bf16 %v4642_v11, %v4638_v14  ;;  %v4682_v59 = vld [vmem:[#allocation16 + $0x1e0] sm:$0xff]  ;;  %v6350_v14 = vld [vmem:[#allocation17 + $0x58] sm:$0xff]  }
 0x7f2   :  { %v4355_v34 = vadd.f32 1.0, %v6571_v42  ;;  %6266 = vmatprep.subr.bf16.mxu0 %v6265_v49  ;;  %6298 = vmatprep.subr.bf16.mxu1 %v8146_v13  ;;  %v4646_v13 = vld [vmem:[#allocation16 + $0xc0] sm:$0xff]  ;;  %v6285_v49 = vpack.c.bf16 %v4675_v45, %v4671_v56 }
 0x7f3   :  { %6576 = vrcp.f32 %v4349_v54  ;;  %4750 = vmatprep.mubr.f32.mxu0 %v8376_v51  ;;  %4821 = vmatprep.mubr.f32.mxu1 %v8376_v51  ;;  %v6275_v32 = vpack.c.bf16 %v4650_v47, %v4646_v13  ;;  %v6277_v51 = vpack.c.bf16 %v4659_v18, %v4655_v8  ;;  %v6352_v11 = vld [vmem:[#allocation17 + $0x60] sm:$0xff]   ;;  %v6357_v13 = vld [vmem:[#allocation17 + $0x30] sm:$0xff]   ;;  %v6358_v47 = vld [vmem:[#allocation17 + $0x78] sm:$0xff]  }
 0x7f4   :  { %6578 = vrcp.f32 %v4355_v34  ;;  %v6347_v34 = vld [vmem:[#allocation17 + $0x8] sm:$0xff]   ;;  %v6359_v8 = vld [vmem:[#allocation17 + $0x38] sm:$0xff]  }
 0x7f5   :  { %6268 = vmatpush1.bf16.msra.mxu0 %v6267_v23  ;;  %6300 = vmatpush1.bf16.msra.mxu1 %v8152_v20  ;;  %v6573_v20 = vpop.eup %6572  ;;  %v6345_v23 = vld [vmem:[#allocation17] sm:$0xff]  }
 0x7f6   :  { %6270 = vmatprep.subr.bf16.mxu0 %v6269_v6  ;;  %6302 = vmatprep.subr.bf16.mxu1 %v8156_v36  ;;  %v6575_v5 = vpop.eup %6574  ;;  %v4362_v1 = vadd.f32 1.0, %v6573_v20  ;;  %v6349_v6 = vld [vmem:[#allocation17 + $0x10] sm:$0xff]  }
 0x7f8   :  { %6580 = vrcp.f32 %v4362_v1 }
 0x7f9   :  { %6272 = vmatpush1.bf16.msra.mxu0 %v6271_v22  ;;  %6304 = vmatpush1.bf16.msra.mxu1 %v8162_v19  ;;  %v6281_v19 = vpack.c.bf16 %v4667_v40, %v4663_v30  ;;  %v6355_v22 = vld [vmem:[#allocation17 + $0x28] sm:$0xff]  }
 0x7fa   :  { %6274 = vmatprep.subr.bf16.mxu0 %v6273_v52  ;;  %6306 = vmatprep.subr.bf16.mxu1 %v8166_v17  ;;  %v4662_v17 = vld [vmem:[#allocation16 + $0x140] sm:$0xff]  ;;  %v6356_v52 = vld [vmem:[#allocation17 + $0x70] sm:$0xff]  }
 0x7fd   :  { %v6577_v36 = vpop.eup %6576  ;;  %6276 = vmatpush1.bf16.msra.mxu0 %v6275_v32  ;;  %6308 = vmatpush1.bf16.msra.mxu1 %v8170_v41  ;;  %v6283_v41 = vpack.c.bf16 %v4666_v53, %v4662_v17 }
 0x7fe   :  { %v6579_v63 = vpop.eup %6578  ;;  %v4366_v44 = vmul.f32 %v6577_v36, %v6575_v5  ;;  %6278 = vmatprep.subr.bf16.mxu0 %v6277_v51  ;;  %6310 = vmatprep.subr.bf16.mxu1 %v8174_v61  ;;  %v4674_v61 = vld [vmem:[#allocation16 + $0x1a0] sm:$0xff]  ;;  %v8420_v51 = vld [vmem:[#allocation47_spill] sm:$0xff] }
 0x7ff   :  { %v4365_v15 = vmul.f32 %v6579_v63, %v8185_v9  ;;  %v6287_v9 = vpack.c.bf16 %v4674_v61, %v4670_v60  ;;  %v8422_v5 = vld [vmem:[#allocation49_spill] sm:$0xff] }
 0x801   :  { %v8262_v57 = vadd.f32 %v4366_v44, %v4365_v15  ;;  %6280 = vmatpush1.bf16.msra.mxu0 %v6279_v12  ;;  %6312 = vmatpush1.bf16.msra.mxu1 %v8178_v7  ;;  %v6289_v7 = vpack.c.bf16 %v4683_v16, %v4679_v55  ;;  %v8423_v12 = vld [vmem:[#allocation61_spill] sm:$0xff] }
 0x802   :  { %6282 = vmatprep.subr.bf16.mxu0 %v6281_v19  ;;  %6314 = vmatprep.subr.bf16.mxu1 %v8182_v33  ;;  %v6291_v33 = vpack.c.bf16 %v4682_v59, %v4678_v27  ;;  %v6581_v42 = vpop.eup %6580  ;;  %v8424_v59 = vld [vmem:[#allocation25_spill] sm:$0xff] }
 0x803   :  { %6582 = vtanh.f32 %v8262_v57 }
 0x805   :  { %6284 = vmatpush1.bf16.msra.mxu0 %v6283_v41  ;;  %6316 = vmatpush1.bf16.msra.mxu1 %v8189_v29 }
 0x806   :  { %6286 = vmatprep.subr.bf16.mxu0 %v6285_v49  ;;  %6318 = vmatprep.subr.bf16.mxu1 %v8193_v43  ;;  %v6344_v43 = vld [vmem:[#allocation17 + $0x40] sm:$0xff]  }
 0x809   :  { %6288 = vmatpush1.bf16.msra.mxu0 %v6287_v9  ;;  %6320 = vmatpush1.bf16.msra.mxu1 %v8198_v48  ;;  %v6346_v48 = vld [vmem:[#allocation17 + $0x48] sm:$0xff]  }
 0x80a   :  { %6290 = vmatprep.subr.bf16.mxu0 %v6289_v7  ;;  %6322 = vmatprep.subr.bf16.mxu1 %v8202_v3  ;;  %v6348_v3 = vld [vmem:[#allocation17 + $0x50] sm:$0xff]  }
 0x80d   :  { %v6583_v54 = vpop.eup %6582  ;;  %6292 = vmatpush1.bf16.msra.mxu0 %v6291_v33  ;;  %6324 = vmatpush1.bf16.msra.mxu1 %v8206_v24  ;;  %v6351_v24 = vld [vmem:[#allocation17 + $0x18] sm:$0xff]  }
 0x80e   :  { %v8272_v29 = vmul.f32 %v6583_v54, %v6581_v42  ;;  %5261 = vmatprep.subr.bf16.mxu0 %v6344_v43  ;;  %v8425_v42 = vld [vmem:[#allocation62_spill] sm:$0xff] }
 0x810   :  { %4751 = vmatmul.mubr.f32.vlgmr.msra.gmra.mrb[46].mxu0 %v8272_v29  ;;  %4822 = vmatmul.mubr.f32.vlgmr.msra.gmra.mrb[78].mxu1 %v8272_v29 }
 0x811   :  { %5262 = vmatpush3.bf16.msra.mxu0 %v6345_v23 }
 0x812   :  { %5263 = vmatprep.subr.bf16.mxu0 %v6346_v48  ;;  %v8426_v48 = vld [vmem:[#allocation26_spill] sm:$0xff] }
 0x815   :  { %5264 = vmatpush3.bf16.msra.mxu0 %v6347_v34 }
 0x816   :  { %5265 = vmatprep.subr.bf16.mxu0 %v6348_v3  ;;  %v8427_v3 = vld [vmem:[#allocation63_spill] sm:$0xff] }
 0x819   :  { %5266 = vmatpush3.bf16.msra.mxu0 %v6349_v6 }
 0x81a   :  { %5267 = vmatprep.subr.bf16.mxu0 %v6350_v14 }
 0x81d   :  { %5268 = vmatpush3.bf16.msra.mxu0 %v6351_v24 }
 0x81e   :  { %5269 = vmatprep.subr.bf16.mxu0 %v6352_v11 }
 0x821   :  { %5270 = vmatpush3.bf16.msra.mxu0 %v6353_v25 }
 0x822   :  { %5271 = vmatprep.subr.bf16.mxu0 %v6354_v10 }
 0x825   :  { %5272 = vmatpush3.bf16.msra.mxu0 %v6355_v22 }
 0x826   :  { %5273 = vmatprep.subr.bf16.mxu0 %v6356_v52 }
 0x829   :  { %5274 = vmatpush3.bf16.msra.mxu0 %v6357_v13 }
 0x82a   :  { %5275 = vmatprep.subr.bf16.mxu0 %v6358_v47 }
 0x82d   :  { %5276 = vmatpush3.bf16.msra.mxu0 %v6359_v8 }
 0x8c3   :  { %v4512_v18 = vpop.f32.mrb[44].mxu0  ;;  %v4583_v32 = vpop.f32.mrb[76].mxu1 }
 0x8c4   :  { %v4588_v50 = vadd.f32 %v4512_v18, %v8420_v51  ;;  %v4590_v20 = vadd.f32 %v4583_v32, %v8421_v62  ;;  %v4514_v30 = vpop.f32.mrb[45].mxu0  ;;  %v4585_v40 = vpop.f32.mrb[77].mxu1 }
 0x8c5   :  { %v4589_v36 = vadd.f32 %v4514_v30, %v8422_v5  ;;  %v4591_v63 = vadd.f32 %v4585_v40, %v8423_v12 }
 0x8c6   :  { %v5238_v44 = vmul.f32 -1.442695, %v4588_v50 }
 0x8c7   :  { %v5239_v1 = vmul.f32 -1.442695, %v4589_v36  ;;  %v5240_v19 = vmul.f32 -1.442695, %v4591_v63  ;;  %v4878_v63 = vpack.c.bf16 %v7520_v58, %v7363_v21 }
 0x8c8   :  { %6584 = vpow2.f32 %v5238_v44  ;;  %v4881_v44 = vpack.c.bf16 %v8056_v37, %v8212_v4 }
 0x8c9   :  { %6586 = vpow2.f32 %v5239_v1  ;;  %v4883_v1 = vpack.c.bf16 %v7744_v46, %v7900_v26 }
 0x8ca   :  { %6588 = vpow2.f32 %v5240_v19  ;;  %v8428_v19 = vld [vmem:[#allocation75_spill] sm:$0xff] }
 0x8cb   :  { %6590 = vtanh.f32 %v4590_v20  ;;  %v4885_v21 = vpack.c.bf16 %v8428_v19, %v7588_v2 }
 0x8d2   :  { %v6585_v17 = vpop.eup %6584 }
 0x8d3   :  { %v6587_v53 = vpop.eup %6586  ;;  %v4595_v15 = vadd.f32 1.0, %v6585_v17 }
 0x8d4   :  { %v4601_v56 = vadd.f32 1.0, %v6587_v53  ;;  %v6589_v45 = vpop.eup %6588 }
 0x8d5   :  { %6592 = vrcp.f32 %v4595_v15  ;;  %v6591_v41 = vpop.eup %6590  ;;  %v4608_v55 = vadd.f32 1.0, %v6589_v45 }
 0x8d6   :  { %6594 = vrcp.f32 %v4601_v56 }
 0x8d7   :  { %6596 = vrcp.f32 %v4608_v55 }
 0x8df   :  { %v6593_v49 = vpop.eup %6592 }
 0x8e0   :  { %v6595_v60 = vpop.eup %6594  ;;  %v4612_v61 = vmul.f32 %v6593_v49, %v6591_v41 }
 0x8e1   :  { %v4611_v16 = vmul.f32 %v6595_v60, %v8240_v28  ;;  %v6597_v28 = vpop.eup %6596 }
 0x8e3   :  { %v4752_v9 = vpop.f32.mrb[46].mxu0  ;;  %v4823_v7 = vpop.f32.mrb[78].mxu1  ;;  %v4613_v27 = vadd.f32 %v4612_v61, %v4611_v16 }
 0x8e4   :  { %v4828_v33 = vadd.f32 %v4752_v9, %v8424_v59  ;;  %v4830_v54 = vadd.f32 %v4823_v7, %v8425_v42  ;;  %v4754_v43 = vpop.f32.mrb[47].mxu0  ;;  %v4825_v23 = vpop.f32.mrb[79].mxu1 }
 0x8e5   :  { %v4829_v34 = vadd.f32 %v4754_v43, %v8426_v48  ;;  %v4831_v6 = vadd.f32 %v4825_v23, %v8427_v3  ;;  %6598 = vtanh.f32 %v4613_v27 }
 0x8e6   :  { %v5241_v14 = vmul.f32 -1.442695, %v4828_v33 }
 0x8e7   :  { %v5242_v24 = vmul.f32 -1.442695, %v4829_v34  ;;  %v5243_v25 = vmul.f32 -1.442695, %v4831_v6 }
 0x8e8   :  { %6600 = vpow2.f32 %v5241_v14 }
 0x8e9   :  { %6602 = vpow2.f32 %v5242_v24 }
 0x8ea   :  { %6604 = vpow2.f32 %v5243_v25 }
 0x8eb   :  { %6606 = vtanh.f32 %v4830_v54 }
 0x8ef   :  { %v6599_v11 = vpop.eup %6598 }
 0x8f0   :  { %v4615_v10 = vmul.f32 %v6599_v11, %v6597_v28 }
 0x8f2   :  { %v6601_v22 = vpop.eup %6600  ;;  %v4884_v58 = vpack.c.bf16 %v4615_v10, %v8247_v31 }
 0x8f3   :  { %v6603_v52 = vpop.eup %6602  ;;  %v4835_v13 = vadd.f32 1.0, %v6601_v22 }
 0x8f4   :  { %v4841_v47 = vadd.f32 1.0, %v6603_v52  ;;  %v6605_v8 = vpop.eup %6604 }
 0x8f5   :  { %6608 = vrcp.f32 %v4835_v13  ;;  %v6607_v18 = vpop.eup %6606  ;;  %v4848_v62 = vadd.f32 1.0, %v6605_v8 }
 0x8f6   :  { %6610 = vrcp.f32 %v4841_v47 }
 0x8f7   :  { %6612 = vrcp.f32 %v4848_v62 }
 0x8ff   :  { %v6609_v32 = vpop.eup %6608 }
 0x900   :  { %v6611_v51 = vpop.eup %6610  ;;  %v4852_v50 = vmul.f32 %v6609_v32, %v6607_v18 }
 0x901   :  { %v4851_v20 = vmul.f32 %v6611_v51, %v8262_v57  ;;  %v6613_v40 = vpop.eup %6612  ;;  %v4880_v57 = vpack.c.bf16 %v7832_v35, %v7676_v38  ;;  %v5244_v38 = vld [vmem:[%s8321_s6] ss:$0 sm:$0xff]  ;;  %s6792_s6 = smov [#allocation19]  }
 0x902   :  { %s5099_s3 = sshll.u32 %s6792_s6, 4  ;;  %s5100_s3 = int_to_ptr.vmem [resolvable:$true] %s5099_s3 }
 0x903   :  { %v4853_v30 = vadd.f32 %v4852_v50, %v4851_v20  ;;  %s6748_s15 = scalar_lea.vmem %s5100_s3, 1024  ;;  %p6753_p7 = scmp.lt.s32.totalorder %s5100_s3, %s5100_s3 }
 0x904   :  { %p6749_p6 = scmp.ne.s32.totalorder %s5100_s3, %s6748_s15  ;;  %p6754_p8 = scmp.lt.s32.totalorder %s6748_s15, %s6748_s15 }
 0x905   :  { %6614 = vtanh.f32 %v4853_v30 }
 0x906   :  { %p6755_p9 = por %p6754_p8, %p6753_p7 }
 0x908   :  { %p6756_p10 = pnand %p6755_p9, %p6749_p6 }
 0x90f   :  { %v6615_v5 = vpop.eup %6614 }
 0x910   :  { %v4855_v36 = vmul.f32 %v6615_v5, %v6613_v40 }
 0x912   :  { %v4879_v12 = vpack.c.bf16 %v8272_v29, %v4855_v36  ;;  %v4882_v29 = vpack.c.bf16 %v8144_v39, %v7988_v0 }
 0x914   :  { %5053 = vmatprep.mubr.bf16.mxu0 %v4879_v12 }
 0x915   :  { %5054 = vmatmul.mubr.bf16.vlgmr.msra.gmra.mrb[48].mxu0 %v4878_v63 }
 0x916   :  { %5061 = vmatprep.mubr.bf16.mxu0 %v4881_v44 }
 0x91d   :  { %5062 = vmatmul.mubr.bf16.gmra.mrb[52].mxu0 %v4880_v57 }
 0x91e   :  { %5069 = vmatprep.mubr.bf16.mxu0 %v4883_v1 }
 0x925   :  { %5070 = vmatmul.mubr.bf16.gmra.mrb[56].mxu0 %v4882_v29 }
 0x926   :  { %5077 = vmatprep.mubr.bf16.mxu0 %v4885_v21 }
 0x92d   :  { %5078 = vmatmul.mubr.bf16.gmra.mrb[60].mxu0 %v4884_v58 }
 0x9e8   :  { %v5277_v37 = vpop.f32.mrb[48].mxu0 }
 0x9e9   :  { %v5278_v35 = vpop.f32.mrb[49].mxu0 }
 0x9ea   :  { %v5279_v46 = vadd.f32 %v5278_v35, %v5277_v37  ;;  %v5280_v26 = vpop.f32.mrb[50].mxu0 }
 0x9eb   :  { %v5281_v4 = vpop.f32.mrb[51].mxu0 }
 0x9ec   :  { %v5056_v17 = vadd.f32 %v5279_v46, %v5244_v38  ;;  %v5282_v53 = vadd.f32 %v5281_v4, %v5280_v26 }
 0x9ee   :  { %5086 = vst [vmem:[#allocation19] sm:$0xff] %v5056_v17  ;;  %v5059_v0 = vadd.f32 %v5282_v53, %v5244_v38 }
 0x9f0   :  { %5087 = vst [vmem:[#allocation19 + $0x8] sm:$0xff] %v5059_v0  ;;  %v5283_v2 = vpop.f32.mrb[52].mxu0 }
 0x9f1   :  { %v5284_v39 = vpop.f32.mrb[53].mxu0 }
 0x9f2   :  { %v5285_v15 = vadd.f32 %v5284_v39, %v5283_v2  ;;  %v5286_v56 = vpop.f32.mrb[54].mxu0 }
 0x9f3   :  { %v5287_v31 = vpop.f32.mrb[55].mxu0 }
 0x9f4   :  { %v5064_v45 = vadd.f32 %v5285_v15, %v5244_v38  ;;  %v5288_v41 = vadd.f32 %v5287_v31, %v5286_v56 }
 0x9f6   :  { %5088 = vst [vmem:[#allocation19 + $0x10] sm:$0xff] %v5064_v45  ;;  %v5067_v49 = vadd.f32 %v5288_v41, %v5244_v38 }
 0x9f8   :  { %5089 = vst [vmem:[#allocation19 + $0x18] sm:$0xff] %v5067_v49  ;;  %v5289_v60 = vpop.f32.mrb[56].mxu0 }
 0x9f9   :  { %v5290_v61 = vpop.f32.mrb[57].mxu0 }
 0x9fa   :  { %v5291_v55 = vadd.f32 %v5290_v61, %v5289_v60  ;;  %v5292_v16 = vpop.f32.mrb[58].mxu0 }
 0x9fb   :  { %v5293_v9 = vpop.f32.mrb[59].mxu0 }
 0x9fc   :  { %v5072_v7 = vadd.f32 %v5291_v55, %v5244_v38  ;;  %v5294_v27 = vadd.f32 %v5293_v9, %v5292_v16 }
 0x9fe   :  { %5090 = vst [vmem:[#allocation19 + $0x20] sm:$0xff] %v5072_v7  ;;  %v5075_v59 = vadd.f32 %v5294_v27, %v5244_v38 }
 0xa00   :  { %5091 = vst [vmem:[#allocation19 + $0x28] sm:$0xff] %v5075_v59  ;;  %v5295_v33 = vpop.f32.mrb[60].mxu0 }
 0xa01   :  { %v5296_v42 = vpop.f32.mrb[61].mxu0 }
 0xa02   :  { %v5297_v54 = vadd.f32 %v5296_v42, %v5295_v33  ;;  %v5298_v43 = vpop.f32.mrb[62].mxu0 }
 0xa03   :  { %v5299_v23 = vpop.f32.mrb[63].mxu0 }
 0xa04   :  { %v5080_v48 = vadd.f32 %v5297_v54, %v5244_v38  ;;  %v5300_v34 = vadd.f32 %v5299_v23, %v5298_v43 }
 0xa06   :  { %5092 = vst [vmem:[#allocation19 + $0x30] sm:$0xff] %v5080_v48  ;;  %v5083_v3 = vadd.f32 %v5300_v34, %v5244_v38 }
 0xa08   :  { %5093 = vst [vmem:[#allocation19 + $0x38] sm:$0xff] %v5083_v3 }
 0xa09   :  { %6759 = shalt.err (!%p6756_p10)
}
 0xa0a   :  { %s6760_s29 = scalar_lea.hbm %s8322_s7, 1024 }
 0xa0b   :  { %p6761_p11 = scmp.ne.s32.totalorder %s8322_s7, %s6760_s29  ;;  %p6764_p12 = scmp.lt.u32.totalorder %s6760_s29, %s8322_s7 }
 0xa0d   :  { %p6766_p13 = pnand %p6764_p12, %p6761_p11 }
 0xa0f   :  { %6769 = shalt.err (!%p6766_p13)
}
 0xa10   :  { %s6793_s13 = smov 128   ;;  %s6794_s14 = smov 8  }
 0xa11   :  { %5105 = dma.vmem_to_hbm [thread:$0]  %s5100_s3, 1024, %s8322_s7, [#allocation10], %s6793_s13, %s6793_s13, %s6794_s14  }
 0xa12   :  { %6778 = dma.done.wait [#allocation10], 1024  }
 0xa13   :  { %6779 = vsyncadd [#allocation10], 4294966272 }
 0xa14   :  { %5109 = vsyncpa [#allocation9], 1 }
 0xa15   :  { %5110 = vsyncpa [#allocation12], 1 }
 0xa16   :  { %5111 = vsyncpa [#allocation15], 1 }
 0xa17   :  { %5112 = vsyncpa [#allocation18], 1 }
 0xa18   :  { %5113 = vsyncpa [#allocation10], 1 }

</bundles_post_ra>
